<compile_context>
chip_gen: v5e
topology: v5e:2x2
jax: 0.10.0
libtpu: 0.0.40
codegen_flags: <defaults>
</compile_context>

<pallas_src>
import jax
import jax.numpy as jnp
from jax.experimental import pallas as pl
from jax.experimental.pallas import tpu as pltpu


# ----------------------------------------------------------------------------
# Helpers
# ----------------------------------------------------------------------------
def _round_up(x, m):
    return (x + m - 1) // m * m


def _pick_batch_tile(batch, max_images=64):
    """Images per grid step.

    * multiple of 8 images so every block's sublane dim is a multiple of 8,
    * >= 2 grid steps whenever the batch allows it (v7x's 2nd TensorCore,
      DMA/compute overlap on all generations),
    * capped so the double-buffered VMEM footprint stays well under 32 MiB
      (conservative for v7x's 64 MiB physical VMEM; also fits v5e defaults).
    """
    half = -(-batch // 2)
    t = _round_up(max(half, 1), 8)
    return max(8, min(max_images, t))


_COMPILER_PARAMS = pltpu.CompilerParams(
    dimension_semantics=("parallel",),
    vmem_limit_bytes=32 << 20,
)


# ----------------------------------------------------------------------------
# Kernel 1: conv1 (packed block-diag matmul) + 2x2 max-pool + bias + ReLU
# ----------------------------------------------------------------------------
def _conv1_kernel(p_ref, w_ref, b_ref, o_ref):
    """p_ref: [4, R, 384] bf16   (quadrant, row=(b,h), lane=(w, tap))
       w_ref: [384, 128]  bf16   block-diagonal conv1 weight
       b_ref: [1, 128]    f32    per-(w,c) tiled bias
       o_ref: [R, 128]    bf16   packed pooled+ReLU activations, lane = w*10+c
    """
    w = w_ref[...]
    acc = None
    for q in range(4):                       # pooling quadrants
        zq = jnp.dot(p_ref[q], w, preferred_element_type=jnp.float32)
        acc = zq if acc is None else jnp.maximum(acc, zq)
    o_ref[...] = jnp.maximum(acc + b_ref[...], 0.0).astype(o_ref.dtype)


def conv1_pool_relu(p1, w1blk, b1p, bt):
    """p1: [4, Bpad*12, 384] bf16 -> [Bpad*12, 128] bf16 (packed a1)."""
    _, rows, kp = p1.shape
    c = w1blk.shape[1]
    tile_rows = bt * 12
    return pl.pallas_call(
        _conv1_kernel,
        out_shape=jax.ShapeDtypeStruct((rows, c), jnp.bfloat16),
        grid=(rows // tile_rows,),
        in_specs=[
            pl.BlockSpec((4, tile_rows, kp), lambda i: (0, i, 0)),
            pl.BlockSpec((kp, c), lambda i: (0, 0)),      # weight stays resident
            pl.BlockSpec((1, c), lambda i: (0, 0)),
        ],
        out_specs=pl.BlockSpec((tile_rows, c), lambda i: (i, 0)),
        compiler_params=_COMPILER_PARAMS,
    )(p1, w1blk, b1p)


# ----------------------------------------------------------------------------
# Kernel 2: conv2 + pool + relu + fc1 + relu + fc2 + log_softmax (fused)
# ----------------------------------------------------------------------------
def _conv2_mlp_kernel(p_ref, w2_ref, b2_ref, wf1_ref, bf1_ref, wf2_ref,
                      bf2_ref, o_ref):
    """p_ref : [4, 16, Bt, 256] bf16 conv2 im2col patches (quad, pos, b, K)
       w2_ref: [256, 128] bf16, b2_ref: [1, 128] f32
       wf1_ref: [16, 128, 128] bf16 (fc1 weight expanded per pooled position)
       bf1_ref/bf2_ref: [1, 128] f32  (bf2 padded lanes = -1e30: class mask)
       wf2_ref: [128, 128] bf16
       o_ref : [Bt, 128] f32 log-probs (first 10 lanes real)
    """
    npos = p_ref.shape[1]          # 16 pooled positions per image
    bt = p_ref.shape[2]            # images per tile
    kp = p_ref.shape[3]
    w2 = w2_ref[...]

    # conv2 matmul per pooling quadrant + running max (= 2x2 max-pool).
    acc = None
    for q in range(4):
        pq = p_ref[q].reshape(npos * bt, kp)          # rows = (pos, b_local)
        zq = jnp.dot(pq, w2, preferred_element_type=jnp.float32)
        acc = zq if acc is None else jnp.maximum(acc, zq)
    # bias-after-max is exact (per-channel bias, monotone max); dropout2d = id.
    a2 = jnp.maximum(acc + b2_ref[...], 0.0).astype(jnp.bfloat16)  # [16*Bt,128]

    # fc1: sum over the 16 pooled positions of [Bt,128]x[128,128] matmuls.
    h = jnp.zeros((bt, wf1_ref.shape[2]), jnp.float32)
    for pos in range(npos):
        h = h + jnp.dot(a2[pos * bt:(pos + 1) * bt, :], wf1_ref[pos],
                        preferred_element_type=jnp.float32)
    h = jnp.maximum(h + bf1_ref[...], 0.0).astype(jnp.bfloat16)     # relu; dropout=id

    # fc2 + log_softmax.  Padded classes carry bf2 = -1e30, so exp underflows
    # to 0 and the normalizer only covers the 10 real classes.
    logits = jnp.dot(h, wf2_ref[...],
                     preferred_element_type=jnp.float32) + bf2_ref[...]
    m = jnp.max(logits, axis=-1, keepdims=True)
    s = logits - m
    lse = jnp.log(jnp.sum(jnp.exp(s), axis=-1, keepdims=True))
    o_ref[...] = s - lse


def conv2_mlp_logsoftmax(p2, params, bt):
    """p2: [4, 16, Bpad, 256] bf16 -> [Bpad, 128] f32 log-probs."""
    _, npos, bpad, kp = p2.shape
    return pl.pallas_call(
        _conv2_mlp_kernel,
        out_shape=jax.ShapeDtypeStruct((bpad, 128), jnp.float32),
        grid=(bpad // bt,),
        in_specs=[
            pl.BlockSpec((4, npos, bt, kp), lambda i: (0, 0, i, 0)),
            pl.BlockSpec(params["w2"].shape, lambda i: (0, 0)),
            pl.BlockSpec(params["b2"].shape, lambda i: (0, 0)),
            pl.BlockSpec(params["wf1"].shape, lambda i: (0, 0, 0)),
            pl.BlockSpec(params["bf1"].shape, lambda i: (0, 0)),
            pl.BlockSpec(params["wf2"].shape, lambda i: (0, 0)),
            pl.BlockSpec(params["bf2"].shape, lambda i: (0, 0)),
        ],
        out_specs=pl.BlockSpec((bt, 128), lambda i: (i, 0)),
        compiler_params=_COMPILER_PARAMS,
    )(p2, params["w2"], params["b2"], params["wf1"], params["bf1"],
      params["wf2"], params["bf2"])


# ----------------------------------------------------------------------------
# Plain-JAX glue: im2col patch slabs (eval-mode; all slicing is static)
# ----------------------------------------------------------------------------
def conv1_patches_packed(x):
    """x: [B, 28, 28] f32 -> [4, B*12, 12*32] bf16 packed conv1 patch slab.

    Row (b*12+oh), lane (ow*32 + kh*5 + kw) holds
        x[b, 2*oh + ph + kh, 2*ow + pw + kw]   for pool quadrant q = 2*ph + pw.
    """
    b, h, w = x.shape
    k, pool = 5, 2
    hp = (h - k + 1) // pool       # 12
    wp = (w - k + 1) // pool       # 12
    quads = []
    for ph in range(pool):
        for pw in range(pool):
            taps = []
            for kh in range(k):
                for kw in range(k):
                    r0, c0 = ph + kh, pw + kw
                    sl = x[:, r0:r0 + pool * (hp - 1) + 1:pool,
                              c0:c0 + pool * (wp - 1) + 1:pool]     # [B,12,12]
                    taps.append(sl)
            t = jnp.stack(taps, axis=-1)                            # [B,12,12,25]
            t = jnp.pad(t, ((0, 0), (0, 0), (0, 0), (0, 32 - k * k)))
            quads.append(t.reshape(b * hp, wp * 32))                # [B*12,384]
    return jnp.stack(quads, axis=0).astype(jnp.bfloat16)


def conv2_patches(a1):
    """a1: [B, 12, 12, 10] bf16 -> [4, 16, B, 256] bf16 conv2 patch slab.

    p2[q, oh*4+ow, b, (kh*5+kw)*10 + ci] = a1[b, 2*oh+ph+kh, 2*ow+pw+kw, ci].
    """
    b = a1.shape[0]
    cin = a1.shape[-1]             # 10
    k, pool = 5, 2
    hp = (a1.shape[1] - k + 1) // pool   # 4
    wp = hp
    quads = []
    for ph in range(pool):
        for pw in range(pool):
            taps = []
            for kh in range(k):
                for kw in range(k):
                    r0, c0 = ph + kh, pw + kw
                    sl = a1[:, r0:r0 + pool * (hp - 1) + 1:pool,
                               c0:c0 + pool * (wp - 1) + 1:pool, :]  # [B,4,4,10]
                    taps.append(sl)
            t = jnp.stack(taps, axis=3)                    # [B,4,4,25,10]
            t = t.reshape(b, hp * wp, k * k * cin)         # [B,16,250]
            t = jnp.pad(t, ((0, 0), (0, 0), (0, 256 - k * k * cin)))
            quads.append(jnp.transpose(t, (1, 0, 2)))      # [16,B,256]
    return jnp.stack(quads, axis=0).astype(jnp.bfloat16)   # [4,16,B,256]


# ----------------------------------------------------------------------------
# Full forward pass
# ----------------------------------------------------------------------------
def net_forward(x_nchw, params):
    b = x_nchw.shape[0]
    bt = _pick_batch_tile(b)
    bpad = _round_up(b, bt)

    x = x_nchw[:, 0, :, :].astype(jnp.float32)             # [B, 28, 28]
    if bpad != b:
        x = jnp.pad(x, ((0, bpad - b), (0, 0), (0, 0)))

    # conv1 + pool + relu (kernel 1), packed output.
    p1 = conv1_patches_packed(x)                            # [4, Bp*12, 384]
    a1p = conv1_pool_relu(p1, params["w1blk"], params["b1p"], bt)
    a1 = a1p[:, :120].reshape(bpad, 12, 12, 10)             # NHWC activations

    # conv2 + pool + relu + fc1 + relu + fc2 + log_softmax (fused kernel 2).
    p2 = conv2_patches(a1)                                  # [4, 16, Bp, 256]
    out = conv2_mlp_logsoftmax(p2, params, bt)              # [Bp, 128] f32
    return out[:b, :10]


# ----------------------------------------------------------------------------
# Parameters: PyTorch-layout weights + packing into the kernel layouts
# ----------------------------------------------------------------------------
def init_torch_params(key):
    ks = jax.random.split(key, 8)
    return dict(
        conv1_w=jax.random.normal(ks[0], (10, 1, 5, 5), jnp.float32) * 0.1,
        conv1_b=jax.random.normal(ks[1], (10,), jnp.float32) * 0.1,
        conv2_w=jax.random.normal(ks[2], (20, 10, 5, 5), jnp.float32) * 0.05,
        conv2_b=jax.random.normal(ks[3], (20,), jnp.float32) * 0.05,
        fc1_w=jax.random.normal(ks[4], (50, 320), jnp.float32) * 0.05,
        fc1_b=jax.random.normal(ks[5], (50,), jnp.float32) * 0.05,
        fc2_w=jax.random.normal(ks[6], (10, 50), jnp.float32) * 0.1,
        fc2_b=jax.random.normal(ks[7], (10,), jnp.float32) * 0.1,
    )


def pack_params(tp):
    # conv1: (kh,kw,ci,co) flatten, then block-diagonal over the 12 output
    # columns so the kernel's matmul directly emits the (w,c)-packed layout.
    w1flat = jnp.transpose(tp["conv1_w"], (2, 3, 1, 0)).reshape(25, 10)
    w1pad = jnp.pad(w1flat, ((0, 7), (0, 0)))                         # [32,10]
    eye12 = jnp.eye(12, dtype=jnp.float32)
    w1blk = (eye12[:, None, :, None] * w1pad[None, :, None, :]).reshape(384, 120)
    w1blk = jnp.pad(w1blk, ((0, 0), (0, 8)))                          # [384,128]
    b1p = jnp.pad(jnp.tile(tp["conv1_b"], 12), (0, 8)).reshape(1, 128)

    # conv2: (kh,kw,ci,co) flatten, K 250->256, Cout 20->128.
    w2flat = jnp.transpose(tp["conv2_w"], (2, 3, 1, 0)).reshape(250, 20)
    w2 = jnp.pad(w2flat, ((0, 6), (0, 108)))                          # [256,128]
    b2 = jnp.pad(tp["conv2_b"], (0, 108)).reshape(1, 128)

    # fc1: PyTorch view(-1,320) flatten order is c*16 + oh*4 + ow; expand into
    # one [128,128] block per pooled position p = oh*4 + ow.
    wf1_t = tp["fc1_w"].T                                  # [320, 50]
    wf1_r = wf1_t.reshape(20, 16, 50).transpose(1, 0, 2)   # [16, 20, 50]
    wf1 = jnp.pad(wf1_r, ((0, 0), (0, 108), (0, 78)))      # [16,128,128]
    bf1 = jnp.pad(tp["fc1_b"], (0, 78)).reshape(1, 128)

    wf2 = jnp.pad(tp["fc2_w"].T, ((0, 78), (0, 118)))      # [128,128]
    # Class mask folded into the bias: padded logit lanes become -1e30.
    bf2 = jnp.pad(tp["fc2_b"], (0, 118), constant_values=-1e30).reshape(1, 128)

    return dict(
        w1blk=w1blk.astype(jnp.bfloat16), b1p=b1p,
        w2=w2.astype(jnp.bfloat16), b2=b2,
        wf1=wf1.astype(jnp.bfloat16), bf1=bf1,
        wf2=wf2.astype(jnp.bfloat16), bf2=bf2,
    )


# ----------------------------------------------------------------------------
# Pure-JAX reference (f32, mirrors the PyTorch module in eval mode)
# ----------------------------------------------------------------------------
def _maxpool2(y):
    return jax.lax.reduce_window(y, -jnp.inf, jax.lax.max,
                                 (1, 1, 2, 2), (1, 1, 2, 2), "VALID")


def net_forward_reference(x_nchw, tp):
    dn = ("NCHW", "OIHW", "NCHW")
    y = jax.lax.conv_general_dilated(x_nchw, tp["conv1_w"], (1, 1), "VALID",
                                     dimension_numbers=dn)
    y = y + tp["conv1_b"][None, :, None, None]
    y = jax.nn.relu(_maxpool2(y))
    y = jax.lax.conv_general_dilated(y, tp["conv2_w"], (1, 1), "VALID",
                                     dimension_numbers=dn)
    y = y + tp["conv2_b"][None, :, None, None]
    y = jax.nn.relu(_maxpool2(y))
    y = y.reshape(y.shape[0], -1)                      # NCHW flatten -> [B,320]
    y = jax.nn.relu(y @ tp["fc1_w"].T + tp["fc1_b"])
    y = y @ tp["fc2_w"].T + tp["fc2_b"]
    return jax.nn.log_softmax(y, axis=-1)


if __name__ == "__main__":
    key = jax.random.PRNGKey(0)
    k_x, k_p = jax.random.split(key)
    # MNIST-shaped input (fc1 in_features=320 forces 1x28x28); batch 16 gives
    # a 2-step grid so the pipeline / megacore path is exercised.
    x = jax.random.normal(k_x, (16, 1, 28, 28), jnp.float32)
    tp = init_torch_params(k_p)
    params = pack_params(tp)

    out = jax.jit(net_forward)(x, params)
    out = jax.block_until_ready(out)

    assert out.shape == (16, 10), out.shape
    row_sums = jnp.exp(out).sum(axis=-1)
    assert bool(jnp.all(jnp.abs(row_sums - 1.0) < 1e-3)), row_sums
    assert bool(jnp.all(jnp.isfinite(out))), "non-finite log-probs"

    # Loose tolerance: kernels run bf16 matmuls with f32 accumulation.
    ref = net_forward_reference(x, tp)
    max_err = float(jnp.max(jnp.abs(out - ref)))
    assert max_err < 0.15, f"mismatch vs f32 reference: {max_err}"

    print("KERNEL_OK")
</pallas_src>

<mosaic_0001>
module attributes {stable_mosaic.version = 11 : i64} {
  func.func @_conv1_kernel(%arg0: i32, %arg1: memref<4x96x384xbf16, #tpu.memory_space<vmem>>, %arg2: memref<384x128xbf16, #tpu.memory_space<vmem>>, %arg3: memref<1x128xf32, #tpu.memory_space<vmem>>, %arg4: memref<96x128xbf16, #tpu.memory_space<vmem>>) attributes {dimension_semantics = [#tpu.dimension_semantics<parallel>], iteration_bounds = array<i64: 2>, scalar_prefetch = 0 : i64, scratch_operands = 0 : i64, tpu.core_type = #tpu.core_type<tc>, window_params = [{transform_indices = @transform_0, window_bounds = array<i64: 4, 96, 384>}, {pipeline_mode = #tpu.pipeline_mode<synchronous>, transform_indices = @transform_1, window_bounds = array<i64: 384, 128>}, {pipeline_mode = #tpu.pipeline_mode<synchronous>, transform_indices = @transform_2, window_bounds = array<i64: 1, 128>}, {transform_indices = @transform_3, window_bounds = array<i64: 96, 128>}]} {
    %c0 = arith.constant 0 : index
    %c0_0 = arith.constant 0 : index
    %0 = vector.load %arg2[%c0, %c0_0] : memref<384x128xbf16, #tpu.memory_space<vmem>>, vector<384x128xbf16>
    %c0_1 = arith.constant 0 : index
    %c0_2 = arith.constant 0 : index
    %c0_3 = arith.constant 0 : index
    %1 = vector.load %arg1[%c0_1, %c0_2, %c0_3] : memref<4x96x384xbf16, #tpu.memory_space<vmem>>, vector<1x96x384xbf16>
    %2 = vector.shape_cast %1 : vector<1x96x384xbf16> to vector<96x384xbf16>
    %cst = arith.constant dense<0.000000e+00> : vector<96x128xf32>
    %3 = tpu.matmul %2, %0, %cst {dimension_numbers = #tpu.dot_dimension_numbers<[1], [0], [0], [1], [0, 0, 1, 1], [], []>} : vector<96x384xbf16>, vector<384x128xbf16>, vector<96x128xf32> -> vector<96x128xf32>
    %c1 = arith.constant 1 : index
    %c0_4 = arith.constant 0 : index
    %c0_5 = arith.constant 0 : index
    %4 = vector.load %arg1[%c1, %c0_4, %c0_5] : memref<4x96x384xbf16, #tpu.memory_space<vmem>>, vector<1x96x384xbf16>
    %5 = vector.shape_cast %4 : vector<1x96x384xbf16> to vector<96x384xbf16>
    %cst_6 = arith.constant dense<0.000000e+00> : vector<96x128xf32>
    %6 = tpu.matmul %5, %0, %cst_6 {dimension_numbers = #tpu.dot_dimension_numbers<[1], [0], [0], [1], [0, 0, 1, 1], [], []>} : vector<96x384xbf16>, vector<384x128xbf16>, vector<96x128xf32> -> vector<96x128xf32>
    %7 = arith.maximumf %3, %6 : vector<96x128xf32>
    %c2 = arith.constant 2 : index
    %c0_7 = arith.constant 0 : index
    %c0_8 = arith.constant 0 : index
    %8 = vector.load %arg1[%c2, %c0_7, %c0_8] : memref<4x96x384xbf16, #tpu.memory_space<vmem>>, vector<1x96x384xbf16>
    %9 = vector.shape_cast %8 : vector<1x96x384xbf16> to vector<96x384xbf16>
    %cst_9 = arith.constant dense<0.000000e+00> : vector<96x128xf32>
    %10 = tpu.matmul %9, %0, %cst_9 {dimension_numbers = #tpu.dot_dimension_numbers<[1], [0], [0], [1], [0, 0, 1, 1], [], []>} : vector<96x384xbf16>, vector<384x128xbf16>, vector<96x128xf32> -> vector<96x128xf32>
    %11 = arith.maximumf %7, %10 : vector<96x128xf32>
    %c3 = arith.constant 3 : index
    %c0_10 = arith.constant 0 : index
    %c0_11 = arith.constant 0 : index
    %12 = vector.load %arg1[%c3, %c0_10, %c0_11] : memref<4x96x384xbf16, #tpu.memory_space<vmem>>, vector<1x96x384xbf16>
    %13 = vector.shape_cast %12 : vector<1x96x384xbf16> to vector<96x384xbf16>
    %cst_12 = arith.constant dense<0.000000e+00> : vector<96x128xf32>
    %14 = tpu.matmul %13, %0, %cst_12 {dimension_numbers = #tpu.dot_dimension_numbers<[1], [0], [0], [1], [0, 0, 1, 1], [], []>} : vector<96x384xbf16>, vector<384x128xbf16>, vector<96x128xf32> -> vector<96x128xf32>
    %15 = arith.maximumf %11, %14 : vector<96x128xf32>
    %c0_13 = arith.constant 0 : index
    %c0_14 = arith.constant 0 : index
    %16 = vector.load %arg3[%c0_13, %c0_14] : memref<1x128xf32, #tpu.memory_space<vmem>>, vector<1x128xf32>
    %17 = vector.broadcast %16 : vector<1x128xf32> to vector<96x128xf32>
    %18 = arith.addf %15, %17 : vector<96x128xf32>
    %cst_15 = arith.constant 0.000000e+00 : f32
    %19 = vector.broadcast %cst_15 : f32 to vector<96x128xf32>
    %20 = arith.maximumf %18, %19 : vector<96x128xf32>
    %21 = arith.truncf %20 : vector<96x128xf32> to vector<96x128xbf16>
    %c0_16 = arith.constant 0 : index
    %c0_17 = arith.constant 0 : index
    %22 = vector.load %arg4[%c0_16, %c0_17] : memref<96x128xbf16, #tpu.memory_space<vmem>>, vector<96x128xbf16>
    tpu.vector_store %arg4[%c0_16, %c0_17], %21 {strides = array<i32>} : memref<96x128xbf16, #tpu.memory_space<vmem>>, vector<96x128xbf16>,
    return
  }
  func.func @transform_0(%arg0: i32) -> (i32, i32, i32) {
    %c0_i32 = arith.constant 0 : i32
    %c0_i32_0 = arith.constant 0 : i32
    %c0_i32_1 = arith.constant 0 : i32
    return %c0_i32, %arg0, %c0_i32_0 : i32, i32, i32
  }
  func.func @transform_1(%arg0: i32) -> (i32, i32) {
    %c0_i32 = arith.constant 0 : i32
    %c0_i32_0 = arith.constant 0 : i32
    %c0_i32_1 = arith.constant 0 : i32
    return %c0_i32, %c0_i32_0 : i32, i32
  }
  func.func @transform_2(%arg0: i32) -> (i32, i32) {
    %c0_i32 = arith.constant 0 : i32
    %c0_i32_0 = arith.constant 0 : i32
    %c0_i32_1 = arith.constant 0 : i32
    return %c0_i32, %c0_i32_0 : i32, i32
  }
  func.func @transform_3(%arg0: i32) -> (i32, i32) {
    %c0_i32 = arith.constant 0 : i32
    %c0_i32_0 = arith.constant 0 : i32
    return %arg0, %c0_i32 : i32, i32
  }
}

module attributes {stable_mosaic.version = 11 : i64} {
  func.func @_conv2_mlp_kernel(%arg0: i32, %arg1: memref<4x16x8x256xbf16, #tpu.memory_space<vmem>>, %arg2: memref<256x128xbf16, #tpu.memory_space<vmem>>, %arg3: memref<1x128xf32, #tpu.memory_space<vmem>>, %arg4: memref<16x128x128xbf16, #tpu.memory_space<vmem>>, %arg5: memref<1x128xf32, #tpu.memory_space<vmem>>, %arg6: memref<128x128xbf16, #tpu.memory_space<vmem>>, %arg7: memref<1x128xf32, #tpu.memory_space<vmem>>, %arg8: memref<8x128xf32, #tpu.memory_space<vmem>>) attributes {dimension_semantics = [#tpu.dimension_semantics<parallel>], iteration_bounds = array<i64: 2>, scalar_prefetch = 0 : i64, scratch_operands = 0 : i64, tpu.core_type = #tpu.core_type<tc>, window_params = [{transform_indices = @transform_0, window_bounds = array<i64: 4, 16, 8, 256>}, {pipeline_mode = #tpu.pipeline_mode<synchronous>, transform_indices = @transform_1, window_bounds = array<i64: 256, 128>}, {pipeline_mode = #tpu.pipeline_mode<synchronous>, transform_indices = @transform_2, window_bounds = array<i64: 1, 128>}, {pipeline_mode = #tpu.pipeline_mode<synchronous>, transform_indices = @transform_3, window_bounds = array<i64: 16, 128, 128>}, {pipeline_mode = #tpu.pipeline_mode<synchronous>, transform_indices = @transform_4, window_bounds = array<i64: 1, 128>}, {pipeline_mode = #tpu.pipeline_mode<synchronous>, transform_indices = @transform_5, window_bounds = array<i64: 128, 128>}, {pipeline_mode = #tpu.pipeline_mode<synchronous>, transform_indices = @transform_6, window_bounds = array<i64: 1, 128>}, {transform_indices = @transform_7, window_bounds = array<i64: 8, 128>}]} {
    %c0 = arith.constant 0 : index
    %c0_0 = arith.constant 0 : index
    %0 = vector.load %arg2[%c0, %c0_0] : memref<256x128xbf16, #tpu.memory_space<vmem>>, vector<256x128xbf16>
    %c0_1 = arith.constant 0 : index
    %c0_2 = arith.constant 0 : index
    %c0_3 = arith.constant 0 : index
    %c0_4 = arith.constant 0 : index
    %1 = vector.load %arg1[%c0_1, %c0_2, %c0_3, %c0_4] : memref<4x16x8x256xbf16, #tpu.memory_space<vmem>>, vector<1x16x8x256xbf16>
    %2 = vector.shape_cast %1 : vector<1x16x8x256xbf16> to vector<16x8x256xbf16>
    %3 = vector.shape_cast %2 : vector<16x8x256xbf16> to vector<128x256xbf16>
    %cst = arith.constant dense<0.000000e+00> : vector<128x128xf32>
    %4 = tpu.matmul %3, %0, %cst {dimension_numbers = #tpu.dot_dimension_numbers<[1], [0], [0], [1], [0, 0, 1, 1], [], []>} : vector<128x256xbf16>, vector<256x128xbf16>, vector<128x128xf32> -> vector<128x128xf32>
    %c1 = arith.constant 1 : index
    %c0_5 = arith.constant 0 : index
    %c0_6 = arith.constant 0 : index
    %c0_7 = arith.constant 0 : index
    %5 = vector.load %arg1[%c1, %c0_5, %c0_6, %c0_7] : memref<4x16x8x256xbf16, #tpu.memory_space<vmem>>, vector<1x16x8x256xbf16>
    %6 = vector.shape_cast %5 : vector<1x16x8x256xbf16> to vector<16x8x256xbf16>
    %7 = vector.shape_cast %6 : vector<16x8x256xbf16> to vector<128x256xbf16>
    %cst_8 = arith.constant dense<0.000000e+00> : vector<128x128xf32>
    %8 = tpu.matmul %7, %0, %cst_8 {dimension_numbers = #tpu.dot_dimension_numbers<[1], [0], [0], [1], [0, 0, 1, 1], [], []>} : vector<128x256xbf16>, vector<256x128xbf16>, vector<128x128xf32> -> vector<128x128xf32>
    %9 = arith.maximumf %4, %8 : vector<128x128xf32>
    %c2 = arith.constant 2 : index
    %c0_9 = arith.constant 0 : index
    %c0_10 = arith.constant 0 : index
    %c0_11 = arith.constant 0 : index
    %10 = vector.load %arg1[%c2, %c0_9, %c0_10, %c0_11] : memref<4x16x8x256xbf16, #tpu.memory_space<vmem>>, vector<1x16x8x256xbf16>
    %11 = vector.shape_cast %10 : vector<1x16x8x256xbf16> to vector<16x8x256xbf16>
    %12 = vector.shape_cast %11 : vector<16x8x256xbf16> to vector<128x256xbf16>
    %cst_12 = arith.constant dense<0.000000e+00> : vector<128x128xf32>
    %13 = tpu.matmul %12, %0, %cst_12 {dimension_numbers = #tpu.dot_dimension_numbers<[1], [0], [0], [1], [0, 0, 1, 1], [], []>} : vector<128x256xbf16>, vector<256x128xbf16>, vector<128x128xf32> -> vector<128x128xf32>
    %14 = arith.maximumf %9, %13 : vector<128x128xf32>
    %c3 = arith.constant 3 : index
    %c0_13 = arith.constant 0 : index
    %c0_14 = arith.constant 0 : index
    %c0_15 = arith.constant 0 : index
    %15 = vector.load %arg1[%c3, %c0_13, %c0_14, %c0_15] : memref<4x16x8x256xbf16, #tpu.memory_space<vmem>>, vector<1x16x8x256xbf16>
    %16 = vector.shape_cast %15 : vector<1x16x8x256xbf16> to vector<16x8x256xbf16>
    %17 = vector.shape_cast %16 : vector<16x8x256xbf16> to vector<128x256xbf16>
    %cst_16 = arith.constant dense<0.000000e+00> : vector<128x128xf32>
    %18 = tpu.matmul %17, %0, %cst_16 {dimension_numbers = #tpu.dot_dimension_numbers<[1], [0], [0], [1], [0, 0, 1, 1], [], []>} : vector<128x256xbf16>, vector<256x128xbf16>, vector<128x128xf32> -> vector<128x128xf32>
    %19 = arith.maximumf %14, %18 : vector<128x128xf32>
    %c0_17 = arith.constant 0 : index
    %c0_18 = arith.constant 0 : index
    %20 = vector.load %arg3[%c0_17, %c0_18] : memref<1x128xf32, #tpu.memory_space<vmem>>, vector<1x128xf32>
    %21 = vector.broadcast %20 : vector<1x128xf32> to vector<128x128xf32>
    %22 = arith.addf %19, %21 : vector<128x128xf32>
    %cst_19 = arith.constant 0.000000e+00 : f32
    %23 = vector.broadcast %cst_19 : f32 to vector<128x128xf32>
    %24 = arith.maximumf %22, %23 : vector<128x128xf32>
    %25 = arith.truncf %24 : vector<128x128xf32> to vector<128x128xbf16>
    %cst_20 = arith.constant 0.000000e+00 : f32
    %26 = vector.broadcast %cst_20 : f32 to vector<8x128xf32>
    %27 = vector.extract_strided_slice %25 {offsets = [0, 0], sizes = [8, 128], strides = [1, 1]} : vector<128x128xbf16> to vector<8x128xbf16>
    %c0_21 = arith.constant 0 : index
    %c0_22 = arith.constant 0 : index
    %c0_23 = arith.constant 0 : index
    %28 = vector.load %arg4[%c0_21, %c0_22, %c0_23] : memref<16x128x128xbf16, #tpu.memory_space<vmem>>, vector<1x128x128xbf16>
    %29 = vector.shape_cast %28 : vector<1x128x128xbf16> to vector<128x128xbf16>
    %cst_24 = arith.constant dense<0.000000e+00> : vector<8x128xf32>
    %30 = tpu.matmul %27, %29, %cst_24 {dimension_numbers = #tpu.dot_dimension_numbers<[1], [0], [0], [1], [0, 0, 1, 1], [], []>} : vector<8x128xbf16>, vector<128x128xbf16>, vector<8x128xf32> -> vector<8x128xf32>
    %31 = arith.addf %26, %30 : vector<8x128xf32>
    %32 = vector.extract_strided_slice %25 {offsets = [8, 0], sizes = [8, 128], strides = [1, 1]} : vector<128x128xbf16> to vector<8x128xbf16>
    %c1_25 = arith.constant 1 : index
    %c0_26 = arith.constant 0 : index
    %c0_27 = arith.constant 0 : index
    %33 = vector.load %arg4[%c1_25, %c0_26, %c0_27] : memref<16x128x128xbf16, #tpu.memory_space<vmem>>, vector<1x128x128xbf16>
    %34 = vector.shape_cast %33 : vector<1x128x128xbf16> to vector<128x128xbf16>
    %cst_28 = arith.constant dense<0.000000e+00> : vector<8x128xf32>
    %35 = tpu.matmul %32, %34, %cst_28 {dimension_numbers = #tpu.dot_dimension_numbers<[1], [0], [0], [1], [0, 0, 1, 1], [], []>} : vector<8x128xbf16>, vector<128x128xbf16>, vector<8x128xf32> -> vector<8x128xf32>
    %36 = arith.addf %31, %35 : vector<8x128xf32>
    %37 = vector.extract_strided_slice %25 {offsets = [16, 0], sizes = [8, 128], strides = [1, 1]} : vector<128x128xbf16> to vector<8x128xbf16>
    %c2_29 = arith.constant 2 : index
    %c0_30 = arith.constant 0 : index
    %c0_31 = arith.constant 0 : index
    %38 = vector.load %arg4[%c2_29, %c0_30, %c0_31] : memref<16x128x128xbf16, #tpu.memory_space<vmem>>, vector<1x128x128xbf16>
    %39 = vector.shape_cast %38 : vector<1x128x128xbf16> to vector<128x128xbf16>
    %cst_32 = arith.constant dense<0.000000e+00> : vector<8x128xf32>
    %40 = tpu.matmul %37, %39, %cst_32 {dimension_numbers = #tpu.dot_dimension_numbers<[1], [0], [0], [1], [0, 0, 1, 1], [], []>} : vector<8x128xbf16>, vector<128x128xbf16>, vector<8x128xf32> -> vector<8x128xf32>
    %41 = arith.addf %36, %40 : vector<8x128xf32>
    %42 = vector.extract_strided_slice %25 {offsets = [24, 0], sizes = [8, 128], strides = [1, 1]} : vector<128x128xbf16> to vector<8x128xbf16>
    %c3_33 = arith.constant 3 : index
    %c0_34 = arith.constant 0 : index
    %c0_35 = arith.constant 0 : index
    %43 = vector.load %arg4[%c3_33, %c0_34, %c0_35] : memref<16x128x128xbf16, #tpu.memory_space<vmem>>, vector<1x128x128xbf16>
    %44 = vector.shape_cast %43 : vector<1x128x128xbf16> to vector<128x128xbf16>
    %cst_36 = arith.constant dense<0.000000e+00> : vector<8x128xf32>
    %45 = tpu.matmul %42, %44, %cst_36 {dimension_numbers = #tpu.dot_dimension_numbers<[1], [0], [0], [1], [0, 0, 1, 1], [], []>} : vector<8x128xbf16>, vector<128x128xbf16>, vector<8x128xf32> -> vector<8x128xf32>
    %46 = arith.addf %41, %45 : vector<8x128xf32>
    %47 = vector.extract_strided_slice %25 {offsets = [32, 0], sizes = [8, 128], strides = [1, 1]} : vector<128x128xbf16> to vector<8x128xbf16>
    %c4 = arith.constant 4 : index
    %c0_37 = arith.constant 0 : index
    %c0_38 = arith.constant 0 : index
    %48 = vector.load %arg4[%c4, %c0_37, %c0_38] : memref<16x128x128xbf16, #tpu.memory_space<vmem>>, vector<1x128x128xbf16>
    %49 = vector.shape_cast %48 : vector<1x128x128xbf16> to vector<128x128xbf16>
    %cst_39 = arith.constant dense<0.000000e+00> : vector<8x128xf32>
    %50 = tpu.matmul %47, %49, %cst_39 {dimension_numbers = #tpu.dot_dimension_numbers<[1], [0], [0], [1], [0, 0, 1, 1], [], []>} : vector<8x128xbf16>, vector<128x128xbf16>, vector<8x128xf32> -> vector<8x128xf32>
    %51 = arith.addf %46, %50 : vector<8x128xf32>
    %52 = vector.extract_strided_slice %25 {offsets = [40, 0], sizes = [8, 128], strides = [1, 1]} : vector<128x128xbf16> to vector<8x128xbf16>
    %c5 = arith.constant 5 : index
    %c0_40 = arith.constant 0 : index
    %c0_41 = arith.constant 0 : index
    %53 = vector.load %arg4[%c5, %c0_40, %c0_41] : memref<16x128x128xbf16, #tpu.memory_space<vmem>>, vector<1x128x128xbf16>
    %54 = vector.shape_cast %53 : vector<1x128x128xbf16> to vector<128x128xbf16>
    %cst_42 = arith.constant dense<0.000000e+00> : vector<8x128xf32>
    %55 = tpu.matmul %52, %54, %cst_42 {dimension_numbers = #tpu.dot_dimension_numbers<[1], [0], [0], [1], [0, 0, 1, 1], [], []>} : vector<8x128xbf16>, vector<128x128xbf16>, vector<8x128xf32> -> vector<8x128xf32>
    %56 = arith.addf %51, %55 : vector<8x128xf32>
    %57 = vector.extract_strided_slice %25 {offsets = [48, 0], sizes = [8, 128], strides = [1, 1]} : vector<128x128xbf16> to vector<8x128xbf16>
    %c6 = arith.constant 6 : index
    %c0_43 = arith.constant 0 : index
    %c0_44 = arith.constant 0 : index
    %58 = vector.load %arg4[%c6, %c0_43, %c0_44] : memref<16x128x128xbf16, #tpu.memory_space<vmem>>, vector<1x128x128xbf16>
    %59 = vector.shape_cast %58 : vector<1x128x128xbf16> to vector<128x128xbf16>
    %cst_45 = arith.constant dense<0.000000e+00> : vector<8x128xf32>
    %60 = tpu.matmul %57, %59, %cst_45 {dimension_numbers = #tpu.dot_dimension_numbers<[1], [0], [0], [1], [0, 0, 1, 1], [], []>} : vector<8x128xbf16>, vector<128x128xbf16>, vector<8x128xf32> -> vector<8x128xf32>
    %61 = arith.addf %56, %60 : vector<8x128xf32>
    %62 = vector.extract_strided_slice %25 {offsets = [56, 0], sizes = [8, 128], strides = [1, 1]} : vector<128x128xbf16> to vector<8x128xbf16>
    %c7 = arith.constant 7 : index
    %c0_46 = arith.constant 0 : index
    %c0_47 = arith.constant 0 : index
    %63 = vector.load %arg4[%c7, %c0_46, %c0_47] : memref<16x128x128xbf16, #tpu.memory_space<vmem>>, vector<1x128x128xbf16>
    %64 = vector.shape_cast %63 : vector<1x128x128xbf16> to vector<128x128xbf16>
    %cst_48 = arith.constant dense<0.000000e+00> : vector<8x128xf32>
    %65 = tpu.matmul %62, %64, %cst_48 {dimension_numbers = #tpu.dot_dimension_numbers<[1], [0], [0], [1], [0, 0, 1, 1], [], []>} : vector<8x128xbf16>, vector<128x128xbf16>, vector<8x128xf32> -> vector<8x128xf32>
    %66 = arith.addf %61, %65 : vector<8x128xf32>
    %67 = vector.extract_strided_slice %25 {offsets = [64, 0], sizes = [8, 128], strides = [1, 1]} : vector<128x128xbf16> to vector<8x128xbf16>
    %c8 = arith.constant 8 : index
    %c0_49 = arith.constant 0 : index
    %c0_50 = arith.constant 0 : index
    %68 = vector.load %arg4[%c8, %c0_49, %c0_50] : memref<16x128x128xbf16, #tpu.memory_space<vmem>>, vector<1x128x128xbf16>
    %69 = vector.shape_cast %68 : vector<1x128x128xbf16> to vector<128x128xbf16>
    %cst_51 = arith.constant dense<0.000000e+00> : vector<8x128xf32>
    %70 = tpu.matmul %67, %69, %cst_51 {dimension_numbers = #tpu.dot_dimension_numbers<[1], [0], [0], [1], [0, 0, 1, 1], [], []>} : vector<8x128xbf16>, vector<128x128xbf16>, vector<8x128xf32> -> vector<8x128xf32>
    %71 = arith.addf %66, %70 : vector<8x128xf32>
    %72 = vector.extract_strided_slice %25 {offsets = [72, 0], sizes = [8, 128], strides = [1, 1]} : vector<128x128xbf16> to vector<8x128xbf16>
    %c9 = arith.constant 9 : index
    %c0_52 = arith.constant 0 : index
    %c0_53 = arith.constant 0 : index
    %73 = vector.load %arg4[%c9, %c0_52, %c0_53] : memref<16x128x128xbf16, #tpu.memory_space<vmem>>, vector<1x128x128xbf16>
    %74 = vector.shape_cast %73 : vector<1x128x128xbf16> to vector<128x128xbf16>
    %cst_54 = arith.constant dense<0.000000e+00> : vector<8x128xf32>
    %75 = tpu.matmul %72, %74, %cst_54 {dimension_numbers = #tpu.dot_dimension_numbers<[1], [0], [0], [1], [0, 0, 1, 1], [], []>} : vector<8x128xbf16>, vector<128x128xbf16>, vector<8x128xf32> -> vector<8x128xf32>
    %76 = arith.addf %71, %75 : vector<8x128xf32>
    %77 = vector.extract_strided_slice %25 {offsets = [80, 0], sizes = [8, 128], strides = [1, 1]} : vector<128x128xbf16> to vector<8x128xbf16>
    %c10 = arith.constant 10 : index
    %c0_55 = arith.constant 0 : index
    %c0_56 = arith.constant 0 : index
    %78 = vector.load %arg4[%c10, %c0_55, %c0_56] : memref<16x128x128xbf16, #tpu.memory_space<vmem>>, vector<1x128x128xbf16>
    %79 = vector.shape_cast %78 : vector<1x128x128xbf16> to vector<128x128xbf16>
    %cst_57 = arith.constant dense<0.000000e+00> : vector<8x128xf32>
    %80 = tpu.matmul %77, %79, %cst_57 {dimension_numbers = #tpu.dot_dimension_numbers<[1], [0], [0], [1], [0, 0, 1, 1], [], []>} : vector<8x128xbf16>, vector<128x128xbf16>, vector<8x128xf32> -> vector<8x128xf32>
    %81 = arith.addf %76, %80 : vector<8x128xf32>
    %82 = vector.extract_strided_slice %25 {offsets = [88, 0], sizes = [8, 128], strides = [1, 1]} : vector<128x128xbf16> to vector<8x128xbf16>
    %c11 = arith.constant 11 : index
    %c0_58 = arith.constant 0 : index
    %c0_59 = arith.constant 0 : index
    %83 = vector.load %arg4[%c11, %c0_58, %c0_59] : memref<16x128x128xbf16, #tpu.memory_space<vmem>>, vector<1x128x128xbf16>
    %84 = vector.shape_cast %83 : vector<1x128x128xbf16> to vector<128x128xbf16>
    %cst_60 = arith.constant dense<0.000000e+00> : vector<8x128xf32>
    %85 = tpu.matmul %82, %84, %cst_60 {dimension_numbers = #tpu.dot_dimension_numbers<[1], [0], [0], [1], [0, 0, 1, 1], [], []>} : vector<8x128xbf16>, vector<128x128xbf16>, vector<8x128xf32> -> vector<8x128xf32>
    %86 = arith.addf %81, %85 : vector<8x128xf32>
    %87 = vector.extract_strided_slice %25 {offsets = [96, 0], sizes = [8, 128], strides = [1, 1]} : vector<128x128xbf16> to vector<8x128xbf16>
    %c12 = arith.constant 12 : index
    %c0_61 = arith.constant 0 : index
    %c0_62 = arith.constant 0 : index
    %88 = vector.load %arg4[%c12, %c0_61, %c0_62] : memref<16x128x128xbf16, #tpu.memory_space<vmem>>, vector<1x128x128xbf16>
    %89 = vector.shape_cast %88 : vector<1x128x128xbf16> to vector<128x128xbf16>
    %cst_63 = arith.constant dense<0.000000e+00> : vector<8x128xf32>
    %90 = tpu.matmul %87, %89, %cst_63 {dimension_numbers = #tpu.dot_dimension_numbers<[1], [0], [0], [1], [0, 0, 1, 1], [], []>} : vector<8x128xbf16>, vector<128x128xbf16>, vector<8x128xf32> -> vector<8x128xf32>
    %91 = arith.addf %86, %90 : vector<8x128xf32>
    %92 = vector.extract_strided_slice %25 {offsets = [104, 0], sizes = [8, 128], strides = [1, 1]} : vector<128x128xbf16> to vector<8x128xbf16>
    %c13 = arith.constant 13 : index
    %c0_64 = arith.constant 0 : index
    %c0_65 = arith.constant 0 : index
    %93 = vector.load %arg4[%c13, %c0_64, %c0_65] : memref<16x128x128xbf16, #tpu.memory_space<vmem>>, vector<1x128x128xbf16>
    %94 = vector.shape_cast %93 : vector<1x128x128xbf16> to vector<128x128xbf16>
    %cst_66 = arith.constant dense<0.000000e+00> : vector<8x128xf32>
    %95 = tpu.matmul %92, %94, %cst_66 {dimension_numbers = #tpu.dot_dimension_numbers<[1], [0], [0], [1], [0, 0, 1, 1], [], []>} : vector<8x128xbf16>, vector<128x128xbf16>, vector<8x128xf32> -> vector<8x128xf32>
    %96 = arith.addf %91, %95 : vector<8x128xf32>
    %97 = vector.extract_strided_slice %25 {offsets = [112, 0], sizes = [8, 128], strides = [1, 1]} : vector<128x128xbf16> to vector<8x128xbf16>
    %c14 = arith.constant 14 : index
    %c0_67 = arith.constant 0 : index
    %c0_68 = arith.constant 0 : index
    %98 = vector.load %arg4[%c14, %c0_67, %c0_68] : memref<16x128x128xbf16, #tpu.memory_space<vmem>>, vector<1x128x128xbf16>
    %99 = vector.shape_cast %98 : vector<1x128x128xbf16> to vector<128x128xbf16>
    %cst_69 = arith.constant dense<0.000000e+00> : vector<8x128xf32>
    %100 = tpu.matmul %97, %99, %cst_69 {dimension_numbers = #tpu.dot_dimension_numbers<[1], [0], [0], [1], [0, 0, 1, 1], [], []>} : vector<8x128xbf16>, vector<128x128xbf16>, vector<8x128xf32> -> vector<8x128xf32>
    %101 = arith.addf %96, %100 : vector<8x128xf32>
    %102 = vector.extract_strided_slice %25 {offsets = [120, 0], sizes = [8, 128], strides = [1, 1]} : vector<128x128xbf16> to vector<8x128xbf16>
    %c15 = arith.constant 15 : index
    %c0_70 = arith.constant 0 : index
    %c0_71 = arith.constant 0 : index
    %103 = vector.load %arg4[%c15, %c0_70, %c0_71] : memref<16x128x128xbf16, #tpu.memory_space<vmem>>, vector<1x128x128xbf16>
    %104 = vector.shape_cast %103 : vector<1x128x128xbf16> to vector<128x128xbf16>
    %cst_72 = arith.constant dense<0.000000e+00> : vector<8x128xf32>
    %105 = tpu.matmul %102, %104, %cst_72 {dimension_numbers = #tpu.dot_dimension_numbers<[1], [0], [0], [1], [0, 0, 1, 1], [], []>} : vector<8x128xbf16>, vector<128x128xbf16>, vector<8x128xf32> -> vector<8x128xf32>
    %106 = arith.addf %101, %105 : vector<8x128xf32>
    %c0_73 = arith.constant 0 : index
    %c0_74 = arith.constant 0 : index
    %107 = vector.load %arg5[%c0_73, %c0_74] : memref<1x128xf32, #tpu.memory_space<vmem>>, vector<1x128xf32>
    %108 = vector.broadcast %107 : vector<1x128xf32> to vector<8x128xf32>
    %109 = arith.addf %106, %108 : vector<8x128xf32>
    %cst_75 = arith.constant 0.000000e+00 : f32
    %110 = vector.broadcast %cst_75 : f32 to vector<8x128xf32>
    %111 = arith.maximumf %109, %110 : vector<8x128xf32>
    %112 = arith.truncf %111 : vector<8x128xf32> to vector<8x128xbf16>
    %c0_76 = arith.constant 0 : index
    %c0_77 = arith.constant 0 : index
    %113 = vector.load %arg6[%c0_76, %c0_77] : memref<128x128xbf16, #tpu.memory_space<vmem>>, vector<128x128xbf16>
    %cst_78 = arith.constant dense<0.000000e+00> : vector<8x128xf32>
    %114 = tpu.matmul %112, %113, %cst_78 {dimension_numbers = #tpu.dot_dimension_numbers<[1], [0], [0], [1], [0, 0, 1, 1], [], []>} : vector<8x128xbf16>, vector<128x128xbf16>, vector<8x128xf32> -> vector<8x128xf32>
    %c0_79 = arith.constant 0 : index
    %c0_80 = arith.constant 0 : index
    %115 = vector.load %arg7[%c0_79, %c0_80] : memref<1x128xf32, #tpu.memory_space<vmem>>, vector<1x128xf32>
    %116 = vector.broadcast %115 : vector<1x128xf32> to vector<8x128xf32>
    %117 = arith.addf %114, %116 : vector<8x128xf32>
    %cst_81 = arith.constant dense<0xFF800000> : vector<8xf32>
    %118 = vector.multi_reduction <maximumf>, %117, %cst_81 [1] : vector<8x128xf32> to vector<8xf32>
    %119 = vector.shape_cast %118 : vector<8xf32> to vector<8x1xf32>
    %120 = vector.broadcast %119 : vector<8x1xf32> to vector<8x128xf32>
    %121 = arith.subf %117, %120 : vector<8x128xf32>
    %122 = math.exp %121 : vector<8x128xf32>
    %cst_82 = arith.constant dense<0.000000e+00> : vector<8xf32>
    %123 = vector.multi_reduction <add>, %122, %cst_82 [1] : vector<8x128xf32> to vector<8xf32>
    %124 = vector.shape_cast %123 : vector<8xf32> to vector<8x1xf32>
    %125 = math.log %124 : vector<8x1xf32>
    %126 = vector.broadcast %125 : vector<8x1xf32> to vector<8x128xf32>
    %127 = arith.subf %121, %126 : vector<8x128xf32>
    %c0_83 = arith.constant 0 : index
    %c0_84 = arith.constant 0 : index
    %128 = vector.load %arg8[%c0_83, %c0_84] : memref<8x128xf32, #tpu.memory_space<vmem>>, vector<8x128xf32>
    tpu.vector_store %arg8[%c0_83, %c0_84], %127 {strides = array<i32>} : memref<8x128xf32, #tpu.memory_space<vmem>>, vector<8x128xf32>,
    return
  }
  func.func @transform_0(%arg0: i32) -> (i32, i32, i32, i32) {
    %c0_i32 = arith.constant 0 : i32
    %c0_i32_0 = arith.constant 0 : i32
    %c0_i32_1 = arith.constant 0 : i32
    %c0_i32_2 = arith.constant 0 : i32
    return %c0_i32, %c0_i32_0, %arg0, %c0_i32_1 : i32, i32, i32, i32
  }
  func.func @transform_1(%arg0: i32) -> (i32, i32) {
    %c0_i32 = arith.constant 0 : i32
    %c0_i32_0 = arith.constant 0 : i32
    %c0_i32_1 = arith.constant 0 : i32
    return %c0_i32, %c0_i32_0 : i32, i32
  }
  func.func @transform_2(%arg0: i32) -> (i32, i32) {
    %c0_i32 = arith.constant 0 : i32
    %c0_i32_0 = arith.constant 0 : i32
    %c0_i32_1 = arith.constant 0 : i32
    return %c0_i32, %c0_i32_0 : i32, i32
  }
  func.func @transform_3(%arg0: i32) -> (i32, i32, i32) {
    %c0_i32 = arith.constant 0 : i32
    %c0_i32_0 = arith.constant 0 : i32
    %c0_i32_1 = arith.constant 0 : i32
    %c0_i32_2 = arith.constant 0 : i32
    return %c0_i32, %c0_i32_0, %c0_i32_1 : i32, i32, i32
  }
  func.func @transform_4(%arg0: i32) -> (i32, i32) {
    %c0_i32 = arith.constant 0 : i32
    %c0_i32_0 = arith.constant 0 : i32
    %c0_i32_1 = arith.constant 0 : i32
    return %c0_i32, %c0_i32_0 : i32, i32
  }
  func.func @transform_5(%arg0: i32) -> (i32, i32) {
    %c0_i32 = arith.constant 0 : i32
    %c0_i32_0 = arith.constant 0 : i32
    %c0_i32_1 = arith.constant 0 : i32
    return %c0_i32, %c0_i32_0 : i32, i32
  }
  func.func @transform_6(%arg0: i32) -> (i32, i32) {
    %c0_i32 = arith.constant 0 : i32
    %c0_i32_0 = arith.constant 0 : i32
    %c0_i32_1 = arith.constant 0 : i32
    return %c0_i32, %c0_i32_0 : i32, i32
  }
  func.func @transform_7(%arg0: i32) -> (i32, i32) {
    %c0_i32 = arith.constant 0 : i32
    %c0_i32_0 = arith.constant 0 : i32
    return %arg0, %c0_i32 : i32, i32
  }
}

</mosaic_0001>

<bundles_post_ra>
// kernel: net_forward.2
= control target key start
LH: loop header
LB: loop body
LE: loop exit
PB: predicated region body
PF: predicated region fallthrough
CT: control target
= control target key end

     0   :  { %s2456_s12 = smov 0   ;;  %s2458_s13 = smov 0   ;;  %s3271_s0 = inlined_call_operand.vmem [shape: bf16[4,192,384], index: 0, kind: input, shape index: {}]   ;;  %s3272_s1 = inlined_call_operand.vmem [shape: bf16[384,128], index: 1, kind: input, shape index: {}]   ;;  %s3273_s2 = inlined_call_operand.vmem [shape: f32[1,128], index: 2, kind: input, shape index: {}]   ;;  %s3274_s3 = inlined_call_operand.vmem [shape: bf16[192,128], index: 3, kind: output, shape index: {}]  }
   0x1   :  { %s2460_s14 = smov 0  }
   0x2 LB: > { %s1691_s15 = sadd.s32 4294967295, %s2434_s14   ;;  %s2473_s16 = sadd.s32 1, %s2434_s14   ;;  %s2434_s14 = sphi %s2460_s14, %s3277_s14   ;;  %s2430_s13 = sphi %s2458_s13, %s3276_s13   ;;  %s2426_s12 = sphi %s2456_s12, %s3275_s12  }
   0x3   : > { %s17_s17 = ssub.s32 %s2434_s14, %s2473_s16  ;;  %s20_s18 = sadd.s32 1, %s2430_s13 }
   0x4   : > { %p18_p0 = scmp.eq.s32.totalorder %s17_s17, 0  ;;  %p27_p1 = scmp.ne.s32.totalorder %s2430_s13, %s2426_s12 }
   0x5   : > { %p28_p2 = scmp.eq.s32.totalorder %s2434_s14, 0  ;;  %p1694_p4 = scmp.ge.s32.totalorder %s2434_s14, 2 }
   0x6   : > { %s2482_s19 = scalar_select %p18_p0, %s2430_s13, %s20_s18  }
   0x7   : > { %p29_p3 = por %p28_p2, %p27_p1  ;;  %127 = sbr.rel (%p1694_p4) target bundleno = 114 (0x72), region = 24 }
   0xc   : > { %130 = sbr.rel (!%p29_p3) target bundleno = 114 (0x72), region = 28  ;;  %s132_s20 = sand.u32 (%p29_p3), 1, %s2430_s13  }
   0xd   : > { %s2383_s21 = smul.u32 (%p29_p3), 576, %s132_s20 }
   0xe   : > { %s2386_s22 = smul.u32 (%p29_p3), 144, %s2434_s14 }
   0xf   : > { %s2495_s26 = scalar_lea.vmem (%p29_p3), [#allocation2], %s2383_s21 }
  0x10   : > { %s2490_s25 = scalar_lea.vmem (%p29_p3), %s3271_s0, %s2386_s22 }
  0x11   : > { %v153_v0 = vld [vmem:[%s2490_s25] sm:$0xff]  ;;  %v155_v1 = vld [vmem:[%s2490_s25 + $0xc] sm:$0xff]  ;;  %v157_v2 = vld [vmem:[%s2490_s25 + $0x18] sm:$0xff] }
  0x12   : > { %154 = vst [vmem:[%s2495_s26] sm:$0xff] %v153_v0  ;;  %v159_v3 = vld [vmem:[%s2490_s25 + $0x24] sm:$0xff]  ;;  %v161_v4 = vld [vmem:[%s2490_s25 + $0x30] sm:$0xff]  ;;  %v163_v5 = vld [vmem:[%s2490_s25 + $0x3c] sm:$0xff] }
  0x13   : > { %156 = vst [vmem:[%s2495_s26 + $0xc] sm:$0xff] %v155_v1  ;;  %v165_v6 = vld [vmem:[%s2490_s25 + $0x48] sm:$0xff]  ;;  %v167_v7 = vld [vmem:[%s2490_s25 + $0x54] sm:$0xff]  ;;  %v169_v8 = vld [vmem:[%s2490_s25 + $0x60] sm:$0xff] }
  0x14   : > { %158 = vst [vmem:[%s2495_s26 + $0x18] sm:$0xff] %v157_v2  ;;  %v171_v9 = vld [vmem:[%s2490_s25 + $0x6c] sm:$0xff]  ;;  %v173_v10 = vld [vmem:[%s2490_s25 + $0x78] sm:$0xff]  ;;  %v175_v11 = vld [vmem:[%s2490_s25 + $0x84] sm:$0xff] }
  0x15   : > { %160 = vst [vmem:[%s2495_s26 + $0x24] sm:$0xff] %v159_v3  ;;  %v177_v12 = vld [vmem:[%s2490_s25 + $0x120] sm:$0xff]  ;;  %v179_v13 = vld [vmem:[%s2490_s25 + $0x12c] sm:$0xff]  ;;  %v181_v14 = vld [vmem:[%s2490_s25 + $0x138] sm:$0xff] }
  0x16   : > { %162 = vst [vmem:[%s2495_s26 + $0x30] sm:$0xff] %v161_v4  ;;  %v183_v15 = vld [vmem:[%s2490_s25 + $0x144] sm:$0xff]  ;;  %v185_v16 = vld [vmem:[%s2490_s25 + $0x150] sm:$0xff]  ;;  %v187_v17 = vld [vmem:[%s2490_s25 + $0x15c] sm:$0xff] }
  0x17   : > { %164 = vst [vmem:[%s2495_s26 + $0x3c] sm:$0xff] %v163_v5  ;;  %v189_v18 = vld [vmem:[%s2490_s25 + $0x168] sm:$0xff]  ;;  %v191_v19 = vld [vmem:[%s2490_s25 + $0x174] sm:$0xff]  ;;  %v193_v20 = vld [vmem:[%s2490_s25 + $0x180] sm:$0xff] }
  0x18   : > { %166 = vst [vmem:[%s2495_s26 + $0x48] sm:$0xff] %v165_v6  ;;  %v195_v21 = vld [vmem:[%s2490_s25 + $0x18c] sm:$0xff]  ;;  %v197_v22 = vld [vmem:[%s2490_s25 + $0x198] sm:$0xff]  ;;  %v199_v23 = vld [vmem:[%s2490_s25 + $0x1a4] sm:$0xff] }
  0x19   : > { %168 = vst [vmem:[%s2495_s26 + $0x54] sm:$0xff] %v167_v7  ;;  %v201_v24 = vld [vmem:[%s2490_s25 + $0x240] sm:$0xff]  ;;  %v203_v25 = vld [vmem:[%s2490_s25 + $0x24c] sm:$0xff]  ;;  %v205_v26 = vld [vmem:[%s2490_s25 + $0x258] sm:$0xff] }
  0x1a   : > { %170 = vst [vmem:[%s2495_s26 + $0x60] sm:$0xff] %v169_v8  ;;  %v207_v27 = vld [vmem:[%s2490_s25 + $0x264] sm:$0xff]  ;;  %v209_v28 = vld [vmem:[%s2490_s25 + $0x270] sm:$0xff]  ;;  %v211_v29 = vld [vmem:[%s2490_s25 + $0x27c] sm:$0xff] }
  0x1b   : > { %172 = vst [vmem:[%s2495_s26 + $0x6c] sm:$0xff] %v171_v9  ;;  %v213_v30 = vld [vmem:[%s2490_s25 + $0x288] sm:$0xff]  ;;  %v215_v31 = vld [vmem:[%s2490_s25 + $0x294] sm:$0xff]  ;;  %v217_v32 = vld [vmem:[%s2490_s25 + $0x2a0] sm:$0xff] }
  0x1c   : > { %174 = vst [vmem:[%s2495_s26 + $0x78] sm:$0xff] %v173_v10  ;;  %v219_v33 = vld [vmem:[%s2490_s25 + $0x2ac] sm:$0xff]  ;;  %v221_v34 = vld [vmem:[%s2490_s25 + $0x2b8] sm:$0xff]  ;;  %v223_v35 = vld [vmem:[%s2490_s25 + $0x2c4] sm:$0xff] }
  0x1d   : > { %176 = vst [vmem:[%s2495_s26 + $0x84] sm:$0xff] %v175_v11  ;;  %v225_v36 = vld [vmem:[%s2490_s25 + $0x360] sm:$0xff]  ;;  %v227_v37 = vld [vmem:[%s2490_s25 + $0x36c] sm:$0xff]  ;;  %v229_v38 = vld [vmem:[%s2490_s25 + $0x378] sm:$0xff] }
  0x1e   : > { %178 = vst [vmem:[%s2495_s26 + $0x90] sm:$0xff] %v177_v12  ;;  %v231_v39 = vld [vmem:[%s2490_s25 + $0x384] sm:$0xff]  ;;  %v233_v40 = vld [vmem:[%s2490_s25 + $0x390] sm:$0xff]  ;;  %v235_v41 = vld [vmem:[%s2490_s25 + $0x39c] sm:$0xff] }
  0x1f   : > { %180 = vst [vmem:[%s2495_s26 + $0x9c] sm:$0xff] %v179_v13  ;;  %v237_v42 = vld [vmem:[%s2490_s25 + $0x3a8] sm:$0xff]  ;;  %v239_v43 = vld [vmem:[%s2490_s25 + $0x3b4] sm:$0xff]  ;;  %v241_v44 = vld [vmem:[%s2490_s25 + $0x3c0] sm:$0xff] }
  0x20   : > { %182 = vst [vmem:[%s2495_s26 + $0xa8] sm:$0xff] %v181_v14  ;;  %v243_v45 = vld [vmem:[%s2490_s25 + $0x3cc] sm:$0xff]  ;;  %v245_v46 = vld [vmem:[%s2490_s25 + $0x3d8] sm:$0xff]  ;;  %v247_v47 = vld [vmem:[%s2490_s25 + $0x3e4] sm:$0xff] }
  0x21   : > { %184 = vst [vmem:[%s2495_s26 + $0xb4] sm:$0xff] %v183_v15  ;;  %v1696_v48 = vld [vmem:[%s2490_s25 + $0x8] sm:$0xf]  ;;  %v1698_v49 = vld [vmem:[%s2490_s25 + $0x14] sm:$0xf] }
  0x22   : > { %186 = vst [vmem:[%s2495_s26 + $0xc0] sm:$0xff] %v185_v16  ;;  %v1700_v50 = vld [vmem:[%s2490_s25 + $0x20] sm:$0xf]  ;;  %v1702_v51 = vld [vmem:[%s2490_s25 + $0x2c] sm:$0xf] }
  0x23   : > { %188 = vst [vmem:[%s2495_s26 + $0xcc] sm:$0xff] %v187_v17  ;;  %v1704_v52 = vld [vmem:[%s2490_s25 + $0x38] sm:$0xf]  ;;  %v1706_v53 = vld [vmem:[%s2490_s25 + $0x44] sm:$0xf] }
  0x24   : > { %190 = vst [vmem:[%s2495_s26 + $0xd8] sm:$0xff] %v189_v18  ;;  %v1708_v54 = vld [vmem:[%s2490_s25 + $0x50] sm:$0xf]  ;;  %v1710_v55 = vld [vmem:[%s2490_s25 + $0x5c] sm:$0xf] }
  0x25   : > { %192 = vst [vmem:[%s2495_s26 + $0xe4] sm:$0xff] %v191_v19  ;;  %v1712_v56 = vld [vmem:[%s2490_s25 + $0x68] sm:$0xf]  ;;  %v1714_v57 = vld [vmem:[%s2490_s25 + $0x74] sm:$0xf] }
  0x26   : > { %194 = vst [vmem:[%s2495_s26 + $0xf0] sm:$0xff] %v193_v20  ;;  %v1716_v58 = vld [vmem:[%s2490_s25 + $0x80] sm:$0xf]  ;;  %v1718_v59 = vld [vmem:[%s2490_s25 + $0x8c] sm:$0xf] }
  0x27   : > { %196 = vst [vmem:[%s2495_s26 + $0xfc] sm:$0xff] %v195_v21  ;;  %v1720_v60 = vld [vmem:[%s2490_s25 + $0x128] sm:$0xf]  ;;  %v1722_v61 = vld [vmem:[%s2490_s25 + $0x134] sm:$0xf] }
  0x28   : > { %198 = vst [vmem:[%s2495_s26 + $0x108] sm:$0xff] %v197_v22  ;;  %v1724_v62 = vld [vmem:[%s2490_s25 + $0x140] sm:$0xf]  ;;  %v1726_v63 = vld [vmem:[%s2490_s25 + $0x14c] sm:$0xf] }
  0x29   : > { %200 = vst [vmem:[%s2495_s26 + $0x114] sm:$0xff] %v199_v23  ;;  %v1728_v0 = vld [vmem:[%s2490_s25 + $0x158] sm:$0xf]  ;;  %v1730_v1 = vld [vmem:[%s2490_s25 + $0x164] sm:$0xf] }
  0x2a   : > { %202 = vst [vmem:[%s2495_s26 + $0x120] sm:$0xff] %v201_v24  ;;  %v1732_v2 = vld [vmem:[%s2490_s25 + $0x170] sm:$0xf]  ;;  %v1734_v3 = vld [vmem:[%s2490_s25 + $0x17c] sm:$0xf] }
  0x2b   : > { %204 = vst [vmem:[%s2495_s26 + $0x12c] sm:$0xff] %v203_v25  ;;  %v1736_v4 = vld [vmem:[%s2490_s25 + $0x188] sm:$0xf]  ;;  %v1738_v5 = vld [vmem:[%s2490_s25 + $0x194] sm:$0xf] }
  0x2c   : > { %206 = vst [vmem:[%s2495_s26 + $0x138] sm:$0xff] %v205_v26  ;;  %v1740_v6 = vld [vmem:[%s2490_s25 + $0x1a0] sm:$0xf]  ;;  %v1742_v7 = vld [vmem:[%s2490_s25 + $0x1ac] sm:$0xf] }
  0x2d   : > { %208 = vst [vmem:[%s2495_s26 + $0x144] sm:$0xff] %v207_v27  ;;  %v1744_v8 = vld [vmem:[%s2490_s25 + $0x248] sm:$0xf]  ;;  %v1746_v9 = vld [vmem:[%s2490_s25 + $0x254] sm:$0xf] }
  0x2e   : > { %210 = vst [vmem:[%s2495_s26 + $0x150] sm:$0xff] %v209_v28  ;;  %v1748_v10 = vld [vmem:[%s2490_s25 + $0x260] sm:$0xf]  ;;  %v1750_v11 = vld [vmem:[%s2490_s25 + $0x26c] sm:$0xf] }
  0x2f   : > { %212 = vst [vmem:[%s2495_s26 + $0x15c] sm:$0xff] %v211_v29  ;;  %v1752_v12 = vld [vmem:[%s2490_s25 + $0x278] sm:$0xf]  ;;  %v1754_v13 = vld [vmem:[%s2490_s25 + $0x284] sm:$0xf] }
  0x30   : > { %214 = vst [vmem:[%s2495_s26 + $0x168] sm:$0xff] %v213_v30  ;;  %v1756_v14 = vld [vmem:[%s2490_s25 + $0x290] sm:$0xf]  ;;  %v1758_v15 = vld [vmem:[%s2490_s25 + $0x29c] sm:$0xf] }
  0x31   : > { %216 = vst [vmem:[%s2495_s26 + $0x174] sm:$0xff] %v215_v31  ;;  %v1760_v16 = vld [vmem:[%s2490_s25 + $0x2a8] sm:$0xf]  ;;  %v1762_v17 = vld [vmem:[%s2490_s25 + $0x2b4] sm:$0xf] }
  0x32   : > { %218 = vst [vmem:[%s2495_s26 + $0x180] sm:$0xff] %v217_v32  ;;  %v1764_v18 = vld [vmem:[%s2490_s25 + $0x2c0] sm:$0xf]  ;;  %v1766_v19 = vld [vmem:[%s2490_s25 + $0x2cc] sm:$0xf] }
  0x33   : > { %220 = vst [vmem:[%s2495_s26 + $0x18c] sm:$0xff] %v219_v33  ;;  %v1768_v20 = vld [vmem:[%s2490_s25 + $0x368] sm:$0xf]  ;;  %v1770_v21 = vld [vmem:[%s2490_s25 + $0x374] sm:$0xf] }
  0x34   : > { %222 = vst [vmem:[%s2495_s26 + $0x198] sm:$0xff] %v221_v34  ;;  %v1772_v22 = vld [vmem:[%s2490_s25 + $0x380] sm:$0xf]  ;;  %v1774_v23 = vld [vmem:[%s2490_s25 + $0x38c] sm:$0xf] }
  0x35   : > { %224 = vst [vmem:[%s2495_s26 + $0x1a4] sm:$0xff] %v223_v35  ;;  %v1776_v24 = vld [vmem:[%s2490_s25 + $0x398] sm:$0xf]  ;;  %v1778_v25 = vld [vmem:[%s2490_s25 + $0x3a4] sm:$0xf] }
  0x36   : > { %226 = vst [vmem:[%s2495_s26 + $0x1b0] sm:$0xff] %v225_v36  ;;  %v1780_v26 = vld [vmem:[%s2490_s25 + $0x3b0] sm:$0xf]  ;;  %v1782_v27 = vld [vmem:[%s2490_s25 + $0x3bc] sm:$0xf] }
  0x37   : > { %228 = vst [vmem:[%s2495_s26 + $0x1bc] sm:$0xff] %v227_v37  ;;  %v1784_v28 = vld [vmem:[%s2490_s25 + $0x3c8] sm:$0xf]  ;;  %v1786_v29 = vld [vmem:[%s2490_s25 + $0x3d4] sm:$0xf] }
  0x38   : > { %230 = vst [vmem:[%s2495_s26 + $0x1c8] sm:$0xff] %v229_v38  ;;  %v1788_v30 = vld [vmem:[%s2490_s25 + $0x3e0] sm:$0xf]  ;;  %v1790_v31 = vld [vmem:[%s2490_s25 + $0x3ec] sm:$0xf] }
  0x39   : > { %232 = vst [vmem:[%s2495_s26 + $0x1d4] sm:$0xff] %v231_v39 }
  0x3a   : > { %234 = vst [vmem:[%s2495_s26 + $0x1e0] sm:$0xff] %v233_v40 }
  0x3b   : > { %236 = vst [vmem:[%s2495_s26 + $0x1ec] sm:$0xff] %v235_v41 }
  0x3c   : > { %238 = vst [vmem:[%s2495_s26 + $0x1f8] sm:$0xff] %v237_v42 }
  0x3d   : > { %240 = vst [vmem:[%s2495_s26 + $0x204] sm:$0xff] %v239_v43 }
  0x3e   : > { %242 = vst [vmem:[%s2495_s26 + $0x210] sm:$0xff] %v241_v44 }
  0x3f   : > { %244 = vst [vmem:[%s2495_s26 + $0x21c] sm:$0xff] %v243_v45 }
  0x40   : > { %246 = vst [vmem:[%s2495_s26 + $0x228] sm:$0xff] %v245_v46 }
  0x41   : > { %248 = vst [vmem:[%s2495_s26 + $0x234] sm:$0xff] %v247_v47 }
  0x42   : > { %1697 = vst [vmem:[%s2495_s26 + $0x8] sm:$0xf] %v1696_v48 }
  0x43   : > { %1699 = vst [vmem:[%s2495_s26 + $0x14] sm:$0xf] %v1698_v49 }
  0x44   : > { %1701 = vst [vmem:[%s2495_s26 + $0x20] sm:$0xf] %v1700_v50 }
  0x45   : > { %1703 = vst [vmem:[%s2495_s26 + $0x2c] sm:$0xf] %v1702_v51 }
  0x46   : > { %1705 = vst [vmem:[%s2495_s26 + $0x38] sm:$0xf] %v1704_v52 }
  0x47   : > { %1707 = vst [vmem:[%s2495_s26 + $0x44] sm:$0xf] %v1706_v53 }
  0x48   : > { %1709 = vst [vmem:[%s2495_s26 + $0x50] sm:$0xf] %v1708_v54 }
  0x49   : > { %1711 = vst [vmem:[%s2495_s26 + $0x5c] sm:$0xf] %v1710_v55 }
  0x4a   : > { %1713 = vst [vmem:[%s2495_s26 + $0x68] sm:$0xf] %v1712_v56 }
  0x4b   : > { %1715 = vst [vmem:[%s2495_s26 + $0x74] sm:$0xf] %v1714_v57 }
  0x4c   : > { %1717 = vst [vmem:[%s2495_s26 + $0x80] sm:$0xf] %v1716_v58 }
  0x4d   : > { %1719 = vst [vmem:[%s2495_s26 + $0x8c] sm:$0xf] %v1718_v59 }
  0x4e   : > { %1721 = vst [vmem:[%s2495_s26 + $0x98] sm:$0xf] %v1720_v60 }
  0x4f   : > { %1723 = vst [vmem:[%s2495_s26 + $0xa4] sm:$0xf] %v1722_v61 }
  0x50   : > { %1725 = vst [vmem:[%s2495_s26 + $0xb0] sm:$0xf] %v1724_v62 }
  0x51   : > { %1727 = vst [vmem:[%s2495_s26 + $0xbc] sm:$0xf] %v1726_v63 }
  0x52   : > { %1729 = vst [vmem:[%s2495_s26 + $0xc8] sm:$0xf] %v1728_v0 }
  0x53   : > { %1731 = vst [vmem:[%s2495_s26 + $0xd4] sm:$0xf] %v1730_v1 }
  0x54   : > { %1733 = vst [vmem:[%s2495_s26 + $0xe0] sm:$0xf] %v1732_v2 }
  0x55   : > { %1735 = vst [vmem:[%s2495_s26 + $0xec] sm:$0xf] %v1734_v3 }
  0x56   : > { %1737 = vst [vmem:[%s2495_s26 + $0xf8] sm:$0xf] %v1736_v4 }
  0x57   : > { %1739 = vst [vmem:[%s2495_s26 + $0x104] sm:$0xf] %v1738_v5 }
  0x58   : > { %1741 = vst [vmem:[%s2495_s26 + $0x110] sm:$0xf] %v1740_v6 }
  0x59   : > { %1743 = vst [vmem:[%s2495_s26 + $0x11c] sm:$0xf] %v1742_v7 }
  0x5a   : > { %1745 = vst [vmem:[%s2495_s26 + $0x128] sm:$0xf] %v1744_v8 }
  0x5b   : > { %1747 = vst [vmem:[%s2495_s26 + $0x134] sm:$0xf] %v1746_v9 }
  0x5c   : > { %1749 = vst [vmem:[%s2495_s26 + $0x140] sm:$0xf] %v1748_v10 }
  0x5d   : > { %1751 = vst [vmem:[%s2495_s26 + $0x14c] sm:$0xf] %v1750_v11 }
  0x5e   : > { %1753 = vst [vmem:[%s2495_s26 + $0x158] sm:$0xf] %v1752_v12 }
  0x5f   : > { %1755 = vst [vmem:[%s2495_s26 + $0x164] sm:$0xf] %v1754_v13 }
  0x60   : > { %1757 = vst [vmem:[%s2495_s26 + $0x170] sm:$0xf] %v1756_v14 }
  0x61   : > { %1759 = vst [vmem:[%s2495_s26 + $0x17c] sm:$0xf] %v1758_v15 }
  0x62   : > { %1761 = vst [vmem:[%s2495_s26 + $0x188] sm:$0xf] %v1760_v16 }
  0x63   : > { %1763 = vst [vmem:[%s2495_s26 + $0x194] sm:$0xf] %v1762_v17 }
  0x64   : > { %1765 = vst [vmem:[%s2495_s26 + $0x1a0] sm:$0xf] %v1764_v18 }
  0x65   : > { %1767 = vst [vmem:[%s2495_s26 + $0x1ac] sm:$0xf] %v1766_v19 }
  0x66   : > { %1769 = vst [vmem:[%s2495_s26 + $0x1b8] sm:$0xf] %v1768_v20 }
  0x67   : > { %1771 = vst [vmem:[%s2495_s26 + $0x1c4] sm:$0xf] %v1770_v21 }
  0x68   : > { %1773 = vst [vmem:[%s2495_s26 + $0x1d0] sm:$0xf] %v1772_v22 }
  0x69   : > { %1775 = vst [vmem:[%s2495_s26 + $0x1dc] sm:$0xf] %v1774_v23 }
  0x6a   : > { %1777 = vst [vmem:[%s2495_s26 + $0x1e8] sm:$0xf] %v1776_v24 }
  0x6b   : > { %1779 = vst [vmem:[%s2495_s26 + $0x1f4] sm:$0xf] %v1778_v25 }
  0x6c   : > { %1781 = vst [vmem:[%s2495_s26 + $0x200] sm:$0xf] %v1780_v26 }
  0x6d   : > { %1783 = vst [vmem:[%s2495_s26 + $0x20c] sm:$0xf] %v1782_v27 }
  0x6e   : > { %1785 = vst [vmem:[%s2495_s26 + $0x218] sm:$0xf] %v1784_v28 }
  0x6f   : > { %1787 = vst [vmem:[%s2495_s26 + $0x224] sm:$0xf] %v1786_v29 }
  0x70   : > { %1789 = vst [vmem:[%s2495_s26 + $0x230] sm:$0xf] %v1788_v30 }
  0x71   : > { %1791 = vst [vmem:[%s2495_s26 + $0x23c] sm:$0xf] %v1790_v31 }
  0x72 PF: > { %p1792_p5 = scmp.ge.s32.totalorder %s2434_s14, 1  ;;  %p357_p6 = scmp.lt.s32.totalorder %s2434_s14, 3 }
  0x74   : > { %p358_p7 = pnand %p1792_p5, %p357_p6 }
  0x75   : > { %s364_s9 = sand.u32 (!%p358_p7), 1, %s2426_s12   ;;  %s388_s8 = smul.u32 (!%p358_p7), 12, %s1691_s15 }
  0x76   : > { %361 = sbr.rel (%p358_p7) target bundleno = 582 (0x246), region = 54 }
  0x77   : > { %s2385_s20 = smul.u32 (!%p358_p7), 576, %s364_s9  ;;  %p389_p8 = scmp.lt.s32.totalorder (!%p358_p7), %s388_s8, 23 }
  0x79   : > { %s2833_s7 = scalar_lea.vmem (!%p358_p7), [#allocation2], %s2385_s20 }
  0x7b   : > { %v2691_v32 = vld [vmem:[%s3272_s1 + $0x38] sm:$0xff]  ;;  %v2708_v35 = vld [vmem:[%s3272_s1 + $0x30] sm:$0xff]  ;;  %v2727_v38 = vld [vmem:[%s3272_s1 + $0x28] sm:$0xff]  ;;  %s3279_s8 = smov (!%p389_p8, %s388_s8), 23 }
  0x7c   : > { %v2696_v33 = vld [vmem:[%s3272_s1 + $0x78] sm:$0xff]  ;;  %706 = vmatpush.bf16.msra.mxu0 %v2691_v32  ;;  %v2713_v36 = vld [vmem:[%s3272_s1 + $0x70] sm:$0xff]  ;;  %944 = vmatpush.bf16.msra.mxu3 %v2691_v32  ;;  %v2732_v39 = vld [vmem:[%s3272_s1 + $0x68] sm:$0xff]  ;;  %s1793_s14 = sshll.u32 %s3279_s8, 2 }
  0x7d   : > { %v2701_v34 = vld [vmem:[%s3272_s1 + $0xb8] sm:$0xff]  ;;  %745 = vmatpush.bf16.msra.mxu1 %v2696_v33  ;;  %v2720_v37 = vld [vmem:[%s3272_s1 + $0xb0] sm:$0xff]  ;;  %v2739_v40 = vld [vmem:[%s3272_s1 + $0xa8] sm:$0xff]  ;;  %s3207_s17 = scalar_lea.vmem %s3274_s3, %s1793_s14 }
  0x7e   : > { %784 = vmatpush.bf16.msra.mxu2 %v2701_v34  ;;  %v2746_v41 = vld [vmem:[%s3272_s1 + $0x20] sm:$0xff]  ;;  %v2765_v44 = vld [vmem:[%s3272_s1 + $0x18] sm:$0xff]  ;;  %v2785_v47 = vld [vmem:[%s3272_s1 + $0x10] sm:$0xff] }
  0x7f   : > { %v2751_v42 = vld [vmem:[%s3272_s1 + $0x60] sm:$0xff]  ;;  %v2770_v45 = vld [vmem:[%s3272_s1 + $0x58] sm:$0xff]  ;;  %v2790_v48 = vld [vmem:[%s3272_s1 + $0x50] sm:$0xff] }
  0x80   : > { %707 = vmatpush.bf16.msra.mxu0 %v2708_v35  ;;  %945 = vmatpush.bf16.msra.mxu3 %v2708_v35  ;;  %v2758_v43 = vld [vmem:[%s3272_s1 + $0xa0] sm:$0xff]  ;;  %v2777_v46 = vld [vmem:[%s3272_s1 + $0x98] sm:$0xff]  ;;  %v2797_v49 = vld [vmem:[%s3272_s1 + $0x90] sm:$0xff] }
  0x81   : > { %746 = vmatpush.bf16.msra.mxu1 %v2713_v36  ;;  %v2804_v50 = vld [vmem:[%s3272_s1 + $0x8] sm:$0xff]  ;;  %v2821_v53 = vld [vmem:[%s3272_s1] sm:$0xff]  ;;  %v1798_v59 = vld [vmem:[%s2833_s7 + $0xc] sm:$0xf0] }
  0x82   : > { %785 = vmatpush.bf16.msra.mxu2 %v2720_v37  ;;  %v2809_v51 = vld [vmem:[%s3272_s1 + $0x48] sm:$0xff]  ;;  %v2826_v54 = vld [vmem:[%s3272_s1 + $0x40] sm:$0xff]  ;;  %v2278_v61 = vld [vmem:[%s2833_s7 + $0x10] sm:$0xf0] }
  0x83   : > { %v2816_v52 = vld [vmem:[%s3272_s1 + $0x88] sm:$0xff]  ;;  %v2831_v55 = vld [vmem:[%s3272_s1 + $0x80] sm:$0xff]  ;;  %v1988_v62 = vld [vmem:[%s2833_s7 + $0x90] sm:$0xf] }
  0x84   : > { %708 = vmatpush.bf16.msra.mxu0 %v2727_v38  ;;  %946 = vmatpush.bf16.msra.mxu3 %v2727_v38  ;;  %v1796_v56 = vld [vmem:[%s2833_s7] sm:$0xf]  ;;  %v2277_v57 = vld [vmem:[%s2833_s7 + $0x8] sm:$0xf0]  ;;  %v2276_v58 = vld [vmem:[%s2833_s7 + $0x4] sm:$0xf] }
  0x85   : > { %747 = vmatpush.bf16.msra.mxu1 %v2732_v39  ;;  %v1804_v60 = vld [vmem:[%s2833_s7 + $0x8] sm:$0xf]  ;;  %v2295_v63 = vld [vmem:[%s2833_s7 + $0x98] sm:$0xf0]  ;;  %v1797_v0 = vor.u32 %v2277_v57, %v1796_v56  ;;  %v1801_v1 = vor.u32 %v2276_v58, %v1798_v59  ;;  %v1808_v4 = vld [vmem:[%s2833_s7 + $0x18] sm:$0xf] }
  0x86   : > { %786 = vmatpush.bf16.msra.mxu2 %v2739_v40  ;;  %v1805_v2 = vor.u32 %v2278_v61, %v1804_v60  ;;  %v1989_v3 = vor.u32 %v2295_v63, %v1988_v62  ;;  %v2280_v5 = vld [vmem:[%s2833_s7 + $0x20] sm:$0xf0]  ;;  %v2279_v6 = vld [vmem:[%s2833_s7 + $0x1c] sm:$0xf]  ;;  %v1810_v7 = vld [vmem:[%s2833_s7 + $0x24] sm:$0xf0] }
  0x87   : > { %v1816_v8 = vld [vmem:[%s2833_s7 + $0x20] sm:$0xf]  ;;  %v2281_v9 = vld [vmem:[%s2833_s7 + $0x28] sm:$0xf0]  ;;  %v2000_v10 = vld [vmem:[%s2833_s7 + $0xa8] sm:$0xf]  ;;  %v1809_v12 = vor.u32 %v2280_v5, %v1808_v4  ;;  %v1813_v13 = vor.u32 %v2279_v6, %v1810_v7 }
  0x88   : > { %709 = vmatpush.bf16.msra.mxu0 %v2746_v41  ;;  %947 = vmatpush.bf16.msra.mxu3 %v2746_v41  ;;  %v2298_v11 = vld [vmem:[%s2833_s7 + $0xb0] sm:$0xf0]  ;;  %v1817_v14 = vor.u32 %v2281_v9, %v1816_v8  ;;  %v1820_v16 = vld [vmem:[%s2833_s7 + $0x30] sm:$0xf]  ;;  %v2283_v17 = vld [vmem:[%s2833_s7 + $0x38] sm:$0xf0] }
  0x89   : > { %748 = vmatpush.bf16.msra.mxu1 %v2751_v42  ;;  %v2001_v15 = vor.u32 %v2298_v11, %v2000_v10  ;;  %v2282_v18 = vld [vmem:[%s2833_s7 + $0x34] sm:$0xf]  ;;  %v1822_v19 = vld [vmem:[%s2833_s7 + $0x3c] sm:$0xf0]  ;;  %v1828_v20 = vld [vmem:[%s2833_s7 + $0x38] sm:$0xf]  ;;  %v1821_v24 = vor.u32 %v2283_v17, %v1820_v16 }
  0x8a   : > { %787 = vmatpush.bf16.msra.mxu2 %v2758_v43  ;;  %v2284_v21 = vld [vmem:[%s2833_s7 + $0x40] sm:$0xf0]  ;;  %v2012_v22 = vld [vmem:[%s2833_s7 + $0xc0] sm:$0xf]  ;;  %v2301_v23 = vld [vmem:[%s2833_s7 + $0xc8] sm:$0xf0]  ;;  %v1825_v25 = vor.u32 %v2282_v18, %v1822_v19 }
  0x8b   : > { %v1829_v26 = vor.u32 %v2284_v21, %v1828_v20  ;;  %v2013_v27 = vor.u32 %v2301_v23, %v2012_v22  ;;  %v1832_v28 = vld [vmem:[%s2833_s7 + $0x48] sm:$0xf]  ;;  %v2286_v29 = vld [vmem:[%s2833_s7 + $0x50] sm:$0xf0]  ;;  %v2285_v30 = vld [vmem:[%s2833_s7 + $0x4c] sm:$0xf] }
  0x8c   : > { %710 = vmatpush.bf16.msra.mxu0 %v2765_v44  ;;  %948 = vmatpush.bf16.msra.mxu3 %v2765_v44  ;;  %v1834_v31 = vld [vmem:[%s2833_s7 + $0x54] sm:$0xf0]  ;;  %v2291_v56 = vld [vmem:[%s2833_s7 + $0x7c] sm:$0xf]  ;;  %v1858_v57 = vld [vmem:[%s2833_s7 + $0x84] sm:$0xf0] }
  0x8d   : > { %749 = vmatpush.bf16.msra.mxu1 %v2770_v45  ;;  %v2048_v58 = vld [vmem:[%s2833_s7 + $0x108] sm:$0xf]  ;;  %v2310_v59 = vld [vmem:[%s2833_s7 + $0x110] sm:$0xf0]  ;;  %v1861_v61 = vor.u32 %v2291_v56, %v1858_v57  ;;  %v2084_v4 = vld [vmem:[%s2833_s7 + $0x120] sm:$0xf] }
  0x8e   : > { %788 = vmatpush.bf16.msra.mxu2 %v2777_v46  ;;  %v2049_v63 = vor.u32 %v2310_v59, %v2048_v58  ;;  %v2313_v5 = vld [vmem:[%s2833_s7 + $0x128] sm:$0xf0]  ;;  %v2312_v6 = vld [vmem:[%s2833_s7 + $0x124] sm:$0xf]  ;;  %v2086_v7 = vld [vmem:[%s2833_s7 + $0x12c] sm:$0xf0] }
  0x8f   : > { %v2085_v10 = vor.u32 %v2313_v5, %v2084_v4  ;;  %v2089_v11 = vor.u32 %v2312_v6, %v2086_v7  ;;  %v2096_v16 = vld [vmem:[%s2833_s7 + $0x138] sm:$0xf]  ;;  %v2316_v17 = vld [vmem:[%s2833_s7 + $0x140] sm:$0xf0]  ;;  %v2315_v18 = vld [vmem:[%s2833_s7 + $0x13c] sm:$0xf] }
  0x90   : > { %711 = vmatpush.bf16.msra.mxu0 %v2785_v47  ;;  %949 = vmatpush.bf16.msra.mxu3 %v2785_v47  ;;  %v2098_v19 = vld [vmem:[%s2833_s7 + $0x144] sm:$0xf0]  ;;  %v2097_v22 = vor.u32 %v2316_v17, %v2096_v16  ;;  %v2306_v5 = vld [vmem:[%s2833_s7 + $0xf4] sm:$0xf]  ;;  %v2038_v6 = vld [vmem:[%s2833_s7 + $0xfc] sm:$0xf0] }
  0x91   : > { %750 = vmatpush.bf16.msra.mxu1 %v2790_v48  ;;  %v2101_v23 = vor.u32 %v2315_v18, %v2098_v19  ;;  %v2044_v7 = vld [vmem:[%s2833_s7 + $0xf8] sm:$0xf] }
  0x92   : > { %789 = vmatpush.bf16.msra.mxu2 %v2797_v49 }
  0x94   : > { %712 = vmatpush.bf16.msra.mxu0 %v2804_v50  ;;  %950 = vmatpush.bf16.msra.mxu3 %v2804_v50 }
  0x95   : > { %751 = vmatpush.bf16.msra.mxu1 %v2809_v51 }
  0x96   : > { %790 = vmatpush.bf16.msra.mxu2 %v2816_v52 }
  0x98   : > { %713 = vmatpush.bf16.msra.mxu0 %v2821_v53  ;;  %951 = vmatpush.bf16.msra.mxu3 %v2821_v53 }
  0x99   : > { %752 = vmatpush.bf16.msra.mxu1 %v2826_v54 }
  0x9a   : > { %791 = vmatpush.bf16.msra.mxu2 %v2831_v55 }
  0x9b   : > { %714 = vmatmul.bf16.vlgmr.msra.gmra.mxu0 %v1797_v0  ;;  %952 = vmatmul.bf16.vlgmr.msra.gmra.mxu3 %v1989_v3  ;;  %v2294_v0 = vld [vmem:[%s2833_s7 + $0x94] sm:$0xf]  ;;  %v2296_v3 = vld [vmem:[%s2833_s7 + $0xa0] sm:$0xf0] }
  0x9c   : > { %1233 = vmatpush.bf16.msrb.mxu3 %v2696_v33  ;;  %753 = vmatmul.bf16.vlgmr.msra.gmra.mxu1 %v1801_v1  ;;  %v1990_v1 = vld [vmem:[%s2833_s7 + $0x9c] sm:$0xf0] }
  0x9d   : > { %792 = vmatmul.bf16.vlgmr.msra.gmra.mxu2 %v1805_v2  ;;  %983 = vmatpush.bf16.msrb.mxu0 %v2696_v33  ;;  %v1996_v2 = vld [vmem:[%s2833_s7 + $0x98] sm:$0xf]  ;;  %v1993_v8 = vor.u32 %v2294_v0, %v1990_v1 }
  0x9e   : > { %1194 = vmatpush.bf16.msrb.mxu2 %v2691_v32  ;;  %1022 = vmatpush.bf16.msrb.mxu1 %v2701_v34  ;;  %v1997_v9 = vor.u32 %v2296_v3, %v1996_v2 }
  0xa0   : > { %1234 = vmatpush.bf16.msrb.mxu3 %v2713_v36 }
  0xa1   : > { %984 = vmatpush.bf16.msrb.mxu0 %v2713_v36 }
  0xa2   : > { %1195 = vmatpush.bf16.msrb.mxu2 %v2708_v35  ;;  %1023 = vmatpush.bf16.msrb.mxu1 %v2720_v37 }
  0xa4   : > { %1235 = vmatpush.bf16.msrb.mxu3 %v2732_v39 }
  0xa5   : > { %985 = vmatpush.bf16.msrb.mxu0 %v2732_v39 }
  0xa6   : > { %1196 = vmatpush.bf16.msrb.mxu2 %v2727_v38  ;;  %1024 = vmatpush.bf16.msrb.mxu1 %v2739_v40 }
  0xa8   : > { %1236 = vmatpush.bf16.msrb.mxu3 %v2751_v42 }
  0xa9   : > { %986 = vmatpush.bf16.msrb.mxu0 %v2751_v42 }
  0xaa   : > { %1197 = vmatpush.bf16.msrb.mxu2 %v2746_v41  ;;  %1025 = vmatpush.bf16.msrb.mxu1 %v2758_v43 }
  0xab   : > { %719 = vmatmul.bf16.gmra.mxu0 %v1809_v12  ;;  %957 = vmatmul.bf16.gmra.mxu3 %v2001_v15  ;;  %v2297_v12 = vld [vmem:[%s2833_s7 + $0xac] sm:$0xf]  ;;  %v2299_v15 = vld [vmem:[%s2833_s7 + $0xb8] sm:$0xf0] }
  0xac   : > { %1237 = vmatpush.bf16.msrb.mxu3 %v2770_v45  ;;  %758 = vmatmul.bf16.gmra.mxu1 %v1813_v13  ;;  %v2002_v13 = vld [vmem:[%s2833_s7 + $0xb4] sm:$0xf0] }
  0xad   : > { %797 = vmatmul.bf16.gmra.mxu2 %v1817_v14  ;;  %987 = vmatpush.bf16.msrb.mxu0 %v2770_v45  ;;  %v2008_v14 = vld [vmem:[%s2833_s7 + $0xb0] sm:$0xf]  ;;  %v2005_v20 = vor.u32 %v2297_v12, %v2002_v13 }
  0xae   : > { %1198 = vmatpush.bf16.msrb.mxu2 %v2765_v44  ;;  %1026 = vmatpush.bf16.msrb.mxu1 %v2777_v46  ;;  %v2009_v21 = vor.u32 %v2299_v15, %v2008_v14  ;;  %v2134_v12 = vld [vmem:[%s2833_s7 + $0x18c] sm:$0xf0]  ;;  %v2041_v15 = vor.u32 %v2306_v5, %v2038_v6 }
  0xb0   : > { %1238 = vmatpush.bf16.msrb.mxu3 %v2790_v48 }
  0xb1   : > { %988 = vmatpush.bf16.msrb.mxu0 %v2790_v48 }
  0xb2   : > { %1199 = vmatpush.bf16.msrb.mxu2 %v2785_v47  ;;  %1027 = vmatpush.bf16.msrb.mxu1 %v2797_v49 }
  0xb4   : > { %1239 = vmatpush.bf16.msrb.mxu3 %v2809_v51 }
  0xb5   : > { %989 = vmatpush.bf16.msrb.mxu0 %v2809_v51 }
  0xb6   : > { %1200 = vmatpush.bf16.msrb.mxu2 %v2804_v50  ;;  %1028 = vmatpush.bf16.msrb.mxu1 %v2816_v52 }
  0xb8   : > { %1240 = vmatpush.bf16.msrb.mxu3 %v2826_v54 }
  0xb9   : > { %990 = vmatpush.bf16.msrb.mxu0 %v2826_v54 }
  0xba   : > { %1201 = vmatpush.bf16.msrb.mxu2 %v2821_v53  ;;  %1029 = vmatpush.bf16.msrb.mxu1 %v2831_v55 }
  0xbb   : > { %724 = vmatmul.bf16.gmra.mxu0 %v1821_v24  ;;  %962 = vmatmul.bf16.gmra.mxu3 %v2013_v27  ;;  %v2300_v24 = vld [vmem:[%s2833_s7 + $0xc4] sm:$0xf]  ;;  %v2302_v27 = vld [vmem:[%s2833_s7 + $0xd0] sm:$0xf0] }
  0xbc   : > { %1522 = vmatpush.bf16.msra.mxu3 %v2701_v34  ;;  %763 = vmatmul.bf16.gmra.mxu1 %v1825_v25  ;;  %v2014_v25 = vld [vmem:[%s2833_s7 + $0xcc] sm:$0xf0] }
  0xbd   : > { %1272 = vmatpush.bf16.msra.mxu0 %v2701_v34  ;;  %802 = vmatmul.bf16.gmra.mxu2 %v1829_v26  ;;  %v2024_v34 = vld [vmem:[%s2833_s7 + $0xd8] sm:$0xf]  ;;  %v2020_v26 = vld [vmem:[%s2833_s7 + $0xc8] sm:$0xf] }
  0xbe   : > { %1483 = vmatpush.bf16.msra.mxu2 %v2696_v33  ;;  %1444 = vmatpush.bf16.msra.mxu1 %v2691_v32  ;;  %v1840_v32 = vld [vmem:[%s2833_s7 + $0x50] sm:$0xf]  ;;  %v2287_v33 = vld [vmem:[%s2833_s7 + $0x58] sm:$0xf0] }
  0xc0   : > { %1523 = vmatpush.bf16.msra.mxu3 %v2720_v37 }
  0xc1   : > { %1273 = vmatpush.bf16.msra.mxu0 %v2720_v37  ;;  %v1837_v37 = vor.u32 %v2285_v30, %v1834_v31  ;;  %v2318_v30 = vld [vmem:[%s2833_s7 + $0x154] sm:$0xf]  ;;  %v2110_v31 = vld [vmem:[%s2833_s7 + $0x15c] sm:$0xf0] }
  0xc2   : > { %1484 = vmatpush.bf16.msra.mxu2 %v2713_v36  ;;  %1445 = vmatpush.bf16.msra.mxu1 %v2708_v35  ;;  %v2304_v36 = vld [vmem:[%s2833_s7 + $0xe0] sm:$0xf0]  ;;  %v1833_v35 = vor.u32 %v2286_v29, %v1832_v28  ;;  %v2108_v28 = vld [vmem:[%s2833_s7 + $0x150] sm:$0xf]  ;;  %v2319_v29 = vld [vmem:[%s2833_s7 + $0x158] sm:$0xf0] }
  0xc4   : > { %1524 = vmatpush.bf16.msra.mxu3 %v2739_v40 }
  0xc5   : > { %1274 = vmatpush.bf16.msra.mxu0 %v2739_v40  ;;  %v1844_v40 = vld [vmem:[%s2833_s7 + $0x60] sm:$0xf] }
  0xc6   : > { %1485 = vmatpush.bf16.msra.mxu2 %v2732_v39  ;;  %1446 = vmatpush.bf16.msra.mxu1 %v2727_v38  ;;  %v1841_v39 = vor.u32 %v2287_v33, %v1840_v32  ;;  %v2025_v38 = vor.u32 %v2304_v36, %v2024_v34  ;;  %v2017_v32 = vor.u32 %v2300_v24, %v2014_v25 }
  0xc7   : > { %v2021_v33 = vor.u32 %v2302_v27, %v2020_v26 }
  0xc8   : > { %1525 = vmatpush.bf16.msra.mxu3 %v2758_v43 }
  0xc9   : > { %1275 = vmatpush.bf16.msra.mxu0 %v2758_v43  ;;  %v1846_v43 = vld [vmem:[%s2833_s7 + $0x6c] sm:$0xf0] }
  0xca   : > { %1486 = vmatpush.bf16.msra.mxu2 %v2751_v42  ;;  %1447 = vmatpush.bf16.msra.mxu1 %v2746_v41  ;;  %v2289_v41 = vld [vmem:[%s2833_s7 + $0x68] sm:$0xf0]  ;;  %v2288_v42 = vld [vmem:[%s2833_s7 + $0x64] sm:$0xf] }
  0xcb   : > { %729 = vmatmul.bf16.gmra.mxu0 %v1833_v35  ;;  %967 = vmatmul.bf16.gmra.mxu3 %v2025_v38  ;;  %v2109_v35 = vor.u32 %v2319_v29, %v2108_v28  ;;  %v2309_v29 = vld [vmem:[%s2833_s7 + $0x10c] sm:$0xf] }
  0xcc   : > { %1526 = vmatpush.bf16.msra.mxu3 %v2777_v46  ;;  %768 = vmatmul.bf16.gmra.mxu1 %v1837_v37  ;;  %v2113_v37 = vor.u32 %v2318_v30, %v2110_v31  ;;  %v2050_v30 = vld [vmem:[%s2833_s7 + $0x114] sm:$0xf0]  ;;  %v2056_v31 = vld [vmem:[%s2833_s7 + $0x110] sm:$0xf] }
  0xcd   : > { %1276 = vmatpush.bf16.msra.mxu0 %v2777_v46  ;;  %807 = vmatmul.bf16.gmra.mxu2 %v1841_v39  ;;  %v2036_v46 = vld [vmem:[%s2833_s7 + $0xf0] sm:$0xf] }
  0xce   : > { %1487 = vmatpush.bf16.msra.mxu2 %v2770_v45  ;;  %1448 = vmatpush.bf16.msra.mxu1 %v2765_v44  ;;  %v1852_v44 = vld [vmem:[%s2833_s7 + $0x68] sm:$0xf]  ;;  %v2290_v45 = vld [vmem:[%s2833_s7 + $0x70] sm:$0xf0] }
  0xd0   : > { %1527 = vmatpush.bf16.msra.mxu3 %v2797_v49 }
  0xd1   : > { %1277 = vmatpush.bf16.msra.mxu0 %v2797_v49  ;;  %v1849_v49 = vor.u32 %v2288_v42, %v1846_v43 }
  0xd2   : > { %1488 = vmatpush.bf16.msra.mxu2 %v2790_v48  ;;  %1449 = vmatpush.bf16.msra.mxu1 %v2785_v47  ;;  %v2307_v48 = vld [vmem:[%s2833_s7 + $0xf8] sm:$0xf0]  ;;  %v1845_v47 = vor.u32 %v2289_v41, %v1844_v40 }
  0xd4   : > { %1528 = vmatpush.bf16.msra.mxu3 %v2816_v52 }
  0xd5   : > { %1278 = vmatpush.bf16.msra.mxu0 %v2816_v52  ;;  %v1856_v52 = vld [vmem:[%s2833_s7 + $0x78] sm:$0xf] }
  0xd6   : > { %1489 = vmatpush.bf16.msra.mxu2 %v2809_v51  ;;  %1450 = vmatpush.bf16.msra.mxu1 %v2804_v50  ;;  %v1853_v50 = vor.u32 %v2290_v45, %v1852_v44  ;;  %v2037_v51 = vor.u32 %v2307_v48, %v2036_v46  ;;  %v2303_v45 = vld [vmem:[%s2833_s7 + $0xdc] sm:$0xf]  ;;  %v2026_v46 = vld [vmem:[%s2833_s7 + $0xe4] sm:$0xf0]  ;;  %v2032_v48 = vld [vmem:[%s2833_s7 + $0xe0] sm:$0xf] }
  0xd7   : > { %v2029_v57 = vor.u32 %v2303_v45, %v2026_v46 }
  0xd8   : > { %1529 = vmatpush.bf16.msra.mxu3 %v2831_v55 }
  0xd9   : > { %1279 = vmatpush.bf16.msra.mxu0 %v2831_v55  ;;  %v1864_v55 = vld [vmem:[%s2833_s7 + $0x80] sm:$0xf] }
  0xda   : > { %1490 = vmatpush.bf16.msra.mxu2 %v2826_v54  ;;  %1451 = vmatpush.bf16.msra.mxu1 %v2821_v53  ;;  %v2292_v54 = vld [vmem:[%s2833_s7 + $0x80] sm:$0xf0]  ;;  %v2293_v53 = vld [vmem:[%s2833_s7 + $0x88] sm:$0xf0] }
  0xdb   : > { %734 = vmatmul.bf16.gmra.mxu0 %v1845_v47  ;;  %972 = vmatmul.bf16.gmra.mxu3 %v2037_v51  ;;  %v1857_v60 = vor.u32 %v2292_v54, %v1856_v52  ;;  %v1865_v62 = vor.u32 %v2293_v53, %v1864_v55  ;;  %v2305_v47 = vld [vmem:[%s2833_s7 + $0xe8] sm:$0xf0]  ;;  %v2122_v52 = vld [vmem:[%s2833_s7 + $0x174] sm:$0xf0] }
  0xdc   : > { %773 = vmatmul.bf16.gmra.mxu1 %v1849_v49  ;;  %v2120_v49 = vld [vmem:[%s2833_s7 + $0x168] sm:$0xf]  ;;  %v2321_v51 = vld [vmem:[%s2833_s7 + $0x16c] sm:$0xf]  ;;  %v2033_v55 = vor.u32 %v2305_v47, %v2032_v48 }
  0xdd   : > { %812 = vmatmul.bf16.gmra.mxu2 %v1853_v50  ;;  %v2322_v50 = vld [vmem:[%s2833_s7 + $0x170] sm:$0xf0] }
  0xeb   : > { %739 = vmatmul.bf16.gmra.mxu0 %v1857_v60  ;;  %977 = vmatmul.bf16.gmra.mxu3 %v2049_v63  ;;  %v2121_v60 = vor.u32 %v2322_v50, %v2120_v49 }
  0xec   : > { %778 = vmatmul.bf16.gmra.mxu1 %v1861_v61  ;;  %v2125_v61 = vor.u32 %v2321_v51, %v2122_v52 }
  0xed   : > { %817 = vmatmul.bf16.gmra.mxu2 %v1865_v62 }
  0xfb   : > { %991 = vmatmul.bf16.vlgmr.msrb.gmra.mxu0 %v1993_v8  ;;  %1241 = vmatmul.bf16.vlgmr.msrb.gmra.mxu3 %v2089_v11  ;;  %v2308_v8 = vld [vmem:[%s2833_s7 + $0x100] sm:$0xf0] }
  0xfc   : > { %1030 = vmatmul.bf16.vlgmr.msrb.gmra.mxu1 %v1997_v9  ;;  %v2132_v9 = vld [vmem:[%s2833_s7 + $0x180] sm:$0xf]  ;;  %v2324_v11 = vld [vmem:[%s2833_s7 + $0x184] sm:$0xf]  ;;  %v2045_v16 = vor.u32 %v2308_v8, %v2044_v7 }
  0xfd   : > { %1202 = vmatmul.bf16.vlgmr.msrb.gmra.mxu2 %v2085_v10  ;;  %v2325_v10 = vld [vmem:[%s2833_s7 + $0x188] sm:$0xf0] }
 0x10b   : > { %996 = vmatmul.bf16.gmra.mxu0 %v2005_v20  ;;  %1246 = vmatmul.bf16.gmra.mxu3 %v2101_v23  ;;  %v2133_v20 = vor.u32 %v2325_v10, %v2132_v9 }
 0x10c   : > { %1035 = vmatmul.bf16.gmra.mxu1 %v2009_v21  ;;  %v2137_v21 = vor.u32 %v2324_v11, %v2134_v12 }
 0x10d   : > { %1207 = vmatmul.bf16.gmra.mxu2 %v2097_v22 }
 0x118   : > { %v715_v34 = vpop.f32.mrf.mxu0 }
 0x119   : > { %v754_v36 = vpop.f32.mrf.mxu1 }
 0x11a   : > { %v755_v39 = vadd.f32 %v754_v36, %v715_v34  ;;  %v2328_v34 = vld [vmem:[%s2833_s7 + $0x1a0] sm:$0xf0]  ;;  %v2327_v36 = vld [vmem:[%s2833_s7 + $0x19c] sm:$0xf] }
 0x11b   : > { %1001 = vmatmul.bf16.gmra.mxu0 %v2017_v32  ;;  %1251 = vmatmul.bf16.gmra.mxu3 %v2113_v37  ;;  %v2311_v32 = vld [vmem:[%s2833_s7 + $0x118] sm:$0xf0] }
 0x11c   : > { %1040 = vmatmul.bf16.gmra.mxu1 %v2021_v33  ;;  %v2144_v33 = vld [vmem:[%s2833_s7 + $0x198] sm:$0xf] }
 0x11d   : > { %1212 = vmatmul.bf16.gmra.mxu2 %v2109_v35  ;;  %v2146_v35 = vld [vmem:[%s2833_s7 + $0x1a4] sm:$0xf0]  ;;  %v2145_v46 = vor.u32 %v2328_v34, %v2144_v33 }
 0x11e   : > { %v2979_v40 = vpop.f32.mrf.mxu3  ;;  %v2149_v48 = vor.u32 %v2327_v36, %v2146_v35 }
 0x120   : > { %v793_v38 = vpop.f32.mrf.mxu2  ;;  %v717_v42 = vpop.f32.mrf.mxu0 }
 0x121   : > { %v2981_v41 = vadd.f32 %v793_v38, %v755_v39  ;;  %v756_v43 = vpop.f32.mrf.mxu1  ;;  %v2053_v38 = vor.u32 %v2309_v29, %v2050_v30  ;;  %v2200_v29 = vld [vmem:[%s2833_s7 + $0x1d0] sm:$0xf]  ;;  %v2335_v30 = vld [vmem:[%s2833_s7 + $0x1d8] sm:$0xf0] }
 0x122   : > { %v757_v44 = vadd.f32 %v756_v43, %v717_v42  ;;  %v2057_v42 = vor.u32 %v2311_v32, %v2056_v31 }
 0x126   : > { %v2991_v56 = vpop.f32.mrf.mxu3 }
 0x128   : > { %v795_v54 = vpop.f32.mrf.mxu2  ;;  %v720_v58 = vpop.f32.mrf.mxu0 }
 0x129   : > { %v2993_v53 = vadd.f32 %v795_v54, %v757_v44  ;;  %v759_v59 = vpop.f32.mrf.mxu1 }
 0x12a   : > { %v760_v62 = vadd.f32 %v759_v59, %v720_v58  ;;  %v2314_v58 = vld [vmem:[%s2833_s7 + $0x130] sm:$0xf0]  ;;  %v2180_v59 = vld [vmem:[%s2833_s7 + $0x1b0] sm:$0xf] }
 0x12b   : > { %1006 = vmatmul.bf16.gmra.mxu0 %v2029_v57  ;;  %1256 = vmatmul.bf16.gmra.mxu3 %v2125_v61  ;;  %v2330_v61 = vld [vmem:[%s2833_s7 + $0x1b4] sm:$0xf] }
 0x12c   : > { %1045 = vmatmul.bf16.gmra.mxu1 %v2033_v55  ;;  %v2092_v55 = vld [vmem:[%s2833_s7 + $0x128] sm:$0xf] }
 0x12d   : > { %1217 = vmatmul.bf16.gmra.mxu2 %v2121_v60  ;;  %v2331_v60 = vld [vmem:[%s2833_s7 + $0x1b8] sm:$0xf0]  ;;  %v2093_v5 = vor.u32 %v2314_v58, %v2092_v55  ;;  %v2204_v55 = vld [vmem:[%s2833_s7 + $0x1e0] sm:$0xf]  ;;  %v2337_v58 = vld [vmem:[%s2833_s7 + $0x1e8] sm:$0xf0] }
 0x12e   : > { %v2995_v0 = vpop.f32.mrf.mxu3  ;;  %v2181_v6 = vor.u32 %v2331_v60, %v2180_v59  ;;  %v2336_v59 = vld [vmem:[%s2833_s7 + $0x1e4] sm:$0xf]  ;;  %v2206_v60 = vld [vmem:[%s2833_s7 + $0x1ec] sm:$0xf0] }
 0x130   : > { %v798_v63 = vpop.f32.mrf.mxu2  ;;  %v722_v2 = vpop.f32.mrf.mxu0 }
 0x131   : > { %v2997_v1 = vadd.f32 %v798_v63, %v760_v62  ;;  %v761_v3 = vpop.f32.mrf.mxu1  ;;  %v2182_v62 = vld [vmem:[%s2833_s7 + $0x1bc] sm:$0xf0]  ;;  %v2188_v63 = vld [vmem:[%s2833_s7 + $0x1b8] sm:$0xf] }
 0x132   : > { %v762_v4 = vadd.f32 %v761_v3, %v722_v2  ;;  %v2332_v2 = vld [vmem:[%s2833_s7 + $0x1c0] sm:$0xf0]  ;;  %v2185_v10 = vor.u32 %v2330_v61, %v2182_v62  ;;  %v2212_v61 = vld [vmem:[%s2833_s7 + $0x1e8] sm:$0xf]  ;;  %v2338_v62 = vld [vmem:[%s2833_s7 + $0x1f0] sm:$0xf0] }
 0x133   : > { %v2189_v11 = vor.u32 %v2332_v2, %v2188_v63 }
 0x136   : > { %v3007_v14 = vpop.f32.mrf.mxu3 }
 0x138   : > { %v800_v13 = vpop.f32.mrf.mxu2  ;;  %v725_v18 = vpop.f32.mrf.mxu0 }
 0x139   : > { %v3009_v17 = vadd.f32 %v800_v13, %v762_v4  ;;  %v764_v19 = vpop.f32.mrf.mxu1 }
 0x13a   : > { %v765_v22 = vadd.f32 %v764_v19, %v725_v18 }
 0x13b   : > { %1011 = vmatmul.bf16.gmra.mxu0 %v2041_v15  ;;  %1261 = vmatmul.bf16.gmra.mxu3 %v2137_v21  ;;  %v2104_v21 = vld [vmem:[%s2833_s7 + $0x140] sm:$0xf] }
 0x13c   : > { %1050 = vmatmul.bf16.gmra.mxu1 %v2045_v16 }
 0x13d   : > { %1222 = vmatmul.bf16.gmra.mxu2 %v2133_v20 }
 0x13e   : > { %v3011_v24 = vpop.f32.mrf.mxu3 }
 0x140   : > { %v803_v23 = vpop.f32.mrf.mxu2  ;;  %v727_v26 = vpop.f32.mrf.mxu0 }
 0x141   : > { %v3013_v25 = vadd.f32 %v803_v23, %v765_v22  ;;  %v766_v27 = vpop.f32.mrf.mxu1  ;;  %v2317_v22 = vld [vmem:[%s2833_s7 + $0x148] sm:$0xf0]  ;;  %v2192_v23 = vld [vmem:[%s2833_s7 + $0x1c8] sm:$0xf] }
 0x142   : > { %v767_v28 = vadd.f32 %v766_v27, %v727_v26  ;;  %v2334_v26 = vld [vmem:[%s2833_s7 + $0x1d0] sm:$0xf0]  ;;  %v2333_v27 = vld [vmem:[%s2833_s7 + $0x1cc] sm:$0xf]  ;;  %v2105_v33 = vor.u32 %v2317_v22, %v2104_v21 }
 0x143   : > { %v2193_v34 = vor.u32 %v2334_v26, %v2192_v23 }
 0x146   : > { %v3023_v39 = vpop.f32.mrf.mxu3 }
 0x148   : > { %v805_v37 = vpop.f32.mrf.mxu2  ;;  %v730_v44 = vpop.f32.mrf.mxu0 }
 0x149   : > { %v3025_v43 = vadd.f32 %v805_v37, %v767_v28  ;;  %v769_v45 = vpop.f32.mrf.mxu1  ;;  %v2194_v28 = vld [vmem:[%s2833_s7 + $0x1d4] sm:$0xf0] }
 0x14a   : > { %v770_v47 = vadd.f32 %v769_v45, %v730_v44 }
 0x14b   : > { %1016 = vmatmul.bf16.gmra.mxu0 %v2053_v38  ;;  %1266 = vmatmul.bf16.gmra.mxu3 %v2149_v48  ;;  %v2197_v38 = vor.u32 %v2333_v27, %v2194_v28  ;;  %v2128_v27 = vld [vmem:[%s2833_s7 + $0x170] sm:$0xf]  ;;  %v2323_v28 = vld [vmem:[%s2833_s7 + $0x178] sm:$0xf0] }
 0x14c   : > { %1055 = vmatmul.bf16.gmra.mxu1 %v2057_v42  ;;  %v2201_v42 = vor.u32 %v2335_v30, %v2200_v29  ;;  %v2216_v29 = vld [vmem:[%s2833_s7 + $0x1f8] sm:$0xf]  ;;  %v2340_v30 = vld [vmem:[%s2833_s7 + $0x200] sm:$0xf0] }
 0x14d   : > { %1227 = vmatmul.bf16.gmra.mxu2 %v2145_v46 }
 0x14e   : > { %v3027_v50 = vpop.f32.mrf.mxu3 }
 0x150   : > { %v808_v49 = vpop.f32.mrf.mxu2  ;;  %v732_v52 = vpop.f32.mrf.mxu0 }
 0x151   : > { %v3029_v51 = vadd.f32 %v808_v49, %v770_v47  ;;  %v771_v54 = vpop.f32.mrf.mxu1 }
 0x152   : > { %v772_v57 = vadd.f32 %v771_v54, %v732_v52  ;;  %v2116_v54 = vld [vmem:[%s2833_s7 + $0x158] sm:$0xf] }
 0x156   : > { %v3039_v4 = vpop.f32.mrf.mxu3 }
 0x158   : > { %v810_v3 = vpop.f32.mrf.mxu2  ;;  %v735_v8 = vpop.f32.mrf.mxu0 }
 0x159   : > { %v3041_v7 = vadd.f32 %v810_v3, %v772_v57  ;;  %v774_v9 = vpop.f32.mrf.mxu1  ;;  %v2320_v57 = vld [vmem:[%s2833_s7 + $0x160] sm:$0xf0] }
 0x15a   : > { %v775_v12 = vadd.f32 %v774_v9, %v735_v8  ;;  %v2117_v3 = vor.u32 %v2320_v57, %v2116_v54 }
 0x15b   : > { %1280 = vmatmul.bf16.vlgmr.msra.gmra.mxu0 %v2093_v5  ;;  %1530 = vmatmul.bf16.vlgmr.msra.gmra.mxu3 %v2189_v11  ;;  %v2205_v5 = vor.u32 %v2337_v58, %v2204_v55  ;;  %v2213_v11 = vor.u32 %v2338_v62, %v2212_v61 }
 0x15c   : > { %1452 = vmatmul.bf16.vlgmr.msra.gmra.mxu1 %v2181_v6 }
 0x15d   : > { %1491 = vmatmul.bf16.vlgmr.msra.gmra.mxu2 %v2185_v10  ;;  %v2209_v10 = vor.u32 %v2336_v59, %v2206_v60 }
 0x15e   : > { %v3043_v15 = vpop.f32.mrf.mxu3 }
 0x160   : > { %v813_v13 = vpop.f32.mrf.mxu2  ;;  %v737_v18 = vpop.f32.mrf.mxu0 }
 0x161   : > { %v3045_v16 = vadd.f32 %v813_v13, %v775_v12  ;;  %v776_v19 = vpop.f32.mrf.mxu1 }
 0x162   : > { %v777_v20 = vadd.f32 %v776_v19, %v737_v18 }
 0x166   : > { %v3055_v32 = vpop.f32.mrf.mxu3 }
 0x168   : > { %v815_v31 = vpop.f32.mrf.mxu2  ;;  %v740_v35 = vpop.f32.mrf.mxu0 }
 0x169   : > { %v3057_v36 = vadd.f32 %v815_v31, %v777_v20  ;;  %v779_v37 = vpop.f32.mrf.mxu1  ;;  %v2339_v31 = vld [vmem:[%s2833_s7 + $0x1fc] sm:$0xf] }
 0x16a   : > { %v780_v44 = vadd.f32 %v779_v37, %v740_v35  ;;  %v2224_v35 = vld [vmem:[%s2833_s7 + $0x200] sm:$0xf]  ;;  %v2341_v37 = vld [vmem:[%s2833_s7 + $0x208] sm:$0xf0] }
 0x16b   : > { %1285 = vmatmul.bf16.gmra.mxu0 %v2105_v33  ;;  %1535 = vmatmul.bf16.gmra.mxu3 %v2201_v42  ;;  %v2225_v54 = vor.u32 %v2341_v37, %v2224_v35 }
 0x16c   : > { %1457 = vmatmul.bf16.gmra.mxu1 %v2193_v34  ;;  %v2218_v34 = vld [vmem:[%s2833_s7 + $0x204] sm:$0xf0] }
 0x16d   : > { %1496 = vmatmul.bf16.gmra.mxu2 %v2197_v38 }
 0x16e   : > { %v3059_v46 = vpop.f32.mrf.mxu3 }
 0x170   : > { %v818_v45 = vpop.f32.mrf.mxu2  ;;  %v742_v47 = vpop.f32.mrf.mxu0 }
 0x171   : > { %v3061_v48 = vadd.f32 %v818_v45, %v780_v44  ;;  %v781_v49 = vpop.f32.mrf.mxu1  ;;  %v2129_v44 = vor.u32 %v2323_v28, %v2128_v27  ;;  %v2217_v45 = vor.u32 %v2340_v30, %v2216_v29 }
 0x172   : > { %v782_v52 = vadd.f32 %v781_v49, %v742_v47 }
 0x176   : > { %v3071_v2 = vpop.f32.mrf.mxu3 }
 0x178   : > { %v820_v63 = vpop.f32.mrf.mxu2  ;;  %v992_v8 = vpop.f32.mrf.mxu0 }
 0x179   : > { %v3073_v6 = vadd.f32 %v820_v63, %v782_v52  ;;  %v1031_v9 = vpop.f32.mrf.mxu1  ;;  %v993_v12 = vadd.f32 %v992_v8, %v2979_v40  ;;  %v2221_v52 = vor.u32 %v2339_v31, %v2218_v34  ;;  %v2326_v8 = vld [vmem:[%s2833_s7 + $0x190] sm:$0xf0] }
 0x17b   : > { %v3076_v13 = vadd.f32 %v1031_v9, %v993_v12  ;;  %1290 = vmatmul.bf16.gmra.mxu0 %v2117_v3  ;;  %1540 = vmatmul.bf16.gmra.mxu3 %v2213_v11  ;;  %v2228_v9 = vld [vmem:[%s2833_s7 + $0x210] sm:$0xf]  ;;  %v2342_v11 = vld [vmem:[%s2833_s7 + $0x214] sm:$0xf] }
 0x17c   : > { %1462 = vmatmul.bf16.gmra.mxu1 %v2205_v5  ;;  %v2140_v5 = vld [vmem:[%s2833_s7 + $0x188] sm:$0xf] }
 0x17d   : > { %1501 = vmatmul.bf16.gmra.mxu2 %v2209_v10  ;;  %v1061_v18 = vmax.f32 %v2981_v41, %v3076_v13  ;;  %v2343_v10 = vld [vmem:[%s2833_s7 + $0x218] sm:$0xf0]  ;;  %v2141_v27 = vor.u32 %v2326_v8, %v2140_v5  ;;  %v2248_v5 = vld [vmem:[%s2833_s7 + $0x230] sm:$0xf]  ;;  %v3196_v41 = vld [vmem:[%s3273_s2] ss:$0 sm:$0xff] }
 0x17e   : > { %v1242_v20 = vpop.f32.mrf.mxu3  ;;  %v2229_v28 = vor.u32 %v2343_v10, %v2228_v9  ;;  %v2347_v8 = vld [vmem:[%s2833_s7 + $0x238] sm:$0xf0] }
 0x180   : > { %v1203_v19 = vpop.f32.mrf.mxu2  ;;  %v994_v40 = vpop.f32.mrf.mxu0 }
 0x181   : > { %v3080_v21 = vadd.f32 %v1242_v20, %v1203_v19  ;;  %v1033_v22 = vpop.f32.mrf.mxu1  ;;  %v995_v23 = vadd.f32 %v994_v40, %v2991_v56  ;;  %v2230_v19 = vld [vmem:[%s2833_s7 + $0x21c] sm:$0xf0]  ;;  %v2236_v20 = vld [vmem:[%s2833_s7 + $0x218] sm:$0xf]  ;;  %v2344_v40 = vld [vmem:[%s2833_s7 + $0x220] sm:$0xf0] }
 0x182   : > { %v2233_v31 = vor.u32 %v2342_v11, %v2230_v19  ;;  %v2237_v34 = vor.u32 %v2344_v40, %v2236_v20 }
 0x183   : > { %v3083_v26 = vadd.f32 %v1033_v22, %v995_v23 }
 0x185   : > { %v1062_v33 = vmax.f32 %v2993_v53, %v3083_v26 }
 0x186   : > { %v1244_v42 = vpop.f32.mrf.mxu3 }
 0x188   : > { %v1205_v38 = vpop.f32.mrf.mxu2  ;;  %v997_v56 = vpop.f32.mrf.mxu0 }
 0x189   : > { %v3095_v47 = vadd.f32 %v1244_v42, %v1205_v38  ;;  %v1036_v49 = vpop.f32.mrf.mxu1  ;;  %v998_v57 = vadd.f32 %v997_v56, %v2995_v0 }
 0x18b   : > { %v3098_v55 = vadd.f32 %v1036_v49, %v998_v57  ;;  %1295 = vmatmul.bf16.gmra.mxu0 %v2129_v44  ;;  %1545 = vmatmul.bf16.gmra.mxu3 %v2225_v54  ;;  %v2152_v54 = vld [vmem:[%s2833_s7 + $0x1a0] sm:$0xf]  ;;  %v2329_v57 = vld [vmem:[%s2833_s7 + $0x1a8] sm:$0xf0] }
 0x18c   : > { %1467 = vmatmul.bf16.gmra.mxu1 %v2217_v45  ;;  %v2153_v11 = vor.u32 %v2329_v57, %v2152_v54 }
 0x18d   : > { %1506 = vmatmul.bf16.gmra.mxu2 %v2221_v52  ;;  %v1063_v58 = vmax.f32 %v2997_v1, %v3098_v55 }
 0x18e   : > { %v1247_v60 = vpop.f32.mrf.mxu3 }
 0x190   : > { %v1208_v59 = vpop.f32.mrf.mxu2  ;;  %v999_v0 = vpop.f32.mrf.mxu0 }
 0x191   : > { %v3102_v61 = vadd.f32 %v1247_v60, %v1208_v59  ;;  %v1038_v62 = vpop.f32.mrf.mxu1  ;;  %v1000_v63 = vadd.f32 %v999_v0, %v3007_v14  ;;  %v2240_v59 = vld [vmem:[%s2833_s7 + $0x228] sm:$0xf]  ;;  %v2346_v60 = vld [vmem:[%s2833_s7 + $0x230] sm:$0xf0]  ;;  %v2345_v0 = vld [vmem:[%s2833_s7 + $0x22c] sm:$0xf] }
 0x192   : > { %v2241_v19 = vor.u32 %v2346_v60, %v2240_v59 }
 0x193   : > { %v3105_v3 = vadd.f32 %v1038_v62, %v1000_v63  ;;  %v2242_v63 = vld [vmem:[%s2833_s7 + $0x234] sm:$0xf0] }
 0x195   : > { %v1064_v12 = vmax.f32 %v3009_v17, %v3105_v3 }
 0x196   : > { %v1249_v23 = vpop.f32.mrf.mxu3 }
 0x198   : > { %v1210_v22 = vpop.f32.mrf.mxu2  ;;  %v1002_v14 = vpop.f32.mrf.mxu0 }
 0x199   : > { %v3117_v29 = vadd.f32 %v1249_v23, %v1210_v22  ;;  %v1041_v30 = vpop.f32.mrf.mxu1  ;;  %v1003_v35 = vadd.f32 %v1002_v14, %v3011_v24  ;;  %v2245_v22 = vor.u32 %v2345_v0, %v2242_v63  ;;  %v2249_v23 = vor.u32 %v2347_v8, %v2248_v5 }
 0x19b   : > { %v3120_v37 = vadd.f32 %v1041_v30, %v1003_v35  ;;  %1300 = vmatmul.bf16.gmra.mxu0 %v2141_v27  ;;  %1550 = vmatmul.bf16.gmra.mxu3 %v2237_v34 }
 0x19c   : > { %1472 = vmatmul.bf16.gmra.mxu1 %v2229_v28 }
 0x19d   : > { %1511 = vmatmul.bf16.gmra.mxu2 %v2233_v31  ;;  %v1065_v38 = vmax.f32 %v3013_v25, %v3120_v37 }
 0x19e   : > { %v1252_v44 = vpop.f32.mrf.mxu3 }
 0x1a0   : > { %v1213_v42 = vpop.f32.mrf.mxu2  ;;  %v1004_v24 = vpop.f32.mrf.mxu0 }
 0x1a1   : > { %v3124_v45 = vadd.f32 %v1252_v44, %v1213_v42  ;;  %v1043_v56 = vpop.f32.mrf.mxu1  ;;  %v1005_v49 = vadd.f32 %v1004_v24, %v3023_v39 }
 0x1a3   : > { %v3127_v52 = vadd.f32 %v1043_v56, %v1005_v49 }
 0x1a5   : > { %v1066_v62 = vmax.f32 %v3025_v43, %v3127_v52 }
 0x1a6   : > { %v1254_v10 = vpop.f32.mrf.mxu3 }
 0x1a8   : > { %v1215_v9 = vpop.f32.mrf.mxu2  ;;  %v1007_v39 = vpop.f32.mrf.mxu0 }
 0x1a9   : > { %v3139_v20 = vadd.f32 %v1254_v10, %v1215_v9  ;;  %v1046_v40 = vpop.f32.mrf.mxu1  ;;  %v1008_v27 = vadd.f32 %v1007_v39, %v3027_v50 }
 0x1ab   : > { %v3142_v28 = vadd.f32 %v1046_v40, %v1008_v27  ;;  %1305 = vmatmul.bf16.gmra.mxu0 %v2153_v11  ;;  %1555 = vmatmul.bf16.gmra.mxu3 %v2249_v23 }
 0x1ac   : > { %1477 = vmatmul.bf16.gmra.mxu1 %v2241_v19 }
 0x1ad   : > { %1516 = vmatmul.bf16.gmra.mxu2 %v2245_v22  ;;  %v1067_v14 = vmax.f32 %v3029_v51, %v3142_v28 }
 0x1ae   : > { %v1257_v31 = vpop.f32.mrf.mxu3 }
 0x1b0   : > { %v1218_v30 = vpop.f32.mrf.mxu2  ;;  %v1009_v35 = vpop.f32.mrf.mxu0 }
 0x1b1   : > { %v3146_v34 = vadd.f32 %v1257_v31, %v1218_v30  ;;  %v1048_v42 = vpop.f32.mrf.mxu1  ;;  %v1010_v44 = vadd.f32 %v1009_v35, %v3039_v4 }
 0x1b3   : > { %v3149_v24 = vadd.f32 %v1048_v42, %v1010_v44 }
 0x1b5   : > { %v1068_v50 = vmax.f32 %v3041_v7, %v3149_v24 }
 0x1b6   : > { %v1259_v49 = vpop.f32.mrf.mxu3 }
 0x1b8   : > { %v1220_v56 = vpop.f32.mrf.mxu2  ;;  %v1012_v57 = vpop.f32.mrf.mxu0 }
 0x1b9   : > { %v3153_v54 = vadd.f32 %v1259_v49, %v1220_v56  ;;  %v1051_v59 = vpop.f32.mrf.mxu1  ;;  %v1013_v60 = vadd.f32 %v1012_v57, %v3043_v15 }
 0x1bb   : > { %v3156_v0 = vadd.f32 %v1051_v59, %v1013_v60 }
 0x1bd   : > { %v1069_v63 = vmax.f32 %v3045_v16, %v3156_v0 }
 0x1be   : > { %v1262_v4 = vpop.f32.mrf.mxu3 }
 0x1c0   : > { %v1223_v5 = vpop.f32.mrf.mxu2  ;;  %v1014_v9 = vpop.f32.mrf.mxu0 }
 0x1c1   : > { %v3160_v8 = vadd.f32 %v1262_v4, %v1223_v5  ;;  %v1053_v10 = vpop.f32.mrf.mxu1  ;;  %v1015_v11 = vadd.f32 %v1014_v9, %v3055_v32 }
 0x1c3   : > { %v3163_v19 = vadd.f32 %v1053_v10, %v1015_v11 }
 0x1c5   : > { %v1070_v39 = vmax.f32 %v3057_v36, %v3163_v19 }
 0x1c6   : > { %v1264_v15 = vpop.f32.mrf.mxu3 }
 0x1c8   : > { %v1225_v40 = vpop.f32.mrf.mxu2  ;;  %v1017_v23 = vpop.f32.mrf.mxu0 }
 0x1c9   : > { %v3167_v22 = vadd.f32 %v1264_v15, %v1225_v40  ;;  %v1056_v27 = vpop.f32.mrf.mxu1  ;;  %v1018_v30 = vadd.f32 %v1017_v23, %v3059_v46 }
 0x1cb   : > { %v3170_v31 = vadd.f32 %v1056_v27, %v1018_v30 }
 0x1cd   : > { %v1071_v35 = vmax.f32 %v3061_v48, %v3170_v31 }
 0x1ce   : > { %v1267_v32 = vpop.f32.mrf.mxu3 }
 0x1d0   : > { %v1228_v42 = vpop.f32.mrf.mxu2  ;;  %v1019_v56 = vpop.f32.mrf.mxu0 }
 0x1d1   : > { %v3174_v44 = vadd.f32 %v1267_v32, %v1228_v42  ;;  %v1058_v49 = vpop.f32.mrf.mxu1  ;;  %v1020_v57 = vadd.f32 %v1019_v56, %v3071_v2 }
 0x1d3   : > { %v3177_v59 = vadd.f32 %v1058_v49, %v1020_v57 }
 0x1d5   : > { %v1072_v60 = vmax.f32 %v3073_v6, %v3177_v59 }
 0x1d6   : > { %v1269_v5 = vpop.f32.mrf.mxu3 }
 0x1d8   : > { %v1230_v46 = vpop.f32.mrf.mxu2  ;;  %v1281_v9 = vpop.f32.mrf.mxu0 }
 0x1d9   : > { %v3181_v4 = vadd.f32 %v1269_v5, %v1230_v46  ;;  %v1453_v10 = vpop.f32.mrf.mxu1  ;;  %v1282_v11 = vadd.f32 %v1281_v9, %v3080_v21 }
 0x1db   : > { %v1311_v40 = vmax.f32 %v1061_v18, %v1282_v11 }
 0x1de   : > { %v1531_v2 = vpop.f32.mrf.mxu3 }
 0x1e0   : > { %v1492_v15 = vpop.f32.mrf.mxu2  ;;  %v1283_v27 = vpop.f32.mrf.mxu0 }
 0x1e1   : > { %v1493_v23 = vadd.f32 %v1492_v15, %v1453_v10  ;;  %v1455_v30 = vpop.f32.mrf.mxu1  ;;  %v1284_v42 = vadd.f32 %v1283_v27, %v3095_v47 }
 0x1e3   : > { %v1312_v32 = vmax.f32 %v1062_v33, %v1284_v42  ;;  %v1532_v56 = vadd.f32 %v1531_v2, %v1493_v23 }
 0x1e5   : > { %v1561_v57 = vmax.f32 %v1311_v40, %v1532_v56 }
 0x1e6   : > { %v1533_v49 = vpop.f32.mrf.mxu3 }
 0x1e7   : > { %v1577_v26 = vadd.f32 %v3196_v41, %v1561_v57 }
 0x1e8   : > { %v1494_v21 = vpop.f32.mrf.mxu2  ;;  %v1286_v18 = vpop.f32.mrf.mxu0 }
 0x1e9   : > { %v1495_v13 = vadd.f32 %v1494_v21, %v1455_v30  ;;  %v1458_v46 = vpop.f32.mrf.mxu1  ;;  %v1287_v47 = vadd.f32 %v1286_v18, %v3102_v61  ;;  %v1589_v40 = vmax.f32 %v1577_v26, 0.0 }
 0x1eb   : > { %v1534_v5 = vadd.f32 %v1533_v49, %v1495_v13  ;;  %v1313_v53 = vmax.f32 %v1063_v58, %v1287_v47 }
 0x1ed   : > { %v1562_v33 = vmax.f32 %v1312_v32, %v1534_v5 }
 0x1ee   : > { %v1536_v11 = vpop.f32.mrf.mxu3 }
 0x1ef   : > { %v1578_v9 = vadd.f32 %v3196_v41, %v1562_v33 }
 0x1f0   : > { %v1497_v10 = vpop.f32.mrf.mxu2  ;;  %v1288_v23 = vpop.f32.mrf.mxu0 }
 0x1f1   : > { %v1590_v15 = vmax.f32 %v1578_v9, 0.0  ;;  %v1498_v2 = vadd.f32 %v1497_v10, %v1458_v46  ;;  %v1460_v27 = vpop.f32.mrf.mxu1  ;;  %v1289_v1 = vadd.f32 %v1288_v23, %v3117_v29 }
 0x1f3   : > { %v2351_v55 = vpack.c.bf16 %v1590_v15, %v1589_v40  ;;  %v1314_v58 = vmax.f32 %v1064_v12, %v1289_v1  ;;  %v1537_v61 = vadd.f32 %v1536_v11, %v1498_v2 }
 0x1f5   : > { %2352 = vst [vmem:[%s3207_s17] sm:$0xff] %v2351_v55   ;;  %v1563_v32 = vmax.f32 %v1313_v53, %v1537_v61 }
 0x1f6   : > { %v1538_v42 = vpop.f32.mrf.mxu3 }
 0x1f7   : > { %v1579_v18 = vadd.f32 %v3196_v41, %v1563_v32 }
 0x1f8   : > { %v1499_v30 = vpop.f32.mrf.mxu2  ;;  %v1291_v21 = vpop.f32.mrf.mxu0 }
 0x1f9   : > { %v1500_v56 = vadd.f32 %v1499_v30, %v1460_v27  ;;  %v1463_v49 = vpop.f32.mrf.mxu1  ;;  %v1292_v57 = vadd.f32 %v1291_v21, %v3124_v45  ;;  %v1591_v47 = vmax.f32 %v1579_v18, 0.0 }
 0x1fb   : > { %v1539_v13 = vadd.f32 %v1538_v42, %v1500_v56  ;;  %v1315_v29 = vmax.f32 %v1065_v38, %v1292_v57 }
 0x1fd   : > { %v1564_v17 = vmax.f32 %v1314_v58, %v1539_v13 }
 0x1fe   : > { %v1541_v46 = vpop.f32.mrf.mxu3 }
 0x1ff   : > { %v1580_v3 = vadd.f32 %v3196_v41, %v1564_v17 }
 0x200   : > { %v1502_v12 = vpop.f32.mrf.mxu2  ;;  %v1293_v26 = vpop.f32.mrf.mxu0 }
 0x201   : > { %v1592_v5 = vmax.f32 %v1580_v3, 0.0  ;;  %v1503_v53 = vadd.f32 %v1502_v12, %v1463_v49  ;;  %v1465_v33 = vpop.f32.mrf.mxu1  ;;  %v1294_v45 = vadd.f32 %v1293_v26, %v3139_v20 }
 0x203   : > { %v2356_v9 = vpack.c.bf16 %v1592_v5, %v1591_v47  ;;  %v1316_v25 = vmax.f32 %v1066_v62, %v1294_v45  ;;  %v1542_v37 = vadd.f32 %v1541_v46, %v1503_v53 }
 0x205   : > { %2378 = vst [vmem:[%s3207_s17 + $0x8] sm:$0xff] %v2356_v9   ;;  %v1565_v11 = vmax.f32 %v1315_v29, %v1542_v37 }
 0x206   : > { %v1543_v10 = vpop.f32.mrf.mxu3 }
 0x207   : > { %v1581_v1 = vadd.f32 %v3196_v41, %v1565_v11 }
 0x208   : > { %v1504_v38 = vpop.f32.mrf.mxu2  ;;  %v1296_v15 = vpop.f32.mrf.mxu0 }
 0x209   : > { %v1505_v40 = vadd.f32 %v1504_v38, %v1465_v33  ;;  %v1468_v2 = vpop.f32.mrf.mxu1  ;;  %v1297_v23 = vadd.f32 %v1296_v15, %v3146_v34  ;;  %v1593_v58 = vmax.f32 %v1581_v1, 0.0 }
 0x20b   : > { %v1544_v27 = vadd.f32 %v1543_v10, %v1505_v40  ;;  %v1317_v20 = vmax.f32 %v1067_v14, %v1297_v23 }
 0x20d   : > { %v1566_v43 = vmax.f32 %v1316_v25, %v1544_v27 }
 0x20e   : > { %v1546_v55 = vpop.f32.mrf.mxu3 }
 0x20f   : > { %v1582_v52 = vadd.f32 %v3196_v41, %v1566_v43 }
 0x210   : > { %v1507_v62 = vpop.f32.mrf.mxu2  ;;  %v1298_v42 = vpop.f32.mrf.mxu0 }
 0x211   : > { %v1594_v61 = vmax.f32 %v1582_v52, 0.0  ;;  %v1508_v30 = vadd.f32 %v1507_v62, %v1468_v2  ;;  %v1470_v32 = vpop.f32.mrf.mxu1  ;;  %v1299_v34 = vadd.f32 %v1298_v42, %v3153_v54 }
 0x213   : > { %v2361_v56 = vpack.c.bf16 %v1594_v61, %v1593_v58  ;;  %v1318_v51 = vmax.f32 %v1068_v50, %v1299_v34  ;;  %v1547_v28 = vadd.f32 %v1546_v55, %v1508_v30 }
 0x215   : > { %2379 = vst [vmem:[%s3207_s17 + $0x10] sm:$0xff] %v2361_v56   ;;  %v1567_v49 = vmax.f32 %v1317_v20, %v1547_v28 }
 0x216   : > { %v1548_v21 = vpop.f32.mrf.mxu3 }
 0x217   : > { %v1583_v3 = vadd.f32 %v3196_v41, %v1567_v49 }
 0x218   : > { %v1509_v14 = vpop.f32.mrf.mxu2  ;;  %v1301_v13 = vpop.f32.mrf.mxu0 }
 0x219   : > { %v1510_v57 = vadd.f32 %v1509_v14, %v1470_v32  ;;  %v1302_v29 = vadd.f32 %v1301_v13, %v3160_v8  ;;  %v1473_v18 = vpop.f32.mrf.mxu1  ;;  %v1595_v46 = vmax.f32 %v1583_v3, 0.0 }
 0x21b   : > { %v1549_v17 = vadd.f32 %v1548_v21, %v1510_v57  ;;  %v1319_v54 = vmax.f32 %v1069_v63, %v1302_v29 }
 0x21d   : > { %v1568_v7 = vmax.f32 %v1318_v51, %v1549_v17 }
 0x21e   : > { %v1551_v12 = vpop.f32.mrf.mxu3 }
 0x21f   : > { %v1584_v24 = vadd.f32 %v3196_v41, %v1568_v7 }
 0x220   : > { %v1512_v50 = vpop.f32.mrf.mxu2  ;;  %v1303_v53 = vpop.f32.mrf.mxu0 }
 0x221   : > { %v1596_v47 = vmax.f32 %v1584_v24, 0.0  ;;  %v1513_v5 = vadd.f32 %v1512_v50, %v1473_v18  ;;  %v1304_v8 = vadd.f32 %v1303_v53, %v3167_v22  ;;  %v1475_v16 = vpop.f32.mrf.mxu1 }
 0x223   : > { %v2366_v26 = vpack.c.bf16 %v1596_v47, %v1595_v46  ;;  %v1320_v33 = vmax.f32 %v1070_v39, %v1304_v8  ;;  %v1552_v0 = vadd.f32 %v1551_v12, %v1513_v5 }
 0x225   : > { %2380 = vst [vmem:[%s3207_s17 + $0x18] sm:$0xff] %v2366_v26   ;;  %v1569_v9 = vmax.f32 %v1319_v54, %v1552_v0 }
 0x226   : > { %v1553_v45 = vpop.f32.mrf.mxu3 }
 0x227   : > { %v1585_v11 = vadd.f32 %v3196_v41, %v1569_v9 }
 0x228   : > { %v1514_v63 = vpop.f32.mrf.mxu2  ;;  %v1306_v37 = vpop.f32.mrf.mxu0 }
 0x229   : > { %v1515_v25 = vadd.f32 %v1514_v63, %v1475_v16  ;;  %v1307_v38 = vadd.f32 %v1306_v37, %v3174_v44  ;;  %v1478_v19 = vpop.f32.mrf.mxu1  ;;  %v1597_v2 = vmax.f32 %v1585_v11, 0.0 }
 0x22b   : > { %v1554_v10 = vadd.f32 %v1553_v45, %v1515_v25  ;;  %v1321_v22 = vmax.f32 %v1071_v35, %v1307_v38 }
 0x22d   : > { %v1570_v36 = vmax.f32 %v1320_v33, %v1554_v10 }
 0x22e   : > { %v1556_v15 = vpop.f32.mrf.mxu3 }
 0x22f   : > { %v1586_v39 = vadd.f32 %v3196_v41, %v1570_v36 }
 0x230   : > { %v1517_v40 = vpop.f32.mrf.mxu2  ;;  %v1308_v20 = vpop.f32.mrf.mxu0 }
 0x231   : > { %v1598_v23 = vmax.f32 %v1586_v39, 0.0  ;;  %v1518_v27 = vadd.f32 %v1517_v40, %v1478_v19  ;;  %v1309_v44 = vadd.f32 %v1308_v20, %v3181_v4  ;;  %v1480_v35 = vpop.f32.mrf.mxu1 }
 0x233   : > { %v2371_v1 = vpack.c.bf16 %v1598_v23, %v1597_v2  ;;  %v1322_v48 = vmax.f32 %v1072_v60, %v1309_v44  ;;  %v1557_v31 = vadd.f32 %v1556_v15, %v1518_v27 }
 0x235   : > { %2381 = vst [vmem:[%s3207_s17 + $0x20] sm:$0xff] %v2371_v1   ;;  %v1571_v52 = vmax.f32 %v1321_v22, %v1557_v31 }
 0x236   : > { %v1558_v55 = vpop.f32.mrf.mxu3 }
 0x237   : > { %v1587_v61 = vadd.f32 %v3196_v41, %v1571_v52 }
 0x238   : > { %v1519_v43 = vpop.f32.mrf.mxu2 }
 0x239   : > { %v1520_v62 = vadd.f32 %v1519_v43, %v1480_v35  ;;  %v1599_v4 = vmax.f32 %v1587_v61, 0.0 }
 0x23b   : > { %v1559_v58 = vadd.f32 %v1558_v55, %v1520_v62 }
 0x23d   : > { %v1572_v30 = vmax.f32 %v1322_v48, %v1559_v58 }
 0x23f   : > { %v1588_v42 = vadd.f32 %v3196_v41, %v1572_v30 }
 0x241   : > { %v1600_v32 = vmax.f32 %v1588_v42, 0.0 }
 0x243   : > { %v2376_v34 = vpack.c.bf16 %v1600_v32, %v1599_v4 }
 0x245   : > { %2382 = vst [vmem:[%s3207_s17 + $0x28] sm:$0xff] %v2376_v34  }
 0x246 PF: > { %p10_p9 = scmp.ge.s32.totalorder %s2473_s16, 4   ;;  %s3275_s12 = smov %s2430_s13 }
 0x247   : > { %s3276_s13 = smov %s2482_s19  ;;  %s3277_s14 = smov %s2473_s16 }
 0x248   :  { %12 = sbr.rel (!%p10_p9) target bundleno = 2 (0x2), region = 102 }

// kernel: net_forward.3
= control target key start
LH: loop header
LB: loop body
LE: loop exit
PB: predicated region body
PF: predicated region fallthrough
CT: control target
= control target key end

     0   :  { %12 = vsyncpa [#allocation4], 0  ;;  %s5637_s0 = inlined_call_operand.vmem [shape: bf16[4,16,16,256], index: 0, kind: input, shape index: {}]   ;;  %s5638_s1 = inlined_call_operand.vmem [shape: bf16[256,128], index: 1, kind: input, shape index: {}]   ;;  %s5639_s2 = inlined_call_operand.vmem [shape: f32[1,128], index: 2, kind: input, shape index: {}]   ;;  %s5640_s3 = inlined_call_operand.vmem [shape: bf16[16,128,128], index: 3, kind: input, shape index: {}]   ;;  %s5641_s4 = inlined_call_operand.vmem [shape: f32[1,128], index: 4, kind: input, shape index: {}]   ;;  %s5642_s5 = inlined_call_operand.vmem [shape: bf16[128,128], index: 5, kind: input, shape index: {}]   ;;  %s5643_s6 = inlined_call_operand.vmem [shape: f32[1,128], index: 6, kind: input, shape index: {}]   ;;  %s5644_s7 = inlined_call_operand.hbm [shape: f32[16,128], index: 7, kind: output, shape index: {}]  }
   0x1   :  { %14 = vsyncpa [#allocation4 + $0x1], 0  ;;  %s4545_s24 = smov 0   ;;  %s4547_s25 = smov 0  }
   0x2   :  { %s4549_s26 = smov 0   ;;  %s4551_s27 = smov 0  }
   0x3 LB: > { %s3012_s28 = sadd.s32 4294967295, %s4503_s27   ;;  %s3013_s29 = sadd.s32 4294967294, %s4503_s27   ;;  %s4503_s27 = sphi %s4551_s27, %s5651_s27   ;;  %s4499_s26 = sphi %s4549_s26, %s5650_s26   ;;  %s4495_s25 = sphi %s4547_s25, %s5649_s25   ;;  %s4491_s24 = sphi %s4545_s24, %s5648_s24  }
   0x4   : > { %s4568_s30 = sadd.s32 1, %s4503_s27   ;;  %s27_s8 = sadd.s32 1, %s4499_s26 }
   0x5   : > { %s24_s9 = ssub.s32 %s4503_s27, %s4568_s30  ;;  %p34_p0 = scmp.ne.s32.totalorder %s4499_s26, %s4495_s25 }
   0x6   : > { %p25_p1 = scmp.eq.s32.totalorder %s24_s9, 0  ;;  %p35_p2 = scmp.eq.s32.totalorder %s4503_s27, 0 }
   0x7   : > { %p190_p3 = scmp.eq.s32.totalorder %s3012_s28, 1  ;;  %p195_p4 = scmp.ne.s32.totalorder %s4495_s25, %s4491_s24 }
   0x8   : > { %s4581_s10 = scalar_select %p25_p1, %s4499_s26, %s27_s8  }
   0x9   : > { %p36_p5 = por %p35_p2, %p34_p0  ;;  %p4583_p6 = por %p190_p3, %p34_p0 }
   0xa   : > { %p196_p7 = scmp.eq.s32.totalorder %s3013_s29, 1  ;;  %p3015_p9 = scmp.ge.s32.totalorder %s4503_s27, 2 }
   0xc   : > { %p4587_p8 = por %p196_p7, %p195_p4  ;;  %230 = sbr.rel (%p3015_p9) target bundleno = 85 (0x55), region = 40 }
  0x11   : > { %233 = sbr.rel (!%p36_p5) target bundleno = 85 (0x55), region = 44  ;;  %s235_s13 = sand.u32 (%p36_p5), 1, %s4499_s26  }
  0x12   : > { %s4178_s14 = sshll.u32 (%p36_p5), %s4503_s27, 3  ;;  %s3016_s15 = sshll.u32 (%p36_p5), %s235_s13, 9 }
  0x13   : > { %s4599_s18 = scalar_lea.vmem (%p36_p5), %s5637_s0, %s4178_s14  ;;  %s4604_s19 = scalar_lea.vmem (%p36_p5), [#allocation2], %s3016_s15 }
  0x14   : > { %v395_v0 = vld [vmem:[%s4599_s18] sm:$0xff] (%p36_p5)  ;;  %v397_v1 = vld [vmem:[%s4599_s18 + $0x10] sm:$0xff] (%p36_p5) }
  0x15   : > { %v399_v2 = vld [vmem:[%s4599_s18 + $0x20] sm:$0xff] (%p36_p5)  ;;  %396 = vst [vmem:[%s4604_s19] sm:$0xff] (%p36_p5), %v395_v0  ;;  %v401_v3 = vld [vmem:[%s4599_s18 + $0x30] sm:$0xff] (%p36_p5) }
  0x16   : > { %398 = vst [vmem:[%s4604_s19 + $0x8] sm:$0xff] %v397_v1  ;;  %v403_v4 = vld [vmem:[%s4599_s18 + $0x40] sm:$0xff]  ;;  %v405_v5 = vld [vmem:[%s4599_s18 + $0x50] sm:$0xff] }
  0x17   : > { %400 = vst [vmem:[%s4604_s19 + $0x10] sm:$0xff] %v399_v2  ;;  %v407_v6 = vld [vmem:[%s4599_s18 + $0x60] sm:$0xff]  ;;  %v409_v7 = vld [vmem:[%s4599_s18 + $0x70] sm:$0xff] }
  0x18   : > { %402 = vst [vmem:[%s4604_s19 + $0x18] sm:$0xff] %v401_v3  ;;  %v411_v8 = vld [vmem:[%s4599_s18 + $0x80] sm:$0xff]  ;;  %v413_v9 = vld [vmem:[%s4599_s18 + $0x90] sm:$0xff] }
  0x19   : > { %404 = vst [vmem:[%s4604_s19 + $0x20] sm:$0xff] %v403_v4  ;;  %v415_v10 = vld [vmem:[%s4599_s18 + $0xa0] sm:$0xff]  ;;  %v417_v11 = vld [vmem:[%s4599_s18 + $0xb0] sm:$0xff] }
  0x1a   : > { %406 = vst [vmem:[%s4604_s19 + $0x28] sm:$0xff] %v405_v5  ;;  %v419_v12 = vld [vmem:[%s4599_s18 + $0xc0] sm:$0xff]  ;;  %v421_v13 = vld [vmem:[%s4599_s18 + $0xd0] sm:$0xff] }
  0x1b   : > { %408 = vst [vmem:[%s4604_s19 + $0x30] sm:$0xff] %v407_v6  ;;  %v423_v14 = vld [vmem:[%s4599_s18 + $0xe0] sm:$0xff]  ;;  %v425_v15 = vld [vmem:[%s4599_s18 + $0xf0] sm:$0xff] }
  0x1c   : > { %410 = vst [vmem:[%s4604_s19 + $0x38] sm:$0xff] %v409_v7  ;;  %v427_v16 = vld [vmem:[%s4599_s18 + $0x100] sm:$0xff]  ;;  %v429_v17 = vld [vmem:[%s4599_s18 + $0x110] sm:$0xff] }
  0x1d   : > { %412 = vst [vmem:[%s4604_s19 + $0x40] sm:$0xff] %v411_v8  ;;  %v431_v18 = vld [vmem:[%s4599_s18 + $0x120] sm:$0xff]  ;;  %v433_v19 = vld [vmem:[%s4599_s18 + $0x130] sm:$0xff] }
  0x1e   : > { %414 = vst [vmem:[%s4604_s19 + $0x48] sm:$0xff] %v413_v9  ;;  %v435_v20 = vld [vmem:[%s4599_s18 + $0x140] sm:$0xff]  ;;  %v437_v21 = vld [vmem:[%s4599_s18 + $0x150] sm:$0xff] }
  0x1f   : > { %416 = vst [vmem:[%s4604_s19 + $0x50] sm:$0xff] %v415_v10  ;;  %v439_v22 = vld [vmem:[%s4599_s18 + $0x160] sm:$0xff]  ;;  %v441_v23 = vld [vmem:[%s4599_s18 + $0x170] sm:$0xff] }
  0x20   : > { %418 = vst [vmem:[%s4604_s19 + $0x58] sm:$0xff] %v417_v11  ;;  %v443_v24 = vld [vmem:[%s4599_s18 + $0x180] sm:$0xff]  ;;  %v445_v25 = vld [vmem:[%s4599_s18 + $0x190] sm:$0xff] }
  0x21   : > { %420 = vst [vmem:[%s4604_s19 + $0x60] sm:$0xff] %v419_v12  ;;  %v447_v26 = vld [vmem:[%s4599_s18 + $0x1a0] sm:$0xff]  ;;  %v449_v27 = vld [vmem:[%s4599_s18 + $0x1b0] sm:$0xff] }
  0x22   : > { %422 = vst [vmem:[%s4604_s19 + $0x68] sm:$0xff] %v421_v13  ;;  %v451_v28 = vld [vmem:[%s4599_s18 + $0x1c0] sm:$0xff]  ;;  %v453_v29 = vld [vmem:[%s4599_s18 + $0x1d0] sm:$0xff] }
  0x23   : > { %424 = vst [vmem:[%s4604_s19 + $0x70] sm:$0xff] %v423_v14  ;;  %v455_v30 = vld [vmem:[%s4599_s18 + $0x1e0] sm:$0xff]  ;;  %v457_v31 = vld [vmem:[%s4599_s18 + $0x1f0] sm:$0xff] }
  0x24   : > { %426 = vst [vmem:[%s4604_s19 + $0x78] sm:$0xff] %v425_v15  ;;  %v459_v32 = vld [vmem:[%s4599_s18 + $0x200] sm:$0xff]  ;;  %v461_v33 = vld [vmem:[%s4599_s18 + $0x210] sm:$0xff] }
  0x25   : > { %428 = vst [vmem:[%s4604_s19 + $0x80] sm:$0xff] %v427_v16  ;;  %v463_v34 = vld [vmem:[%s4599_s18 + $0x220] sm:$0xff]  ;;  %v465_v35 = vld [vmem:[%s4599_s18 + $0x230] sm:$0xff] }
  0x26   : > { %430 = vst [vmem:[%s4604_s19 + $0x88] sm:$0xff] %v429_v17  ;;  %v467_v36 = vld [vmem:[%s4599_s18 + $0x240] sm:$0xff]  ;;  %v469_v37 = vld [vmem:[%s4599_s18 + $0x250] sm:$0xff] }
  0x27   : > { %432 = vst [vmem:[%s4604_s19 + $0x90] sm:$0xff] %v431_v18  ;;  %v471_v38 = vld [vmem:[%s4599_s18 + $0x260] sm:$0xff]  ;;  %v473_v39 = vld [vmem:[%s4599_s18 + $0x270] sm:$0xff] }
  0x28   : > { %434 = vst [vmem:[%s4604_s19 + $0x98] sm:$0xff] %v433_v19  ;;  %v475_v40 = vld [vmem:[%s4599_s18 + $0x280] sm:$0xff]  ;;  %v477_v41 = vld [vmem:[%s4599_s18 + $0x290] sm:$0xff] }
  0x29   : > { %436 = vst [vmem:[%s4604_s19 + $0xa0] sm:$0xff] %v435_v20  ;;  %v479_v42 = vld [vmem:[%s4599_s18 + $0x2a0] sm:$0xff]  ;;  %v481_v43 = vld [vmem:[%s4599_s18 + $0x2b0] sm:$0xff] }
  0x2a   : > { %438 = vst [vmem:[%s4604_s19 + $0xa8] sm:$0xff] %v437_v21  ;;  %v483_v44 = vld [vmem:[%s4599_s18 + $0x2c0] sm:$0xff]  ;;  %v485_v45 = vld [vmem:[%s4599_s18 + $0x2d0] sm:$0xff] }
  0x2b   : > { %440 = vst [vmem:[%s4604_s19 + $0xb0] sm:$0xff] %v439_v22  ;;  %v487_v46 = vld [vmem:[%s4599_s18 + $0x2e0] sm:$0xff]  ;;  %v489_v47 = vld [vmem:[%s4599_s18 + $0x2f0] sm:$0xff] }
  0x2c   : > { %442 = vst [vmem:[%s4604_s19 + $0xb8] sm:$0xff] %v441_v23  ;;  %v491_v48 = vld [vmem:[%s4599_s18 + $0x300] sm:$0xff]  ;;  %v493_v49 = vld [vmem:[%s4599_s18 + $0x310] sm:$0xff] }
  0x2d   : > { %444 = vst [vmem:[%s4604_s19 + $0xc0] sm:$0xff] %v443_v24  ;;  %v495_v50 = vld [vmem:[%s4599_s18 + $0x320] sm:$0xff]  ;;  %v497_v51 = vld [vmem:[%s4599_s18 + $0x330] sm:$0xff] }
  0x2e   : > { %446 = vst [vmem:[%s4604_s19 + $0xc8] sm:$0xff] %v445_v25  ;;  %v499_v52 = vld [vmem:[%s4599_s18 + $0x340] sm:$0xff]  ;;  %v501_v53 = vld [vmem:[%s4599_s18 + $0x350] sm:$0xff] }
  0x2f   : > { %448 = vst [vmem:[%s4604_s19 + $0xd0] sm:$0xff] %v447_v26  ;;  %v503_v54 = vld [vmem:[%s4599_s18 + $0x360] sm:$0xff]  ;;  %v505_v55 = vld [vmem:[%s4599_s18 + $0x370] sm:$0xff] }
  0x30   : > { %450 = vst [vmem:[%s4604_s19 + $0xd8] sm:$0xff] %v449_v27  ;;  %v507_v56 = vld [vmem:[%s4599_s18 + $0x380] sm:$0xff]  ;;  %v509_v57 = vld [vmem:[%s4599_s18 + $0x390] sm:$0xff] }
  0x31   : > { %452 = vst [vmem:[%s4604_s19 + $0xe0] sm:$0xff] %v451_v28  ;;  %v511_v58 = vld [vmem:[%s4599_s18 + $0x3a0] sm:$0xff]  ;;  %v513_v59 = vld [vmem:[%s4599_s18 + $0x3b0] sm:$0xff] }
  0x32   : > { %454 = vst [vmem:[%s4604_s19 + $0xe8] sm:$0xff] %v453_v29  ;;  %v515_v60 = vld [vmem:[%s4599_s18 + $0x3c0] sm:$0xff]  ;;  %v517_v61 = vld [vmem:[%s4599_s18 + $0x3d0] sm:$0xff] }
  0x33   : > { %456 = vst [vmem:[%s4604_s19 + $0xf0] sm:$0xff] %v455_v30  ;;  %v519_v62 = vld [vmem:[%s4599_s18 + $0x3e0] sm:$0xff]  ;;  %v521_v63 = vld [vmem:[%s4599_s18 + $0x3f0] sm:$0xff] }
  0x34   : > { %458 = vst [vmem:[%s4604_s19 + $0xf8] sm:$0xff] %v457_v31 }
  0x35   : > { %460 = vst [vmem:[%s4604_s19 + $0x100] sm:$0xff] %v459_v32 }
  0x36   : > { %462 = vst [vmem:[%s4604_s19 + $0x108] sm:$0xff] %v461_v33 }
  0x37   : > { %464 = vst [vmem:[%s4604_s19 + $0x110] sm:$0xff] %v463_v34 }
  0x38   : > { %466 = vst [vmem:[%s4604_s19 + $0x118] sm:$0xff] %v465_v35 }
  0x39   : > { %468 = vst [vmem:[%s4604_s19 + $0x120] sm:$0xff] %v467_v36 }
  0x3a   : > { %470 = vst [vmem:[%s4604_s19 + $0x128] sm:$0xff] %v469_v37 }
  0x3b   : > { %472 = vst [vmem:[%s4604_s19 + $0x130] sm:$0xff] %v471_v38 }
  0x3c   : > { %474 = vst [vmem:[%s4604_s19 + $0x138] sm:$0xff] %v473_v39 }
  0x3d   : > { %476 = vst [vmem:[%s4604_s19 + $0x140] sm:$0xff] %v475_v40 }
  0x3e   : > { %478 = vst [vmem:[%s4604_s19 + $0x148] sm:$0xff] %v477_v41 }
  0x3f   : > { %480 = vst [vmem:[%s4604_s19 + $0x150] sm:$0xff] %v479_v42 }
  0x40   : > { %482 = vst [vmem:[%s4604_s19 + $0x158] sm:$0xff] %v481_v43 }
  0x41   : > { %484 = vst [vmem:[%s4604_s19 + $0x160] sm:$0xff] %v483_v44 }
  0x42   : > { %486 = vst [vmem:[%s4604_s19 + $0x168] sm:$0xff] %v485_v45 }
  0x43   : > { %488 = vst [vmem:[%s4604_s19 + $0x170] sm:$0xff] %v487_v46 }
  0x44   : > { %490 = vst [vmem:[%s4604_s19 + $0x178] sm:$0xff] %v489_v47 }
  0x45   : > { %492 = vst [vmem:[%s4604_s19 + $0x180] sm:$0xff] %v491_v48 }
  0x46   : > { %494 = vst [vmem:[%s4604_s19 + $0x188] sm:$0xff] %v493_v49 }
  0x47   : > { %496 = vst [vmem:[%s4604_s19 + $0x190] sm:$0xff] %v495_v50 }
  0x48   : > { %498 = vst [vmem:[%s4604_s19 + $0x198] sm:$0xff] %v497_v51 }
  0x49   : > { %500 = vst [vmem:[%s4604_s19 + $0x1a0] sm:$0xff] %v499_v52 }
  0x4a   : > { %502 = vst [vmem:[%s4604_s19 + $0x1a8] sm:$0xff] %v501_v53 }
  0x4b   : > { %504 = vst [vmem:[%s4604_s19 + $0x1b0] sm:$0xff] %v503_v54 }
  0x4c   : > { %506 = vst [vmem:[%s4604_s19 + $0x1b8] sm:$0xff] %v505_v55 }
  0x4d   : > { %508 = vst [vmem:[%s4604_s19 + $0x1c0] sm:$0xff] %v507_v56 }
  0x4e   : > { %510 = vst [vmem:[%s4604_s19 + $0x1c8] sm:$0xff] %v509_v57 }
  0x4f   : > { %512 = vst [vmem:[%s4604_s19 + $0x1d0] sm:$0xff] %v511_v58 }
  0x50   : > { %514 = vst [vmem:[%s4604_s19 + $0x1d8] sm:$0xff] %v513_v59 }
  0x51   : > { %516 = vst [vmem:[%s4604_s19 + $0x1e0] sm:$0xff] %v515_v60 }
  0x52   : > { %518 = vst [vmem:[%s4604_s19 + $0x1e8] sm:$0xff] %v517_v61 }
  0x53   : > { %520 = vst [vmem:[%s4604_s19 + $0x1f0] sm:$0xff] %v519_v62 }
  0x54   : > { %522 = vst [vmem:[%s4604_s19 + $0x1f8] sm:$0xff] %v521_v63 }
  0x55 PF: > { %p3019_p10 = scmp.ge.s32.totalorder %s4503_s27, 1  ;;  %p527_p11 = scmp.lt.s32.totalorder %s4503_s27, 3 }
  0x57   : > { %p528_p12 = pnand %p3019_p10, %p527_p11 }
  0x58   : > { %s4800_s9 = sand.u32 (!%p528_p12), 1, %s4495_s25   ;;  %s4175_s22 = sshll.u32 (!%p528_p12), %s3012_s28, 3 }
  0x59   : > { %531 = sbr.rel (%p528_p12) target bundleno = 1044 (0x414), region = 82  ;;  %s3020_s17 = sshll.u32 (!%p528_p12), %s4800_s9, 9 }
  0x5a   : > { %s4841_s13 = scalar_lea.vmem (!%p528_p12), [#allocation2], %s3020_s17  ;;  %s2943_s8 = scalar_lea.hbm (!%p528_p12), %s5644_s7, %s4175_s22 }
  0x5b   : > { %s2947_s16 = sshll.u32 (!%p528_p12), %s2943_s8, 4  ;;  %s2933_s17 = scalar_lea.sflag (!%p528_p12), [#allocation4], %s4800_s9  ;;  %s2948_s16 = int_to_ptr.hbm [resolvable:$true] %s2947_s16 }
  0x5c   : > { %s4455_s18 = sshra.s32 (!%p528_p12), %s2948_s16, 4  ;;  %s4461_s21 = scalar_lea.hbm (!%p528_p12), %s5644_s7, 16  ;;  %s4456_s18 = int_to_ptr.hbm [resolvable:$true] %s4455_s18 }
  0x5d   : > { %s4457_s19 = scalar_lea.hbm (!%p528_p12), %s4456_s18, 8  ;;  %p4462_p2 = scmp.lt.s32.totalorder (!%p528_p12), %s4456_s18, %s5644_s7 }
  0x5e   : > { %v4736_v0 = vld [vmem:[%s5638_s1 + $0x38] sm:$0xff]  ;;  %v4748_v2 = vld [vmem:[%s5638_s1 + $0x30] sm:$0xff]  ;;  %v4762_v4 = vld [vmem:[%s5638_s1 + $0x28] sm:$0xff]  ;;  %p4458_p13 = scmp.ne.s32.totalorder %s4456_s18, %s4457_s19  ;;  %p4463_p3 = scmp.lt.s32.totalorder %s4461_s21, %s4457_s19 }
  0x5f   : > { %v4741_v1 = vld [vmem:[%s5638_s1 + $0x78] sm:$0xff]  ;;  %789 = vmatpush.bf16.msra.mxu0 %v4736_v0  ;;  %v4753_v3 = vld [vmem:[%s5638_s1 + $0x70] sm:$0xff]  ;;  %984 = vmatpush.bf16.msra.mxu2 %v4736_v0  ;;  %v4767_v5 = vld [vmem:[%s5638_s1 + $0x68] sm:$0xff] }
  0x60   : > { %838 = vmatpush.bf16.msra.mxu1 %v4741_v1  ;;  %1033 = vmatpush.bf16.msra.mxu3 %v4741_v1  ;;  %v4776_v6 = vld [vmem:[%s5638_s1 + $0x20] sm:$0xff]  ;;  %v4790_v8 = vld [vmem:[%s5638_s1 + $0x18] sm:$0xff]  ;;  %v4807_v10 = vld [vmem:[%s5638_s1 + $0x10] sm:$0xff]  ;;  %p4459_p0 = pnand %p4458_p13, %p4583_p6  ;;  %p4464_p4 = por %p4463_p3, %p4462_p2 }
  0x61   : > { %v4781_v7 = vld [vmem:[%s5638_s1 + $0x60] sm:$0xff]  ;;  %v4795_v9 = vld [vmem:[%s5638_s1 + $0x58] sm:$0xff]  ;;  %v4812_v11 = vld [vmem:[%s5638_s1 + $0x50] sm:$0xff] }
  0x62   : > { %v4822_v12 = vld [vmem:[%s5638_s1 + $0x8] sm:$0xff]  ;;  %v4834_v14 = vld [vmem:[%s5638_s1] sm:$0xff]  ;;  %v3032_v28 = vld [vmem:[%s4841_s13 + $0x10] sm:$0xf]  ;;  %p4460_p1 = pneg %p4459_p0 }
  0x63   : > { %790 = vmatpush.bf16.msra.mxu0 %v4748_v2  ;;  %985 = vmatpush.bf16.msra.mxu2 %v4748_v2  ;;  %v4827_v13 = vld [vmem:[%s5638_s1 + $0x48] sm:$0xff]  ;;  %v4839_v15 = vld [vmem:[%s5638_s1 + $0x40] sm:$0xff]  ;;  %v4198_v29 = vld [vmem:[%s4841_s13 + $0x14] sm:$0xf0] }
  0x64   : > { %839 = vmatpush.bf16.msra.mxu1 %v4753_v3  ;;  %1034 = vmatpush.bf16.msra.mxu3 %v4753_v3  ;;  %v3024_v16 = vld [vmem:[%s4841_s13] sm:$0xf]  ;;  %v4196_v17 = vld [vmem:[%s4841_s13 + $0x4] sm:$0xf0]  ;;  %v4195_v18 = vld [vmem:[%s4841_s13 + $0x4] sm:$0xf]  ;;  %v3033_v36 = vor.u32 %v4198_v29, %v3032_v28  ;;  %p4465_p5 = pnand %p4464_p4, %p4460_p1 }
  0x65   : > { %v3026_v19 = vld [vmem:[%s4841_s13 + $0x8] sm:$0xf0]  ;;  %v3168_v20 = vld [vmem:[%s4841_s13 + $0x80] sm:$0xf]  ;;  %v4212_v21 = vld [vmem:[%s4841_s13 + $0x84] sm:$0xf0]  ;;  %v3025_v24 = vor.u32 %v4196_v17, %v3024_v16 }
  0x66   : > { %v4211_v22 = vld [vmem:[%s4841_s13 + $0x84] sm:$0xf]  ;;  %v3170_v23 = vld [vmem:[%s4841_s13 + $0x88] sm:$0xf0]  ;;  %v3029_v25 = vor.u32 %v4195_v18, %v3026_v19  ;;  %v3169_v26 = vor.u32 %v4212_v21, %v3168_v20  ;;  %v4197_v30 = vld [vmem:[%s4841_s13 + $0x14] sm:$0xf] }
  0x67   : > { %791 = vmatpush.bf16.msra.mxu0 %v4762_v4  ;;  %986 = vmatpush.bf16.msra.mxu2 %v4762_v4  ;;  %v3173_v27 = vor.u32 %v4211_v22, %v3170_v23  ;;  %v3034_v31 = vld [vmem:[%s4841_s13 + $0x18] sm:$0xf0]  ;;  %v3176_v32 = vld [vmem:[%s4841_s13 + $0x90] sm:$0xf]  ;;  %v4214_v33 = vld [vmem:[%s4841_s13 + $0x94] sm:$0xf0] }
  0x68   : > { %840 = vmatpush.bf16.msra.mxu1 %v4767_v5  ;;  %1035 = vmatpush.bf16.msra.mxu3 %v4767_v5  ;;  %v4213_v34 = vld [vmem:[%s4841_s13 + $0x94] sm:$0xf]  ;;  %v3178_v35 = vld [vmem:[%s4841_s13 + $0x98] sm:$0xf0]  ;;  %v3037_v37 = vor.u32 %v4197_v30, %v3034_v31  ;;  %v3177_v38 = vor.u32 %v4214_v33, %v3176_v32  ;;  %v3040_v40 = vld [vmem:[%s4841_s13 + $0x20] sm:$0xf] }
  0x69   : > { %v3181_v39 = vor.u32 %v4213_v34, %v3178_v35  ;;  %v4200_v41 = vld [vmem:[%s4841_s13 + $0x24] sm:$0xf0]  ;;  %v4199_v42 = vld [vmem:[%s4841_s13 + $0x24] sm:$0xf]  ;;  %v3042_v43 = vld [vmem:[%s4841_s13 + $0x28] sm:$0xf0] }
  0x6a   : > { %v3184_v44 = vld [vmem:[%s4841_s13 + $0xa0] sm:$0xf]  ;;  %v4216_v45 = vld [vmem:[%s4841_s13 + $0xa4] sm:$0xf0]  ;;  %v4215_v46 = vld [vmem:[%s4841_s13 + $0xa4] sm:$0xf]  ;;  %v3041_v48 = vor.u32 %v4200_v41, %v3040_v40  ;;  %v3045_v49 = vor.u32 %v4199_v42, %v3042_v43 }
  0x6b   : > { %792 = vmatpush.bf16.msra.mxu0 %v4776_v6  ;;  %987 = vmatpush.bf16.msra.mxu2 %v4776_v6  ;;  %v3186_v47 = vld [vmem:[%s4841_s13 + $0xa8] sm:$0xf0]  ;;  %v3185_v50 = vor.u32 %v4216_v45, %v3184_v44  ;;  %v3048_v52 = vld [vmem:[%s4841_s13 + $0x30] sm:$0xf]  ;;  %v4202_v53 = vld [vmem:[%s4841_s13 + $0x34] sm:$0xf0] }
  0x6c   : > { %841 = vmatpush.bf16.msra.mxu1 %v4781_v7  ;;  %1036 = vmatpush.bf16.msra.mxu3 %v4781_v7  ;;  %v3189_v51 = vor.u32 %v4215_v46, %v3186_v47  ;;  %v4201_v54 = vld [vmem:[%s4841_s13 + $0x34] sm:$0xf]  ;;  %v3050_v55 = vld [vmem:[%s4841_s13 + $0x38] sm:$0xf0]  ;;  %v3192_v56 = vld [vmem:[%s4841_s13 + $0xb0] sm:$0xf]  ;;  %v3049_v60 = vor.u32 %v4202_v53, %v3048_v52 }
  0x6d   : > { %v4218_v57 = vld [vmem:[%s4841_s13 + $0xb4] sm:$0xf0]  ;;  %v4217_v58 = vld [vmem:[%s4841_s13 + $0xb4] sm:$0xf]  ;;  %v3194_v59 = vld [vmem:[%s4841_s13 + $0xb8] sm:$0xf0]  ;;  %v3053_v61 = vor.u32 %v4201_v54, %v3050_v55 }
  0x6e   : > { %v3193_v62 = vor.u32 %v4218_v57, %v3192_v56  ;;  %v3197_v63 = vor.u32 %v4217_v58, %v3194_v59  ;;  %v3208_v16 = vld [vmem:[%s4841_s13 + $0xd0] sm:$0xf]  ;;  %v4222_v17 = vld [vmem:[%s4841_s13 + $0xd4] sm:$0xf0]  ;;  %v4221_v18 = vld [vmem:[%s4841_s13 + $0xd4] sm:$0xf] }
  0x6f   : > { %793 = vmatpush.bf16.msra.mxu0 %v4790_v8  ;;  %988 = vmatpush.bf16.msra.mxu2 %v4790_v8  ;;  %v3210_v19 = vld [vmem:[%s4841_s13 + $0xd8] sm:$0xf0]  ;;  %v3209_v22 = vor.u32 %v4222_v17, %v3208_v16  ;;  %v3216_v28 = vld [vmem:[%s4841_s13 + $0xe0] sm:$0xf]  ;;  %v4224_v29 = vld [vmem:[%s4841_s13 + $0xe4] sm:$0xf0] }
  0x70   : > { %842 = vmatpush.bf16.msra.mxu1 %v4795_v9  ;;  %1037 = vmatpush.bf16.msra.mxu3 %v4795_v9  ;;  %v3213_v23 = vor.u32 %v4221_v18, %v3210_v19  ;;  %v4223_v30 = vld [vmem:[%s4841_s13 + $0xe4] sm:$0xf]  ;;  %v3218_v31 = vld [vmem:[%s4841_s13 + $0xe8] sm:$0xf0]  ;;  %v3217_v34 = vor.u32 %v4224_v29, %v3216_v28  ;;  %v3224_v40 = vld [vmem:[%s4841_s13 + $0xf0] sm:$0xf] }
  0x71   : > { %v3221_v35 = vor.u32 %v4223_v30, %v3218_v31  ;;  %v4226_v41 = vld [vmem:[%s4841_s13 + $0xf4] sm:$0xf0]  ;;  %v4225_v42 = vld [vmem:[%s4841_s13 + $0xf4] sm:$0xf]  ;;  %v3226_v43 = vld [vmem:[%s4841_s13 + $0xf8] sm:$0xf0] }
  0x72   : > { %v3225_v46 = vor.u32 %v4226_v41, %v3224_v40  ;;  %v3229_v47 = vor.u32 %v4225_v42, %v3226_v43  ;;  %v3328_v52 = vld [vmem:[%s4841_s13 + $0x180] sm:$0xf]  ;;  %v4244_v53 = vld [vmem:[%s4841_s13 + $0x184] sm:$0xf0]  ;;  %v4243_v54 = vld [vmem:[%s4841_s13 + $0x184] sm:$0xf] }
  0x73   : > { %794 = vmatpush.bf16.msra.mxu0 %v4807_v10  ;;  %989 = vmatpush.bf16.msra.mxu2 %v4807_v10  ;;  %v3330_v55 = vld [vmem:[%s4841_s13 + $0x188] sm:$0xf0] }
  0x74   : > { %843 = vmatpush.bf16.msra.mxu1 %v4812_v11  ;;  %1038 = vmatpush.bf16.msra.mxu3 %v4812_v11 }
  0x77   : > { %795 = vmatpush.bf16.msra.mxu0 %v4822_v12  ;;  %990 = vmatpush.bf16.msra.mxu2 %v4822_v12 }
  0x78   : > { %844 = vmatpush.bf16.msra.mxu1 %v4827_v13  ;;  %1039 = vmatpush.bf16.msra.mxu3 %v4827_v13 }
  0x7b   : > { %796 = vmatpush.bf16.msra.mxu0 %v4834_v14  ;;  %991 = vmatpush.bf16.msra.mxu2 %v4834_v14 }
  0x7c   : > { %845 = vmatpush.bf16.msra.mxu1 %v4839_v15  ;;  %1040 = vmatpush.bf16.msra.mxu3 %v4839_v15 }
  0x7e   : > { %797 = vmatmul.bf16.vlgmr.msra.gmra.mxu0 %v3025_v24  ;;  %992 = vmatmul.bf16.vlgmr.msra.gmra.mxu2 %v3169_v26  ;;  %v3072_v24 = vld [vmem:[%s4841_s13 + $0x60] sm:$0xf]  ;;  %v4207_v26 = vld [vmem:[%s4841_s13 + $0x64] sm:$0xf] }
  0x7f   : > { %1406 = vmatpush.bf16.msrb.mxu2 %v4736_v0  ;;  %846 = vmatmul.bf16.vlgmr.msra.gmra.mxu1 %v3029_v25  ;;  %v4208_v25 = vld [vmem:[%s4841_s13 + $0x64] sm:$0xf0] }
  0x80   : > { %1455 = vmatpush.bf16.msrb.mxu3 %v4741_v1  ;;  %1195 = vmatpush.bf16.msrb.mxu0 %v4736_v0  ;;  %v3056_v0 = vld [vmem:[%s4841_s13 + $0x40] sm:$0xf]  ;;  %v3073_v32 = vor.u32 %v4208_v25, %v3072_v24 }
  0x81   : > { %1041 = vmatmul.bf16.vlgmr.msra.gmra.mxu3 %v3173_v27  ;;  %1244 = vmatpush.bf16.msrb.mxu1 %v4741_v1  ;;  %v4204_v1 = vld [vmem:[%s4841_s13 + $0x44] sm:$0xf0]  ;;  %v3074_v27 = vld [vmem:[%s4841_s13 + $0x68] sm:$0xf0] }
  0x82   : > { %v3077_v33 = vor.u32 %v4207_v26, %v3074_v27 }
  0x83   : > { %1407 = vmatpush.bf16.msrb.mxu2 %v4748_v2 }
  0x84   : > { %1456 = vmatpush.bf16.msrb.mxu3 %v4753_v3  ;;  %1196 = vmatpush.bf16.msrb.mxu0 %v4748_v2  ;;  %v4203_v2 = vld [vmem:[%s4841_s13 + $0x44] sm:$0xf] }
  0x85   : > { %1245 = vmatpush.bf16.msrb.mxu1 %v4753_v3  ;;  %v3058_v3 = vld [vmem:[%s4841_s13 + $0x48] sm:$0xf0] }
  0x87   : > { %1408 = vmatpush.bf16.msrb.mxu2 %v4762_v4 }
  0x88   : > { %1457 = vmatpush.bf16.msrb.mxu3 %v4767_v5  ;;  %1197 = vmatpush.bf16.msrb.mxu0 %v4762_v4  ;;  %v3200_v4 = vld [vmem:[%s4841_s13 + $0xc0] sm:$0xf] }
  0x89   : > { %1246 = vmatpush.bf16.msrb.mxu1 %v4767_v5  ;;  %v4220_v5 = vld [vmem:[%s4841_s13 + $0xc4] sm:$0xf0] }
  0x8b   : > { %1409 = vmatpush.bf16.msrb.mxu2 %v4776_v6 }
  0x8c   : > { %1458 = vmatpush.bf16.msrb.mxu3 %v4781_v7  ;;  %1198 = vmatpush.bf16.msrb.mxu0 %v4776_v6  ;;  %v4219_v6 = vld [vmem:[%s4841_s13 + $0xc4] sm:$0xf] }
  0x8d   : > { %1247 = vmatpush.bf16.msrb.mxu1 %v4781_v7  ;;  %v3202_v7 = vld [vmem:[%s4841_s13 + $0xc8] sm:$0xf0] }
  0x8e   : > { %802 = vmatmul.bf16.gmra.mxu0 %v3033_v36  ;;  %997 = vmatmul.bf16.gmra.mxu2 %v3177_v38  ;;  %v3080_v36 = vld [vmem:[%s4841_s13 + $0x70] sm:$0xf]  ;;  %v4209_v38 = vld [vmem:[%s4841_s13 + $0x74] sm:$0xf] }
  0x8f   : > { %1410 = vmatpush.bf16.msrb.mxu2 %v4790_v8  ;;  %851 = vmatmul.bf16.gmra.mxu1 %v3037_v37  ;;  %v4210_v37 = vld [vmem:[%s4841_s13 + $0x74] sm:$0xf0] }
  0x90   : > { %1459 = vmatpush.bf16.msrb.mxu3 %v4795_v9  ;;  %1199 = vmatpush.bf16.msrb.mxu0 %v4790_v8  ;;  %v3057_v8 = vor.u32 %v4204_v1, %v3056_v0  ;;  %v3081_v44 = vor.u32 %v4210_v37, %v3080_v36  ;;  %v3344_v36 = vld [vmem:[%s4841_s13 + $0x1a0] sm:$0xf]  ;;  %v4248_v37 = vld [vmem:[%s4841_s13 + $0x1a4] sm:$0xf0] }
  0x91   : > { %1046 = vmatmul.bf16.gmra.mxu3 %v3181_v39  ;;  %1248 = vmatpush.bf16.msrb.mxu1 %v4795_v9  ;;  %v3061_v9 = vor.u32 %v4203_v2, %v3058_v3  ;;  %v3082_v39 = vld [vmem:[%s4841_s13 + $0x78] sm:$0xf0] }
  0x92   : > { %v3085_v45 = vor.u32 %v4209_v38, %v3082_v39  ;;  %v4247_v38 = vld [vmem:[%s4841_s13 + $0x1a4] sm:$0xf]  ;;  %v3346_v39 = vld [vmem:[%s4841_s13 + $0x1a8] sm:$0xf0] }
  0x93   : > { %1411 = vmatpush.bf16.msrb.mxu2 %v4807_v10 }
  0x94   : > { %1460 = vmatpush.bf16.msrb.mxu3 %v4812_v11  ;;  %1200 = vmatpush.bf16.msrb.mxu0 %v4807_v10  ;;  %v3201_v10 = vor.u32 %v4220_v5, %v3200_v4 }
  0x95   : > { %1249 = vmatpush.bf16.msrb.mxu1 %v4812_v11  ;;  %v3205_v11 = vor.u32 %v4219_v6, %v3202_v7  ;;  %v3256_v6 = vld [vmem:[%s4841_s13 + $0x110] sm:$0xf]  ;;  %v4230_v7 = vld [vmem:[%s4841_s13 + $0x114] sm:$0xf0] }
  0x96   : > { %v3257_v16 = vor.u32 %v4230_v7, %v3256_v6 }
  0x97   : > { %1412 = vmatpush.bf16.msrb.mxu2 %v4822_v12 }
  0x98   : > { %1461 = vmatpush.bf16.msrb.mxu3 %v4827_v13  ;;  %1201 = vmatpush.bf16.msrb.mxu0 %v4822_v12  ;;  %v3064_v12 = vld [vmem:[%s4841_s13 + $0x50] sm:$0xf] }
  0x99   : > { %1250 = vmatpush.bf16.msrb.mxu1 %v4827_v13  ;;  %v4206_v13 = vld [vmem:[%s4841_s13 + $0x54] sm:$0xf0] }
  0x9a   : > { %v3065_v20 = vor.u32 %v4206_v13, %v3064_v12  ;;  %v4245_v12 = vld [vmem:[%s4841_s13 + $0x194] sm:$0xf]  ;;  %v3338_v13 = vld [vmem:[%s4841_s13 + $0x198] sm:$0xf0] }
  0x9b   : > { %1413 = vmatpush.bf16.msrb.mxu2 %v4834_v14 }
  0x9c   : > { %1462 = vmatpush.bf16.msrb.mxu3 %v4839_v15  ;;  %1202 = vmatpush.bf16.msrb.mxu0 %v4834_v14  ;;  %v4205_v14 = vld [vmem:[%s4841_s13 + $0x54] sm:$0xf] }
  0x9d   : > { %1251 = vmatpush.bf16.msrb.mxu1 %v4839_v15  ;;  %v3066_v15 = vld [vmem:[%s4841_s13 + $0x58] sm:$0xf0] }
  0x9e   : > { %807 = vmatmul.bf16.gmra.mxu0 %v3041_v48  ;;  %1002 = vmatmul.bf16.gmra.mxu2 %v3185_v50  ;;  %v3069_v21 = vor.u32 %v4205_v14, %v3066_v15  ;;  %v3248_v48 = vld [vmem:[%s4841_s13 + $0x100] sm:$0xf]  ;;  %v4227_v50 = vld [vmem:[%s4841_s13 + $0x104] sm:$0xf] }
  0x9f   : > { %856 = vmatmul.bf16.gmra.mxu1 %v3045_v49  ;;  %v4228_v49 = vld [vmem:[%s4841_s13 + $0x104] sm:$0xf0] }
  0xa0   : > { %v3249_v56 = vor.u32 %v4228_v49, %v3248_v48  ;;  %v3349_v48 = vor.u32 %v4247_v38, %v3346_v39  ;;  %v3360_v38 = vld [vmem:[%s4841_s13 + $0x1c0] sm:$0xf]  ;;  %v4252_v39 = vld [vmem:[%s4841_s13 + $0x1c4] sm:$0xf0] }
  0xa1   : > { %1051 = vmatmul.bf16.gmra.mxu3 %v3189_v51  ;;  %v3250_v51 = vld [vmem:[%s4841_s13 + $0x108] sm:$0xf0] }
  0xa2   : > { %v3253_v57 = vor.u32 %v4227_v50, %v3250_v51 }
  0xae   : > { %812 = vmatmul.bf16.gmra.mxu0 %v3049_v60  ;;  %1007 = vmatmul.bf16.gmra.mxu2 %v3193_v62  ;;  %v3329_v60 = vor.u32 %v4244_v53, %v3328_v52 }
  0xaf   : > { %861 = vmatmul.bf16.gmra.mxu1 %v3053_v61  ;;  %v3333_v61 = vor.u32 %v4243_v54, %v3330_v55 }
  0xb1   : > { %1056 = vmatmul.bf16.gmra.mxu3 %v3197_v63 }
  0xbe   : > { %817 = vmatmul.bf16.gmra.mxu0 %v3057_v8  ;;  %1012 = vmatmul.bf16.gmra.mxu2 %v3201_v10  ;;  %v4229_v8 = vld [vmem:[%s4841_s13 + $0x114] sm:$0xf]  ;;  %v3336_v10 = vld [vmem:[%s4841_s13 + $0x190] sm:$0xf] }
  0xbf   : > { %866 = vmatmul.bf16.gmra.mxu1 %v3061_v9  ;;  %v3258_v9 = vld [vmem:[%s4841_s13 + $0x118] sm:$0xf0] }
  0xc0   : > { %v3261_v17 = vor.u32 %v4229_v8, %v3258_v9 }
  0xc1   : > { %1061 = vmatmul.bf16.gmra.mxu3 %v3205_v11  ;;  %v4246_v11 = vld [vmem:[%s4841_s13 + $0x194] sm:$0xf0] }
  0xce   : > { %822 = vmatmul.bf16.gmra.mxu0 %v3065_v20  ;;  %1017 = vmatmul.bf16.gmra.mxu2 %v3209_v22  ;;  %v3341_v22 = vor.u32 %v4245_v12, %v3338_v13 }
  0xcf   : > { %871 = vmatmul.bf16.gmra.mxu1 %v3069_v21  ;;  %v3337_v21 = vor.u32 %v4246_v11, %v3336_v10 }
  0xd1   : > { %1066 = vmatmul.bf16.gmra.mxu3 %v3213_v23 }
  0xde   : > { %827 = vmatmul.bf16.gmra.mxu0 %v3073_v32  ;;  %1022 = vmatmul.bf16.gmra.mxu2 %v3217_v34  ;;  %v3264_v32 = vld [vmem:[%s4841_s13 + $0x120] sm:$0xf]  ;;  %v4231_v34 = vld [vmem:[%s4841_s13 + $0x124] sm:$0xf] }
  0xdf   : > { %876 = vmatmul.bf16.gmra.mxu1 %v3077_v33  ;;  %v4232_v33 = vld [vmem:[%s4841_s13 + $0x124] sm:$0xf0] }
  0xe0   : > { %v3265_v42 = vor.u32 %v4232_v33, %v3264_v32  ;;  %v4290_v32 = vld [vmem:[%s5640_s3 + $0xf8] sm:$0xff]  ;;  %v3280_v33 = vld [vmem:[%s4841_s13 + $0x140] sm:$0xf] }
  0xe1   : > { %1071 = vmatmul.bf16.gmra.mxu3 %v3221_v35  ;;  %v3266_v35 = vld [vmem:[%s4841_s13 + $0x128] sm:$0xf0] }
  0xe2   : > { %v3269_v43 = vor.u32 %v4231_v34, %v3266_v35  ;;  %v4236_v34 = vld [vmem:[%s4841_s13 + $0x144] sm:$0xf0]  ;;  %v4266_v35 = vld [vmem:[%s5640_s3 + $0x38] sm:$0xff]  ;;  %1871 = vmatpush.bf16.msra.mxu3 %v4290_v32 }
  0xe3   : > { %1714 = vmatpush.bf16.msra.mxu1 %v4266_v35 }
  0xee   : > { %832 = vmatmul.bf16.gmra.mxu0 %v3081_v44  ;;  %1027 = vmatmul.bf16.gmra.mxu2 %v3225_v46 }
  0xef   : > { %881 = vmatmul.bf16.gmra.mxu1 %v3085_v45 }
  0xf1   : > { %1076 = vmatmul.bf16.gmra.mxu3 %v3229_v47  ;;  %v3345_v47 = vor.u32 %v4248_v37, %v3344_v36  ;;  %v4235_v36 = vld [vmem:[%s4841_s13 + $0x144] sm:$0xf]  ;;  %v3282_v37 = vld [vmem:[%s4841_s13 + $0x148] sm:$0xf0] }
  0xfb   : > { %v798_v58 = vpop.f32.mrf.mxu0 }
  0xfc   : > { %v847_v59 = vpop.f32.mrf.mxu1 }
  0xfd   : > { %v4955_v62 = vadd.f32 %v847_v59, %v798_v58  ;;  %v3272_v58 = vld [vmem:[%s4841_s13 + $0x130] sm:$0xf]  ;;  %v4234_v59 = vld [vmem:[%s4841_s13 + $0x134] sm:$0xf0] }
  0xfe   : > { %1203 = vmatmul.bf16.vlgmr.msrb.gmra.mxu0 %v3249_v56  ;;  %1414 = vmatmul.bf16.vlgmr.msrb.gmra.mxu2 %v3329_v60  ;;  %v4233_v60 = vld [vmem:[%s4841_s13 + $0x134] sm:$0xf]  ;;  %v3273_v8 = vor.u32 %v4234_v59, %v3272_v58 }
  0xff   : > { %1252 = vmatmul.bf16.vlgmr.msrb.gmra.mxu1 %v3253_v57 }
 0x101   : > { %1463 = vmatmul.bf16.vlgmr.msrb.gmra.mxu3 %v3333_v61  ;;  %v993_v63 = vpop.f32.mrf.mxu2  ;;  %v3274_v61 = vld [vmem:[%s4841_s13 + $0x138] sm:$0xf0] }
 0x102   : > { %v3277_v9 = vor.u32 %v4233_v60, %v3274_v61 }
 0x103   : > { %v800_v2 = vpop.f32.mrf.mxu0 }
 0x104   : > { %v1042_v0 = vpop.f32.mrf.mxu3  ;;  %v849_v3 = vpop.f32.mrf.mxu1 }
 0x105   : > { %v4957_v1 = vadd.f32 %v1042_v0, %v993_v63  ;;  %v4959_v4 = vadd.f32 %v849_v3, %v800_v2  ;;  %v3352_v63 = vld [vmem:[%s4841_s13 + $0x1b0] sm:$0xf]  ;;  %v4250_v0 = vld [vmem:[%s4841_s13 + $0x1b4] sm:$0xf0]  ;;  %v4249_v2 = vld [vmem:[%s4841_s13 + $0x1b4] sm:$0xf] }
 0x106   : > { %v3354_v3 = vld [vmem:[%s4841_s13 + $0x1b8] sm:$0xf0]  ;;  %v3353_v13 = vor.u32 %v4250_v0, %v3352_v63 }
 0x107   : > { %v1082_v5 = vmax.f32 %v4955_v62, %v4957_v1  ;;  %v4302_v62 = vld [vmem:[%s5640_s3 + $0x158] sm:$0xff]  ;;  %v4312_v1 = vld [vmem:[%s5640_s3 + $0x1a8] sm:$0xff] }
 0x109   : > { %v995_v14 = vpop.f32.mrf.mxu2 }
 0x10b   : > { %v803_v19 = vpop.f32.mrf.mxu0 }
 0x10c   : > { %v1044_v15 = vpop.f32.mrf.mxu3  ;;  %v852_v20 = vpop.f32.mrf.mxu1 }
 0x10d   : > { %v4971_v18 = vadd.f32 %v1044_v15, %v995_v14  ;;  %v4973_v23 = vadd.f32 %v852_v20, %v803_v19  ;;  %v3357_v14 = vor.u32 %v4249_v2, %v3354_v3  ;;  %v4281_v3 = vld [vmem:[%s5640_s3 + $0xb0] sm:$0xff] }
 0x10e   : > { %1208 = vmatmul.bf16.gmra.mxu0 %v3257_v16  ;;  %1419 = vmatmul.bf16.gmra.mxu2 %v3337_v21 }
 0x10f   : > { %v1083_v24 = vmax.f32 %v4959_v4, %v4971_v18  ;;  %1257 = vmatmul.bf16.gmra.mxu1 %v3261_v17  ;;  %v4320_v4 = vld [vmem:[%s5640_s3 + $0x1e8] sm:$0xff] }
 0x111   : > { %1468 = vmatmul.bf16.gmra.mxu3 %v3341_v22  ;;  %v998_v25 = vpop.f32.mrf.mxu2 }
 0x113   : > { %v805_v28 = vpop.f32.mrf.mxu0 }
 0x114   : > { %v1047_v26 = vpop.f32.mrf.mxu3  ;;  %v854_v29 = vpop.f32.mrf.mxu1 }
 0x115   : > { %v4977_v27 = vadd.f32 %v1047_v26, %v998_v25  ;;  %v4979_v30 = vadd.f32 %v854_v29, %v805_v28  ;;  %v4282_v28 = vld [vmem:[%s5640_s3 + $0xb8] sm:$0xff] }
 0x116   : > { %v4274_v29 = vld [vmem:[%s5640_s3 + $0x78] sm:$0xff]  ;;  %1792 = vmatpush.bf16.msra.mxu2 %v4282_v28 }
 0x117   : > { %v1084_v31 = vmax.f32 %v4973_v23, %v4977_v27  ;;  %1653 = vmatpush.bf16.msra.mxu0 %v4274_v29  ;;  %v4338_v23 = vld [vmem:[%s5640_s3 + $0x278] sm:$0xff]  ;;  %v4329_v27 = vld [vmem:[%s5640_s3 + $0x230] sm:$0xff] }
 0x119   : > { %v1000_v40 = vpop.f32.mrf.mxu2 }
 0x11a   : > { %1793 = vmatpush.bf16.msra.mxu2 %v4281_v3  ;;  %v3376_v3 = vld [vmem:[%s4841_s13 + $0x1e0] sm:$0xf] }
 0x11b   : > { %v808_v45 = vpop.f32.mrf.mxu0 }
 0x11c   : > { %v1049_v41 = vpop.f32.mrf.mxu3  ;;  %v857_v46 = vpop.f32.mrf.mxu1 }
 0x11d   : > { %v4991_v44 = vadd.f32 %v1049_v41, %v1000_v40  ;;  %v4993_v49 = vadd.f32 %v857_v46, %v808_v45  ;;  %v4251_v40 = vld [vmem:[%s4841_s13 + $0x1c4] sm:$0xf]  ;;  %v3362_v41 = vld [vmem:[%s4841_s13 + $0x1c8] sm:$0xf0]  ;;  %v3281_v45 = vor.u32 %v4236_v34, %v3280_v33  ;;  %v3285_v46 = vor.u32 %v4235_v36, %v3282_v37 }
 0x11e   : > { %1213 = vmatmul.bf16.gmra.mxu0 %v3265_v42  ;;  %1424 = vmatmul.bf16.gmra.mxu2 %v3345_v47 }
 0x11f   : > { %v1085_v50 = vmax.f32 %v4979_v30, %v4991_v44  ;;  %1262 = vmatmul.bf16.gmra.mxu1 %v3269_v43  ;;  %v4346_v30 = vld [vmem:[%s5640_s3 + $0x2b8] sm:$0xff]  ;;  %v4327_v44 = vld [vmem:[%s5640_s3 + $0x220] sm:$0xff] }
 0x121   : > { %1473 = vmatmul.bf16.gmra.mxu3 %v3349_v48  ;;  %v1003_v51 = vpop.f32.mrf.mxu2 }
 0x123   : > { %v810_v54 = vpop.f32.mrf.mxu0 }
 0x124   : > { %v1052_v52 = vpop.f32.mrf.mxu3  ;;  %v859_v55 = vpop.f32.mrf.mxu1 }
 0x125   : > { %v4997_v53 = vadd.f32 %v1052_v52, %v1003_v51  ;;  %v4999_v56 = vadd.f32 %v859_v55, %v810_v54  ;;  %v3361_v52 = vor.u32 %v4252_v39, %v3360_v38  ;;  %v3365_v54 = vor.u32 %v4251_v40, %v3362_v41 }
 0x127   : > { %v1086_v57 = vmax.f32 %v4993_v49, %v4997_v53  ;;  %v4354_v49 = vld [vmem:[%s5640_s3 + $0x2f8] sm:$0xff]  ;;  %v4325_v53 = vld [vmem:[%s5640_s3 + $0x210] sm:$0xff] }
 0x129   : > { %v1005_v6 = vpop.f32.mrf.mxu2 }
 0x12b   : > { %v813_v11 = vpop.f32.mrf.mxu0 }
 0x12c   : > { %v1054_v7 = vpop.f32.mrf.mxu3  ;;  %v862_v12 = vpop.f32.mrf.mxu1 }
 0x12d   : > { %v5011_v10 = vadd.f32 %v1054_v7, %v1005_v6  ;;  %v5013_v15 = vadd.f32 %v862_v12, %v813_v11  ;;  %v4273_v6 = vld [vmem:[%s5640_s3 + $0x70] sm:$0xff] }
 0x12e   : > { %1218 = vmatmul.bf16.gmra.mxu0 %v3273_v8  ;;  %1429 = vmatmul.bf16.gmra.mxu2 %v3353_v13  ;;  %v4289_v7 = vld [vmem:[%s5640_s3 + $0xf0] sm:$0xff]  ;;  %v3290_v13 = vld [vmem:[%s4841_s13 + $0x158] sm:$0xf0] }
 0x12f   : > { %v1087_v16 = vmax.f32 %v4999_v56, %v5011_v10  ;;  %1267 = vmatmul.bf16.gmra.mxu1 %v3277_v9  ;;  %v3288_v8 = vld [vmem:[%s4841_s13 + $0x150] sm:$0xf]  ;;  %v4238_v9 = vld [vmem:[%s4841_s13 + $0x154] sm:$0xf0]  ;;  %v4237_v12 = vld [vmem:[%s4841_s13 + $0x154] sm:$0xf]  ;;  %1654 = vmatpush.bf16.msra.mxu0 %v4273_v6 }
 0x130   : > { %v4265_v11 = vld [vmem:[%s5640_s3 + $0x30] sm:$0xff]  ;;  %1872 = vmatpush.bf16.msra.mxu3 %v4289_v7  ;;  %v3289_v29 = vor.u32 %v4238_v9, %v3288_v8  ;;  %v3293_v32 = vor.u32 %v4237_v12, %v3290_v13  ;;  %v4256_v6 = vld [vmem:[%s4841_s13 + $0x1e4] sm:$0xf0]  ;;  %v4255_v7 = vld [vmem:[%s4841_s13 + $0x1e4] sm:$0xf] }
 0x131   : > { %1478 = vmatmul.bf16.gmra.mxu3 %v3357_v14  ;;  %v1008_v17 = vpop.f32.mrf.mxu2  ;;  %v3368_v14 = vld [vmem:[%s4841_s13 + $0x1d0] sm:$0xf]  ;;  %1715 = vmatpush.bf16.msra.mxu1 %v4265_v11  ;;  %v3378_v8 = vld [vmem:[%s4841_s13 + $0x1e8] sm:$0xf0]  ;;  %v4263_v9 = vld [vmem:[%s5640_s3 + $0x20] sm:$0xff] }
 0x132   : > { %v4323_v10 = vld [vmem:[%s5640_s3 + $0x200] sm:$0xff] }
 0x133   : > { %v815_v21 = vpop.f32.mrf.mxu0 }
 0x134   : > { %v1057_v19 = vpop.f32.mrf.mxu3  ;;  %v864_v22 = vpop.f32.mrf.mxu1 }
 0x135   : > { %v5017_v20 = vadd.f32 %v1057_v19, %v1008_v17  ;;  %v5019_v25 = vadd.f32 %v864_v22, %v815_v21  ;;  %v4254_v17 = vld [vmem:[%s4841_s13 + $0x1d4] sm:$0xf0]  ;;  %v4253_v19 = vld [vmem:[%s4841_s13 + $0x1d4] sm:$0xf]  ;;  %v3370_v21 = vld [vmem:[%s4841_s13 + $0x1d8] sm:$0xf0] }
 0x136   : > { %v3369_v35 = vor.u32 %v4254_v17, %v3368_v14  ;;  %v3373_v36 = vor.u32 %v4253_v19, %v3370_v21  ;;  %v3377_v21 = vor.u32 %v4256_v6, %v3376_v3  ;;  %v4241_v3 = vld [vmem:[%s4841_s13 + $0x174] sm:$0xf]  ;;  %v3306_v6 = vld [vmem:[%s4841_s13 + $0x178] sm:$0xf0] }
 0x137   : > { %v1088_v26 = vmax.f32 %v5013_v15, %v5017_v20  ;;  %v4350_v15 = vld [vmem:[%s5640_s3 + $0x2d8] sm:$0xff] }
 0x139   : > { %v1010_v42 = vpop.f32.mrf.mxu2 }
 0x13b   : > { %v818_v48 = vpop.f32.mrf.mxu0 }
 0x13c   : > { %v1059_v43 = vpop.f32.mrf.mxu3  ;;  %v867_v51 = vpop.f32.mrf.mxu1 }
 0x13d   : > { %v5043_v47 = vadd.f32 %v1059_v43, %v1010_v42  ;;  %v5045_v55 = vadd.f32 %v867_v51, %v818_v48  ;;  %v4264_v43 = vld [vmem:[%s5640_s3 + $0x28] sm:$0xff] }
 0x13e   : > { %1223 = vmatmul.bf16.gmra.mxu0 %v3281_v45  ;;  %1434 = vmatmul.bf16.gmra.mxu2 %v3361_v52  ;;  %v4272_v48 = vld [vmem:[%s5640_s3 + $0x68] sm:$0xff]  ;;  %v3296_v52 = vld [vmem:[%s4841_s13 + $0x160] sm:$0xf] }
 0x13f   : > { %v1089_v58 = vmax.f32 %v5019_v25, %v5043_v47  ;;  %1272 = vmatmul.bf16.gmra.mxu1 %v3285_v46  ;;  %v4280_v46 = vld [vmem:[%s5640_s3 + $0xa8] sm:$0xff]  ;;  %1655 = vmatpush.bf16.msra.mxu0 %v4272_v48 }
 0x140   : > { %v4288_v51 = vld [vmem:[%s5640_s3 + $0xe8] sm:$0xff]  ;;  %1716 = vmatpush.bf16.msra.mxu1 %v4264_v43  ;;  %1794 = vmatpush.bf16.msra.mxu2 %v4280_v46 }
 0x141   : > { %1483 = vmatmul.bf16.gmra.mxu3 %v3365_v54  ;;  %v1013_v59 = vpop.f32.mrf.mxu2  ;;  %v4240_v54 = vld [vmem:[%s4841_s13 + $0x164] sm:$0xf0] }
 0x142   : > { %1873 = vmatpush.bf16.msra.mxu3 %v4288_v51  ;;  %v3297_v13 = vor.u32 %v4240_v54, %v3296_v52  ;;  %v4269_v51 = vld [vmem:[%s5640_s3 + $0x50] sm:$0xff]  ;;  %v4260_v52 = vld [vmem:[%s5640_s3 + $0x8] sm:$0xff] }
 0x143   : > { %v5051_v63 = vpop.f32.mrf.mxu0  ;;  %v4368_v25 = vld [vmem:[%s5640_s3 + $0x368] sm:$0xff] }
 0x144   : > { %v1062_v60 = vpop.f32.mrf.mxu3  ;;  %v5053_v0 = vpop.f32.mrf.mxu1  ;;  %1717 = vmatpush.bf16.msra.mxu1 %v4263_v9  ;;  %v4257_v9 = vld [vmem:[%s4841_s13 + $0x1f4] sm:$0xf] }
 0x145   : > { %v5049_v61 = vadd.f32 %v1062_v60, %v1013_v59  ;;  %v4239_v59 = vld [vmem:[%s4841_s13 + $0x164] sm:$0xf]  ;;  %v3298_v60 = vld [vmem:[%s4841_s13 + $0x168] sm:$0xf0] }
 0x146   : > { %v3301_v14 = vor.u32 %v4239_v59, %v3298_v60  ;;  %v3304_v59 = vld [vmem:[%s4841_s13 + $0x170] sm:$0xf]  ;;  %v4242_v60 = vld [vmem:[%s4841_s13 + $0x174] sm:$0xf0] }
 0x147   : > { %v1090_v2 = vmax.f32 %v5045_v55, %v5049_v61  ;;  %v4376_v55 = vld [vmem:[%s5640_s3 + $0x3a8] sm:$0xff] }
 0x149   : > { %v5077_v22 = vpop.f32.mrf.mxu2 }
 0x14b   : > { %v823_v33 = vpop.f32.mrf.mxu0 }
 0x14c   : > { %v5079_v28 = vpop.f32.mrf.mxu3  ;;  %v872_v34 = vpop.f32.mrf.mxu1 }
 0x14d   : > { %v5081_v37 = vadd.f32 %v872_v34, %v823_v33  ;;  %v4262_v34 = vld [vmem:[%s5640_s3 + $0x18] sm:$0xff]  ;;  %v1065_v61 = vadd.f32 %v5079_v28, %v5077_v22  ;;  %v4365_v22 = vld [vmem:[%s5640_s3 + $0x350] sm:$0xff]  ;;  %v4375_v28 = vld [vmem:[%s5640_s3 + $0x3a0] sm:$0xff] }
 0x14e   : > { %1228 = vmatmul.bf16.gmra.mxu0 %v3289_v29  ;;  %1439 = vmatmul.bf16.gmra.mxu2 %v3369_v35  ;;  %v3381_v29 = vor.u32 %v4255_v7, %v3378_v8  ;;  %v4270_v35 = vld [vmem:[%s5640_s3 + $0x58] sm:$0xff]  ;;  %v3384_v7 = vld [vmem:[%s4841_s13 + $0x1f0] sm:$0xf] }
 0x14f   : > { %1277 = vmatmul.bf16.gmra.mxu1 %v3293_v32  ;;  %v4271_v32 = vld [vmem:[%s5640_s3 + $0x60] sm:$0xff]  ;;  %v4258_v8 = vld [vmem:[%s4841_s13 + $0x1f4] sm:$0xf0] }
 0x150   : > { %1656 = vmatpush.bf16.msra.mxu0 %v4271_v32  ;;  %1718 = vmatpush.bf16.msra.mxu1 %v4262_v34  ;;  %v3305_v32 = vor.u32 %v4242_v60, %v3304_v59  ;;  %v3309_v34 = vor.u32 %v4241_v3, %v3306_v6  ;;  %v4278_v59 = vld [vmem:[%s5640_s3 + $0x98] sm:$0xff]  ;;  %v4277_v3 = vld [vmem:[%s5640_s3 + $0x90] sm:$0xff] }
 0x151   : > { %1488 = vmatmul.bf16.gmra.mxu3 %v3373_v36  ;;  %v1018_v38 = vpop.f32.mrf.mxu2  ;;  %v4261_v36 = vld [vmem:[%s5640_s3 + $0x10] sm:$0xff]  ;;  %v4298_v60 = vld [vmem:[%s5640_s3 + $0x138] sm:$0xff] }
 0x152   : > { %v4297_v6 = vld [vmem:[%s5640_s3 + $0x130] sm:$0xff] }
 0x153   : > { %v5085_v41 = vpop.f32.mrf.mxu0 }
 0x154   : > { %v1067_v39 = vpop.f32.mrf.mxu3  ;;  %v5087_v42 = vpop.f32.mrf.mxu1  ;;  %1657 = vmatpush.bf16.msra.mxu0 %v4270_v35  ;;  %1719 = vmatpush.bf16.msra.mxu1 %v4261_v36 }
 0x155   : > { %v5083_v40 = vadd.f32 %v1067_v39, %v1018_v38 }
 0x157   : > { %v1092_v45 = vmax.f32 %v5081_v37, %v5083_v40  ;;  %v875_v37 = vadd.f32 %v5087_v42, %v5085_v41 }
 0x158   : > { %1658 = vmatpush.bf16.msra.mxu0 %v4269_v51  ;;  %1720 = vmatpush.bf16.msra.mxu1 %v4260_v52  ;;  %v4287_v51 = vld [vmem:[%s5640_s3 + $0xe0] sm:$0xff] }
 0x159   : > { %v5114_v11 = vpop.f32.mrf.mxu2  ;;  %v4267_v52 = vld [vmem:[%s5640_s3 + $0x40] sm:$0xff]  ;;  %1874 = vmatpush.bf16.msra.mxu3 %v4287_v51 }
 0x15a   : > { %v4295_v51 = vld [vmem:[%s5640_s3 + $0x120] sm:$0xff] }
 0x15b   : > { %v828_v17 = vpop.f32.mrf.mxu0 }
 0x15c   : > { %v5116_v12 = vpop.f32.mrf.mxu3  ;;  %v877_v19 = vpop.f32.mrf.mxu1 }
 0x15d   : > { %v5121_v33 = vadd.f32 %v877_v19, %v828_v17  ;;  %v4279_v17 = vld [vmem:[%s5640_s3 + $0xa0] sm:$0xff] }
 0x15e   : > { %1233 = vmatmul.bf16.gmra.mxu0 %v3297_v13  ;;  %1444 = vmatmul.bf16.gmra.mxu2 %v3377_v21  ;;  %v4268_v13 = vld [vmem:[%s5640_s3 + $0x48] sm:$0xff]  ;;  %v4259_v19 = vld [vmem:[%s5640_s3] sm:$0xff] }
 0x15f   : > { %1282 = vmatmul.bf16.gmra.mxu1 %v3301_v14  ;;  %v3386_v14 = vld [vmem:[%s4841_s13 + $0x1f8] sm:$0xf0]  ;;  %1659 = vmatpush.bf16.msra.mxu0 %v4268_v13  ;;  %s3021_s13 = sshll.u32 %s4800_s9, 3 }
 0x160   : > { %1795 = vmatpush.bf16.msra.mxu2 %v4279_v17  ;;  %1721 = vmatpush.bf16.msra.mxu1 %v4259_v19  ;;  %v4286_v19 = vld [vmem:[%s5640_s3 + $0xd8] sm:$0xff]  ;;  %s564_s14 = scalar_lea.vmem [#allocation3], %s3021_s13 }
 0x161   : > { %1493 = vmatmul.bf16.gmra.mxu3 %v3381_v29  ;;  %v1023_v38 = vpop.f32.mrf.mxu2  ;;  %s2945_s15 = sshll.u32 %s564_s14, 4  ;;  %s2946_s15 = int_to_ptr.vmem [resolvable:$true] %s2945_s15 }
 0x162   : > { %1875 = vmatpush.bf16.msra.mxu3 %v4286_v19  ;;  %v4304_v19 = vld [vmem:[%s5640_s3 + $0x168] sm:$0xff] }
 0x163   : > { %v5134_v46 = vpop.f32.mrf.mxu0  ;;  %1660 = vmatpush.bf16.msra.mxu0 %v4267_v52  ;;  %v4305_v52 = vld [vmem:[%s5640_s3 + $0x170] sm:$0xff] }
 0x164   : > { %v1072_v39 = vpop.f32.mrf.mxu3  ;;  %v5136_v48 = vpop.f32.mrf.mxu1  ;;  %1796 = vmatpush.bf16.msra.mxu2 %v4278_v59 }
 0x165   : > { %v5132_v43 = vadd.f32 %v1072_v39, %v1023_v38  ;;  %v3385_v38 = vor.u32 %v4258_v8, %v3384_v7  ;;  %v3389_v39 = vor.u32 %v4257_v9, %v3386_v14 }
 0x167   : > { %v1094_v54 = vmax.f32 %v5121_v33, %v5132_v43  ;;  %1950 = vmatpush.bf16.msrb.mxu0 %v4298_v60 }
 0x168   : > { %1797 = vmatpush.bf16.msra.mxu2 %v4277_v3 }
 0x169   : > { %v5163_v21 = vpop.f32.mrf.mxu2 }
 0x16b   : > { %v833_v35 = vpop.f32.mrf.mxu0  ;;  %1951 = vmatpush.bf16.msrb.mxu0 %v4297_v6 }
 0x16c   : > { %v5165_v29 = vpop.f32.mrf.mxu3  ;;  %v882_v36 = vpop.f32.mrf.mxu1 }
 0x16d   : > { %v5173_v13 = vadd.f32 %v882_v36, %v833_v35  ;;  %v4306_v36 = vld [vmem:[%s5640_s3 + $0x178] sm:$0xff]  ;;  %v4292_v35 = vld [vmem:[%s5640_s3 + $0x108] sm:$0xff] }
 0x16e   : > { %1238 = vmatmul.bf16.gmra.mxu0 %v3305_v32  ;;  %1449 = vmatmul.bf16.gmra.mxu2 %v3385_v38  ;;  %v4276_v32 = vld [vmem:[%s5640_s3 + $0x88] sm:$0xff]  ;;  %v4275_v38 = vld [vmem:[%s5640_s3 + $0x80] sm:$0xff] }
 0x16f   : > { %1287 = vmatmul.bf16.gmra.mxu1 %v3309_v34  ;;  %v4296_v34 = vld [vmem:[%s5640_s3 + $0x128] sm:$0xff]  ;;  %1798 = vmatpush.bf16.msra.mxu2 %v4276_v32  ;;  %v4314_v32 = vld [vmem:[%s5640_s3 + $0x1b8] sm:$0xff] }
 0x170   : > { %2029 = vmatpush.bf16.msrb.mxu1 %v4306_v36  ;;  %1952 = vmatpush.bf16.msrb.mxu0 %v4296_v34  ;;  %v4283_v36 = vld [vmem:[%s5640_s3 + $0xc0] sm:$0xff] }
 0x171   : > { %1498 = vmatmul.bf16.gmra.mxu3 %v3389_v39  ;;  %v1028_v7 = vpop.f32.mrf.mxu2  ;;  %v4285_v39 = vld [vmem:[%s5640_s3 + $0xd0] sm:$0xff] }
 0x172   : > { %1876 = vmatpush.bf16.msra.mxu3 %v4285_v39  ;;  %v4303_v39 = vld [vmem:[%s5640_s3 + $0x160] sm:$0xff] }
 0x173   : > { %v5189_v14 = vpop.f32.mrf.mxu0  ;;  %1799 = vmatpush.bf16.msra.mxu2 %v4275_v38  ;;  %v4293_v38 = vld [vmem:[%s5640_s3 + $0x110] sm:$0xff] }
 0x174   : > { %v1077_v8 = vpop.f32.mrf.mxu3  ;;  %v5191_v17 = vpop.f32.mrf.mxu1  ;;  %2030 = vmatpush.bf16.msrb.mxu1 %v4305_v52  ;;  %1953 = vmatpush.bf16.msrb.mxu0 %v4295_v51  ;;  %v4313_v51 = vld [vmem:[%s5640_s3 + $0x1b0] sm:$0xff] }
 0x175   : > { %v5187_v9 = vadd.f32 %v1077_v8, %v1028_v7  ;;  %v4284_v7 = vld [vmem:[%s5640_s3 + $0xc8] sm:$0xff]  ;;  %v4294_v8 = vld [vmem:[%s5640_s3 + $0x118] sm:$0xff] }
 0x176   : > { %1877 = vmatpush.bf16.msra.mxu3 %v4284_v7 }
 0x177   : > { %2108 = vmatpush.bf16.msrb.mxu2 %v4314_v32 }
 0x178   : > { %2031 = vmatpush.bf16.msrb.mxu1 %v4304_v19  ;;  %1954 = vmatpush.bf16.msrb.mxu0 %v4294_v8  ;;  %v5253_v8 = vld [vmem:[%s5639_s2] ss:$0 sm:$0xff] }
 0x179   : > { %v5219_v59 = vpop.f32.mrf.mxu2 }
 0x17a   : > { %1878 = vmatpush.bf16.msra.mxu3 %v4283_v36 }
 0x17b   : > { %v1204_v3 = vpop.f32.mrf.mxu0  ;;  %2109 = vmatpush.bf16.msrb.mxu2 %v4313_v51  ;;  %v4301_v51 = vld [vmem:[%s5640_s3 + $0x150] sm:$0xff] }
 0x17c   : > { %v5221_v60 = vpop.f32.mrf.mxu3  ;;  %v1253_v6 = vpop.f32.mrf.mxu1  ;;  %2032 = vmatpush.bf16.msrb.mxu1 %v4303_v39  ;;  %1955 = vmatpush.bf16.msrb.mxu0 %v4293_v38  ;;  %v4291_v39 = vld [vmem:[%s5640_s3 + $0x100] sm:$0xff] }
 0x17d   : > { %v1254_v34 = vadd.f32 %v1253_v6, %v1204_v3 }
 0x17f   : > { %v1293_v6 = vmax.f32 %v1082_v5, %v1254_v34  ;;  %v4322_v34 = vld [vmem:[%s5640_s3 + $0x1f8] sm:$0xff]  ;;  %2110 = vmatpush.bf16.msrb.mxu2 %v4312_v1 }
 0x180   : > { %2033 = vmatpush.bf16.msrb.mxu1 %v4302_v62  ;;  %1956 = vmatpush.bf16.msrb.mxu0 %v4292_v35 }
 0x181   : > { %v1415_v52 = vpop.f32.mrf.mxu2  ;;  %2187 = vmatpush.bf16.msrb.mxu3 %v4322_v34  ;;  %v4300_v34 = vld [vmem:[%s5640_s3 + $0x148] sm:$0xff] }
 0x183   : > { %v1206_v19 = vpop.f32.mrf.mxu0 }
 0x184   : > { %v1464_v3 = vpop.f32.mrf.mxu3  ;;  %v1255_v32 = vpop.f32.mrf.mxu1  ;;  %2034 = vmatpush.bf16.msrb.mxu1 %v4301_v51  ;;  %1957 = vmatpush.bf16.msrb.mxu0 %v4291_v39  ;;  %v4299_v39 = vld [vmem:[%s5640_s3 + $0x140] sm:$0xff]  ;;  %v4309_v51 = vld [vmem:[%s5640_s3 + $0x190] sm:$0xff] }
 0x185   : > { %v1465_v7 = vadd.f32 %v1464_v3, %v1415_v52  ;;  %v1256_v38 = vadd.f32 %v1255_v32, %v1206_v19  ;;  %v4311_v52 = vld [vmem:[%s5640_s3 + $0x1a0] sm:$0xff] }
 0x186   : > { %2111 = vmatpush.bf16.msrb.mxu2 %v4311_v52  ;;  %v4319_v52 = vld [vmem:[%s5640_s3 + $0x1e0] sm:$0xff] }
 0x187   : > { %v1504_v5 = vmax.f32 %v1293_v6, %v1465_v7  ;;  %v4321_v6 = vld [vmem:[%s5640_s3 + $0x1f0] sm:$0xff]  ;;  %v1294_v32 = vmax.f32 %v1083_v24, %v1256_v38 }
 0x188   : > { %2188 = vmatpush.bf16.msrb.mxu3 %v4321_v6  ;;  %2035 = vmatpush.bf16.msrb.mxu1 %v4300_v34  ;;  %v4308_v34 = vld [vmem:[%s5640_s3 + $0x188] sm:$0xff] }
 0x189   : > { %v1524_v36 = vadd.f32 %v5253_v8, %v1504_v5  ;;  %v1417_v7 = vpop.f32.mrf.mxu2 }
 0x18b   : > { %v1540_v3 = vmax.f32 %v1524_v36, 0.0  ;;  %v1209_v1 = vpop.f32.mrf.mxu0  ;;  %v4310_v36 = vld [vmem:[%s5640_s3 + $0x198] sm:$0xff] }
 0x18c   : > { %v1466_v35 = vpop.f32.mrf.mxu3  ;;  %v1258_v5 = vpop.f32.mrf.mxu1  ;;  %2112 = vmatpush.bf16.msrb.mxu2 %v4310_v36  ;;  %2189 = vmatpush.bf16.msrb.mxu3 %v4320_v4  ;;  %v4318_v36 = vld [vmem:[%s5640_s3 + $0x1d8] sm:$0xff] }
 0x18d   : > { %v1556_v19 = vpack.c.bf16 %v1540_v3, %v1540_v3  ;;  %v1467_v62 = vadd.f32 %v1466_v35, %v1417_v7  ;;  %v1259_v38 = vadd.f32 %v1258_v5, %v1209_v1  ;;  %v4330_v35 = vld [vmem:[%s5640_s3 + $0x238] sm:$0xff]  ;;  %2036 = vmatpush.bf16.msrb.mxu1 %v4299_v39 }
 0x18f   : > { %v1505_v18 = vmax.f32 %v1294_v32, %v1467_v62  ;;  %1722 = vmatmul.bf16.vlgmr.msra.gmra.mxu1 %v1556_v19  ;;  %v1295_v32 = vmax.f32 %v1084_v31, %v1259_v38  ;;  %v4317_v38 = vld [vmem:[%s5640_s3 + $0x1d0] sm:$0xff] }
 0x190   : > { %2113 = vmatpush.bf16.msrb.mxu2 %v4309_v51  ;;  %2190 = vmatpush.bf16.msrb.mxu3 %v4319_v52  ;;  %v4337_v51 = vld [vmem:[%s5640_s3 + $0x270] sm:$0xff] }
 0x191   : > { %v1525_v24 = vadd.f32 %v5253_v8, %v1505_v18  ;;  %v1420_v6 = vpop.f32.mrf.mxu2  ;;  %2345 = vmatpush.bf16.msra.mxu1 %v4338_v23  ;;  %v4335_v23 = vld [vmem:[%s5640_s3 + $0x260] sm:$0xff] }
 0x193   : > { %v1541_v3 = vmax.f32 %v1525_v24, 0.0  ;;  %v1211_v1 = vpop.f32.mrf.mxu0  ;;  %v4307_v24 = vld [vmem:[%s5640_s3 + $0x180] sm:$0xff] }
 0x194   : > { %v1469_v7 = vpop.f32.mrf.mxu3  ;;  %v1260_v5 = vpop.f32.mrf.mxu1  ;;  %2114 = vmatpush.bf16.msrb.mxu2 %v4308_v34  ;;  %2191 = vmatpush.bf16.msrb.mxu3 %v4318_v36 }
 0x195   : > { %v1557_v19 = vpack.c.bf16 %v1541_v3, %v1541_v3  ;;  %v1470_v62 = vadd.f32 %v1469_v7, %v1420_v6  ;;  %v1261_v18 = vadd.f32 %v1260_v5, %v1211_v1  ;;  %v4328_v6 = vld [vmem:[%s5640_s3 + $0x228] sm:$0xff]  ;;  %2346 = vmatpush.bf16.msra.mxu1 %v4337_v51 }
 0x196   : > { %v4316_v1 = vld [vmem:[%s5640_s3 + $0x1c8] sm:$0xff] }
 0x197   : > { %v1506_v4 = vmax.f32 %v1295_v32, %v1470_v62  ;;  %1661 = vmatmul.bf16.vlgmr.msra.gmra.mxu0 %v1557_v19  ;;  %v4336_v5 = vld [vmem:[%s5640_s3 + $0x268] sm:$0xff] }
 0x198   : > { %2266 = vmatpush.bf16.msra.mxu0 %v4330_v35  ;;  %v1296_v35 = vmax.f32 %v1085_v50, %v1261_v18  ;;  %2115 = vmatpush.bf16.msrb.mxu2 %v4307_v24 }
 0x199   : > { %v1526_v31 = vadd.f32 %v5253_v8, %v1506_v4  ;;  %v1422_v52 = vpop.f32.mrf.mxu2  ;;  %2192 = vmatpush.bf16.msrb.mxu3 %v4317_v38  ;;  %2347 = vmatpush.bf16.msra.mxu1 %v4336_v5  ;;  %v4315_v4 = vld [vmem:[%s5640_s3 + $0x1c0] sm:$0xff]  ;;  %v4326_v38 = vld [vmem:[%s5640_s3 + $0x218] sm:$0xff] }
 0x19b   : > { %v1542_v39 = vmax.f32 %v1526_v31, 0.0  ;;  %v1214_v32 = vpop.f32.mrf.mxu0  ;;  %v4345_v31 = vld [vmem:[%s5640_s3 + $0x2b0] sm:$0xff] }
 0x19c   : > { %v1471_v3 = vpop.f32.mrf.mxu3  ;;  %2267 = vmatpush.bf16.msra.mxu0 %v4329_v27  ;;  %v1263_v62 = vpop.f32.mrf.mxu1 }
 0x19d   : > { %v1558_v7 = vpack.c.bf16 %v1542_v39, %v1542_v39  ;;  %v1472_v19 = vadd.f32 %v1471_v3, %v1422_v52  ;;  %v1264_v36 = vadd.f32 %v1263_v62, %v1214_v32  ;;  %2193 = vmatpush.bf16.msrb.mxu3 %v4316_v1  ;;  %2348 = vmatpush.bf16.msra.mxu1 %v4335_v23  ;;  %v4333_v62 = vld [vmem:[%s5640_s3 + $0x250] sm:$0xff]  ;;  %v4343_v1 = vld [vmem:[%s5640_s3 + $0x2a0] sm:$0xff] }
 0x19f   : > { %v1507_v34 = vmax.f32 %v1296_v35, %v1472_v19  ;;  %1800 = vmatmul.bf16.vlgmr.msra.gmra.mxu2 %v1558_v7  ;;  %v1297_v51 = vmax.f32 %v1086_v57, %v1264_v36  ;;  %v4334_v7 = vld [vmem:[%s5640_s3 + $0x258] sm:$0xff]  ;;  %v4344_v35 = vld [vmem:[%s5640_s3 + $0x2a8] sm:$0xff] }
 0x1a0   : > { %2268 = vmatpush.bf16.msra.mxu0 %v4328_v6  ;;  %2424 = vmatpush.bf16.msra.mxu2 %v4346_v30 }
 0x1a1   : > { %v1527_v50 = vadd.f32 %v5253_v8, %v1507_v34  ;;  %v1425_v18 = vpop.f32.mrf.mxu2  ;;  %2194 = vmatpush.bf16.msrb.mxu3 %v4315_v4  ;;  %2349 = vmatpush.bf16.msra.mxu1 %v4334_v7  ;;  %v4353_v34 = vld [vmem:[%s5640_s3 + $0x2f0] sm:$0xff] }
 0x1a3   : > { %v1543_v27 = vmax.f32 %v1527_v50, 0.0  ;;  %v1216_v3 = vpop.f32.mrf.mxu0  ;;  %v4324_v50 = vld [vmem:[%s5640_s3 + $0x208] sm:$0xff] }
 0x1a4   : > { %v1474_v24 = vpop.f32.mrf.mxu3  ;;  %2269 = vmatpush.bf16.msra.mxu0 %v4327_v44  ;;  %v1265_v6 = vpop.f32.mrf.mxu1  ;;  %2425 = vmatpush.bf16.msra.mxu2 %v4345_v31 }
 0x1a5   : > { %v1559_v39 = vpack.c.bf16 %v1543_v27, %v1543_v27  ;;  %v1475_v52 = vadd.f32 %v1474_v24, %v1425_v18  ;;  %v1266_v32 = vadd.f32 %v1265_v6, %v1216_v3  ;;  %2350 = vmatpush.bf16.msra.mxu1 %v4333_v62  ;;  %v4332_v18 = vld [vmem:[%s5640_s3 + $0x248] sm:$0xff]  ;;  %v4342_v24 = vld [vmem:[%s5640_s3 + $0x298] sm:$0xff]  ;;  %v4341_v3 = vld [vmem:[%s5640_s3 + $0x290] sm:$0xff] }
 0x1a6   : > { %v4351_v6 = vld [vmem:[%s5640_s3 + $0x2e0] sm:$0xff] }
 0x1a7   : > { %v1508_v19 = vmax.f32 %v1297_v51, %v1475_v52  ;;  %1879 = vmatmul.bf16.vlgmr.msra.gmra.mxu3 %v1559_v39  ;;  %v1298_v4 = vmax.f32 %v1087_v16, %v1266_v32  ;;  %v4362_v51 = vld [vmem:[%s5640_s3 + $0x338] sm:$0xff]  ;;  %v4331_v52 = vld [vmem:[%s5640_s3 + $0x240] sm:$0xff] }
 0x1a8   : > { %2270 = vmatpush.bf16.msra.mxu0 %v4326_v38  ;;  %2426 = vmatpush.bf16.msra.mxu2 %v4344_v35  ;;  %v4352_v38 = vld [vmem:[%s5640_s3 + $0x2e8] sm:$0xff] }
 0x1a9   : > { %v1528_v57 = vadd.f32 %v5253_v8, %v1508_v19  ;;  %2503 = vmatpush.bf16.msra.mxu3 %v4354_v49  ;;  %v1427_v30 = vpop.f32.mrf.mxu2  ;;  %2351 = vmatpush.bf16.msra.mxu1 %v4332_v18 }
 0x1ab   : > { %v1544_v5 = vmax.f32 %v1528_v57, 0.0  ;;  %v1219_v27 = vpop.f32.mrf.mxu0 }
 0x1ac   : > { %v1476_v44 = vpop.f32.mrf.mxu3  ;;  %2271 = vmatpush.bf16.msra.mxu0 %v4325_v53  ;;  %v1268_v31 = vpop.f32.mrf.mxu1  ;;  %2427 = vmatpush.bf16.msra.mxu2 %v4343_v1  ;;  %v4361_v1 = vld [vmem:[%s5640_s3 + $0x330] sm:$0xff] }
 0x1ad   : > { %v1560_v36 = vpack.c.bf16 %v1544_v5, %v1544_v5  ;;  %v1477_v23 = vadd.f32 %v1476_v44, %v1427_v30  ;;  %2504 = vmatpush.bf16.msra.mxu3 %v4353_v34  ;;  %v1269_v39 = vadd.f32 %v1268_v31, %v1219_v27  ;;  %2352 = vmatpush.bf16.msra.mxu1 %v4331_v52  ;;  %v4340_v5 = vld [vmem:[%s5640_s3 + $0x288] sm:$0xff] }
 0x1ae   : > { %v4360_v44 = vld [vmem:[%s5640_s3 + $0x328] sm:$0xff] }
 0x1af   : > { %v1509_v56 = vmax.f32 %v1298_v4, %v1477_v23  ;;  %1958 = vmatmul.bf16.vlgmr.msrb.gmra.mxu0 %v1560_v36  ;;  %v1299_v53 = vmax.f32 %v1088_v26, %v1269_v39  ;;  %v4370_v26 = vld [vmem:[%s5640_s3 + $0x378] sm:$0xff]  ;;  %v4349_v36 = vld [vmem:[%s5640_s3 + $0x2d0] sm:$0xff]  ;;  %v4348_v39 = vld [vmem:[%s5640_s3 + $0x2c8] sm:$0xff] }
 0x1b0   : > { %2272 = vmatpush.bf16.msra.mxu0 %v4324_v50  ;;  %2428 = vmatpush.bf16.msra.mxu2 %v4342_v24  ;;  %v4339_v50 = vld [vmem:[%s5640_s3 + $0x280] sm:$0xff]  ;;  %v4369_v23 = vld [vmem:[%s5640_s3 + $0x370] sm:$0xff] }
 0x1b1   : > { %v1529_v16 = vadd.f32 %v5253_v8, %v1509_v56  ;;  %2505 = vmatpush.bf16.msra.mxu3 %v4352_v38  ;;  %v1430_v35 = vpop.f32.mrf.mxu2 }
 0x1b3   : > { %v1545_v7 = vmax.f32 %v1529_v16, 0.0  ;;  %v1221_v32 = vpop.f32.mrf.mxu0  ;;  %v4359_v16 = vld [vmem:[%s5640_s3 + $0x320] sm:$0xff] }
 0x1b4   : > { %v1479_v19 = vpop.f32.mrf.mxu3  ;;  %2273 = vmatpush.bf16.msra.mxu0 %v4323_v10  ;;  %v1270_v62 = vpop.f32.mrf.mxu1  ;;  %2429 = vmatpush.bf16.msra.mxu2 %v4341_v3  ;;  %v4358_v3 = vld [vmem:[%s5640_s3 + $0x318] sm:$0xff] }
 0x1b5   : > { %v1561_v49 = vpack.c.bf16 %v1545_v7, %v1545_v7  ;;  %v1480_v57 = vadd.f32 %v1479_v19, %v1430_v35  ;;  %2506 = vmatpush.bf16.msra.mxu3 %v4351_v6  ;;  %v1271_v30 = vadd.f32 %v1270_v62, %v1221_v32  ;;  %v4347_v6 = vld [vmem:[%s5640_s3 + $0x2c0] sm:$0xff]  ;;  %v4377_v19 = vld [vmem:[%s5640_s3 + $0x3b0] sm:$0xff] }
 0x1b6   : > { %v4367_v7 = vld [vmem:[%s5640_s3 + $0x360] sm:$0xff] }
 0x1b7   : > { %v1510_v20 = vmax.f32 %v1299_v53, %v1480_v57  ;;  %2037 = vmatmul.bf16.vlgmr.msrb.gmra.mxu1 %v1561_v49  ;;  %v1300_v24 = vmax.f32 %v1089_v58, %v1271_v30  ;;  %v4378_v58 = vld [vmem:[%s5640_s3 + $0x3b8] sm:$0xff] }
 0x1b8   : > { %2582 = vmatpush.bf16.msrb.mxu0 %v4362_v51  ;;  %2661 = vmatpush.bf16.msrb.mxu1 %v4370_v26  ;;  %v4386_v26 = vld [vmem:[%s5640_s3 + $0x3f8] sm:$0xff] }
 0x1b9   : > { %v1530_v34 = vadd.f32 %v5253_v8, %v1510_v20  ;;  %2430 = vmatpush.bf16.msra.mxu2 %v4340_v5  ;;  %2507 = vmatpush.bf16.msra.mxu3 %v4350_v15  ;;  %v1432_v27 = vpop.f32.mrf.mxu2  ;;  %v4357_v15 = vld [vmem:[%s5640_s3 + $0x310] sm:$0xff]  ;;  %v4366_v20 = vld [vmem:[%s5640_s3 + $0x358] sm:$0xff] }
 0x1bb   : > { %v1546_v4 = vmax.f32 %v1530_v34, 0.0  ;;  %v1224_v56 = vpop.f32.mrf.mxu0  ;;  %v870_v34 = vadd.f32 %v5053_v0, %v5051_v63 }
 0x1bc   : > { %2583 = vmatpush.bf16.msrb.mxu0 %v4361_v1  ;;  %v1481_v31 = vpop.f32.mrf.mxu3  ;;  %v1273_v10 = vpop.f32.mrf.mxu1  ;;  %2662 = vmatpush.bf16.msrb.mxu1 %v4369_v23 }
 0x1bd   : > { %v1562_v18 = vpack.c.bf16 %v1546_v4, %v1546_v4  ;;  %v1482_v38 = vadd.f32 %v1481_v31, %v1432_v27  ;;  %2431 = vmatpush.bf16.msra.mxu2 %v4339_v50  ;;  %2508 = vmatpush.bf16.msra.mxu3 %v4349_v36  ;;  %v1274_v52 = vadd.f32 %v1273_v10, %v1224_v56  ;;  %v4356_v50 = vld [vmem:[%s5640_s3 + $0x308] sm:$0xff]  ;;  %v4385_v36 = vld [vmem:[%s5640_s3 + $0x3f0] sm:$0xff]  ;;  %v4355_v56 = vld [vmem:[%s5640_s3 + $0x300] sm:$0xff] }
 0x1be   : > { %v1091_v63 = vmax.f32 %v870_v34, %v1065_v61  ;;  %v4364_v10 = vld [vmem:[%s5640_s3 + $0x348] sm:$0xff] }
 0x1bf   : > { %v1511_v47 = vmax.f32 %v1300_v24, %v1482_v38  ;;  %2116 = vmatmul.bf16.vlgmr.msrb.gmra.mxu2 %v1562_v18  ;;  %v1301_v32 = vmax.f32 %v1090_v2, %v1274_v52  ;;  %v4373_v52 = vld [vmem:[%s5640_s3 + $0x390] sm:$0xff] }
 0x1c0   : > { %2584 = vmatpush.bf16.msrb.mxu0 %v4360_v44  ;;  %2663 = vmatpush.bf16.msrb.mxu1 %v4368_v25 }
 0x1c1   : > { %v1531_v51 = vadd.f32 %v5253_v8, %v1511_v47  ;;  %2509 = vmatpush.bf16.msra.mxu3 %v4348_v39  ;;  %2740 = vmatpush.bf16.msrb.mxu2 %v4378_v58  ;;  %v1435_v49 = vpop.f32.mrf.mxu2  ;;  %v4384_v39 = vld [vmem:[%s5640_s3 + $0x3e8] sm:$0xff] }
 0x1c3   : > { %v1547_v35 = vmax.f32 %v1531_v51, 0.0  ;;  %v1226_v1 = vpop.f32.mrf.mxu0  ;;  %v4363_v51 = vld [vmem:[%s5640_s3 + $0x340] sm:$0xff] }
 0x1c4   : > { %2585 = vmatpush.bf16.msrb.mxu0 %v4359_v16  ;;  %v1484_v53 = vpop.f32.mrf.mxu3  ;;  %v1275_v5 = vpop.f32.mrf.mxu1  ;;  %2664 = vmatpush.bf16.msrb.mxu1 %v4367_v7  ;;  %v4374_v16 = vld [vmem:[%s5640_s3 + $0x398] sm:$0xff] }
 0x1c5   : > { %v1563_v57 = vpack.c.bf16 %v1547_v35, %v1547_v35  ;;  %v1485_v62 = vadd.f32 %v1484_v53, %v1435_v49  ;;  %2510 = vmatpush.bf16.msra.mxu3 %v4347_v6  ;;  %2741 = vmatpush.bf16.msrb.mxu2 %v4377_v19  ;;  %v1276_v44 = vadd.f32 %v1275_v5, %v1226_v1  ;;  %v4382_v1 = vld [vmem:[%s5640_s3 + $0x3d8] sm:$0xff] }
 0x1c6   : > { %v1070_v5 = vadd.f32 %v5116_v12, %v5114_v11 }
 0x1c7   : > { %v1512_v2 = vmax.f32 %v1301_v32, %v1485_v62  ;;  %2195 = vmatmul.bf16.vlgmr.msrb.gmra.mxu3 %v1563_v57  ;;  %v1302_v31 = vmax.f32 %v1091_v63, %v1276_v44  ;;  %v4372_v62 = vld [vmem:[%s5640_s3 + $0x388] sm:$0xff]  ;;  %v4379_v63 = vld [vmem:[%s5640_s3 + $0x3c0] sm:$0xff] }
 0x1c8   : > { %2586 = vmatpush.bf16.msrb.mxu0 %v4358_v3  ;;  %2665 = vmatpush.bf16.msrb.mxu1 %v4366_v20  ;;  %v4383_v3 = vld [vmem:[%s5640_s3 + $0x3e0] sm:$0xff]  ;;  %v1093_v61 = vmax.f32 %v875_v37, %v1070_v5  ;;  %v4380_v44 = vld [vmem:[%s5640_s3 + $0x3c8] sm:$0xff]  ;;  %v885_v5 = vadd.f32 %v5191_v17, %v5189_v14 }
 0x1c9   : > { %v1532_v30 = vadd.f32 %v5253_v8, %v1512_v2  ;;  %2742 = vmatpush.bf16.msrb.mxu2 %v4376_v55  ;;  %2819 = vmatpush.bf16.msrb.mxu3 %v4386_v26  ;;  %v1437_v4 = vpop.f32.mrf.mxu2  ;;  %v4371_v20 = vld [vmem:[%s5640_s3 + $0x380] sm:$0xff]  ;;  %v4381_v55 = vld [vmem:[%s5640_s3 + $0x3d0] sm:$0xff] }
 0x1cb   : > { %v1548_v0 = vmax.f32 %v1532_v30, 0.0  ;;  %v1229_v24 = vpop.f32.mrf.mxu0 }
 0x1cc   : > { %2587 = vmatpush.bf16.msrb.mxu0 %v4357_v15  ;;  %v1486_v23 = vpop.f32.mrf.mxu3  ;;  %v1278_v38 = vpop.f32.mrf.mxu1  ;;  %2666 = vmatpush.bf16.msrb.mxu1 %v4365_v22 }
 0x1cd   : > { %v1564_v27 = vpack.c.bf16 %v1548_v0, %v1548_v0  ;;  %v1487_v18 = vadd.f32 %v1486_v23, %v1437_v4  ;;  %2743 = vmatpush.bf16.msrb.mxu2 %v4375_v28  ;;  %2820 = vmatpush.bf16.msrb.mxu3 %v4385_v36  ;;  %v1279_v58 = vadd.f32 %v1278_v38, %v1229_v24 }
 0x1ce   : > { %v1075_v38 = vadd.f32 %v5165_v29, %v5163_v21 }
 0x1cf   : > { %v1513_v25 = vmax.f32 %v1302_v31, %v1487_v18  ;;  %2274 = vmatmul.bf16.vlgmr.msra.gmra.mxu0 %v1564_v27  ;;  %v1303_v49 = vmax.f32 %v1092_v45, %v1279_v58 }
 0x1d0   : > { %2588 = vmatpush.bf16.msrb.mxu0 %v4356_v50  ;;  %2667 = vmatpush.bf16.msrb.mxu1 %v4364_v10  ;;  %v880_v10 = vadd.f32 %v5136_v48, %v5134_v46 }
 0x1d1   : > { %v1533_v47 = vadd.f32 %v5253_v8, %v1513_v25  ;;  %2744 = vmatpush.bf16.msrb.mxu2 %v4374_v16  ;;  %2821 = vmatpush.bf16.msrb.mxu3 %v4384_v39  ;;  %v1440_v7 = vpop.f32.mrf.mxu2 }
 0x1d2   : > { %v1095_v25 = vmax.f32 %v880_v10, %v1075_v38  ;;  %v4394_v38 = vld [vmem:[%s5642_s5 + $0x38] sm:$0xff] }
 0x1d3   : > { %v1549_v6 = vmax.f32 %v1533_v47, 0.0  ;;  %v1231_v57 = vpop.f32.mrf.mxu0 }
 0x1d4   : > { %2589 = vmatpush.bf16.msrb.mxu0 %v4355_v56  ;;  %v1489_v35 = vpop.f32.mrf.mxu3  ;;  %v1280_v32 = vpop.f32.mrf.mxu1  ;;  %2668 = vmatpush.bf16.msrb.mxu1 %v4363_v51 }
 0x1d5   : > { %v1565_v19 = vpack.c.bf16 %v1549_v6, %v1549_v6  ;;  %v1490_v53 = vadd.f32 %v1489_v35, %v1440_v7  ;;  %2745 = vmatpush.bf16.msrb.mxu2 %v4373_v52  ;;  %2822 = vmatpush.bf16.msrb.mxu3 %v4383_v3  ;;  %v1281_v45 = vadd.f32 %v1280_v32, %v1231_v57 }
 0x1d7   : > { %v1514_v15 = vmax.f32 %v1303_v49, %v1490_v53  ;;  %2353 = vmatmul.bf16.vlgmr.msra.gmra.mxu1 %v1565_v19  ;;  %v1304_v34 = vmax.f32 %v1093_v61, %v1281_v45  ;;  %v5647_v19 = vmax.f32 %v5173_v13, %v5187_v9 }
 0x1d8   : > { %2908 = vmatpush.bf16.msra.mxu0 %v4394_v38 }
 0x1d9   : > { %v1534_v40 = vadd.f32 %v5253_v8, %v1514_v15  ;;  %2746 = vmatpush.bf16.msrb.mxu2 %v4372_v62  ;;  %2823 = vmatpush.bf16.msrb.mxu3 %v4382_v1  ;;  %v1442_v12 = vpop.f32.mrf.mxu2  ;;  %v1080_v62 = vadd.f32 %v5221_v60, %v5219_v59 }
 0x1db   : > { %v1550_v11 = vmax.f32 %v1534_v40, 0.0  ;;  %v1234_v42 = vpop.f32.mrf.mxu0  ;;  %v1097_v40 = vmax.f32 %v885_v5, %v1080_v62 }
 0x1dc   : > { %v1491_v2 = vpop.f32.mrf.mxu3  ;;  %v1283_v30 = vpop.f32.mrf.mxu1 }
 0x1dd   : > { %v1566_v26 = vpack.c.bf16 %v1550_v11, %v1550_v11  ;;  %v1492_v41 = vadd.f32 %v1491_v2, %v1442_v12  ;;  %2747 = vmatpush.bf16.msrb.mxu2 %v4371_v20  ;;  %2824 = vmatpush.bf16.msrb.mxu3 %v4381_v55  ;;  %v1284_v28 = vadd.f32 %v1283_v30, %v1234_v42 }
 0x1df   : > { %v1515_v50 = vmax.f32 %v1304_v34, %v1492_v41  ;;  %2432 = vmatmul.bf16.vlgmr.msra.gmra.mxu2 %v1566_v26  ;;  %v1305_v27 = vmax.f32 %v1094_v54, %v1284_v28 }
 0x1e1   : > { %v1535_v22 = vadd.f32 %v5253_v8, %v1515_v50  ;;  %2825 = vmatpush.bf16.msrb.mxu3 %v4380_v44  ;;  %v1445_v36 = vpop.f32.mrf.mxu2 }
 0x1e3   : > { %v1551_v0 = vmax.f32 %v1535_v22, 0.0  ;;  %v1236_v18 = vpop.f32.mrf.mxu0 }
 0x1e4   : > { %v1494_v4 = vpop.f32.mrf.mxu3  ;;  %v1285_v24 = vpop.f32.mrf.mxu1 }
 0x1e5   : > { %v1567_v23 = vpack.c.bf16 %v1551_v0, %v1551_v0  ;;  %v1495_v31 = vadd.f32 %v1494_v4, %v1445_v36  ;;  %2826 = vmatpush.bf16.msrb.mxu3 %v4379_v63  ;;  %v1286_v39 = vadd.f32 %v1285_v24, %v1236_v18 }
 0x1e7   : > { %v1516_v56 = vmax.f32 %v1305_v27, %v1495_v31  ;;  %2511 = vmatmul.bf16.vlgmr.msra.gmra.mxu3 %v1567_v23  ;;  %v1306_v54 = vmax.f32 %v1095_v25, %v1286_v39  ;;  %v4392_v39 = vld [vmem:[%s5642_s5 + $0x28] sm:$0xff] }
 0x1e9   : > { %v1536_v16 = vadd.f32 %v5253_v8, %v1516_v56  ;;  %v1447_v58 = vpop.f32.mrf.mxu2 }
 0x1eb   : > { %v1552_v47 = vmax.f32 %v1536_v16, 0.0  ;;  %v1239_v52 = vpop.f32.mrf.mxu0  ;;  %v4393_v16 = vld [vmem:[%s5642_s5 + $0x30] sm:$0xff] }
 0x1ec   : > { %v1496_v33 = vpop.f32.mrf.mxu3  ;;  %v1288_v3 = vpop.f32.mrf.mxu1  ;;  %2909 = vmatpush.bf16.msra.mxu0 %v4393_v16 }
 0x1ed   : > { %v1568_v43 = vpack.c.bf16 %v1552_v47, %v1552_v47  ;;  %v1497_v51 = vadd.f32 %v1496_v33, %v1447_v58  ;;  %v1289_v29 = vadd.f32 %v1288_v3, %v1239_v52  ;;  %v4391_v47 = vld [vmem:[%s5642_s5 + $0x20] sm:$0xff]  ;;  %v4390_v33 = vld [vmem:[%s5642_s5 + $0x18] sm:$0xff]  ;;  %v4388_v52 = vld [vmem:[%s5642_s5 + $0x8] sm:$0xff] }
 0x1ef   : > { %v1517_v6 = vmax.f32 %v1306_v54, %v1497_v51  ;;  %2590 = vmatmul.bf16.vlgmr.msrb.gmra.mxu0 %v1568_v43  ;;  %v1307_v49 = vmax.f32 %v5647_v19, %v1289_v29  ;;  %v4389_v43 = vld [vmem:[%s5642_s5 + $0x10] sm:$0xff] }
 0x1f0   : > { %2910 = vmatpush.bf16.msra.mxu0 %v4392_v39 }
 0x1f1   : > { %v1537_v21 = vadd.f32 %v5253_v8, %v1517_v6  ;;  %v1450_v35 = vpop.f32.mrf.mxu2  ;;  %v4387_v6 = vld [vmem:[%s5642_s5] sm:$0xff] }
 0x1f3   : > { %v1553_v7 = vmax.f32 %v1537_v21, 0.0  ;;  %v1241_v57 = vpop.f32.mrf.mxu0 }
 0x1f4   : > { %v1499_v46 = vpop.f32.mrf.mxu3  ;;  %v1290_v32 = vpop.f32.mrf.mxu1  ;;  %2911 = vmatpush.bf16.msra.mxu0 %v4391_v47 }
 0x1f5   : > { %v1569_v48 = vpack.c.bf16 %v1553_v7, %v1553_v7  ;;  %v1500_v53 = vadd.f32 %v1499_v46, %v1450_v35  ;;  %v1291_v37 = vadd.f32 %v1290_v32, %v1241_v57 }
 0x1f7   : > { %v1518_v1 = vmax.f32 %v1307_v49, %v1500_v53  ;;  %2669 = vmatmul.bf16.vlgmr.msrb.gmra.mxu1 %v1569_v48  ;;  %v1308_v9 = vmax.f32 %v1097_v40, %v1291_v37 }
 0x1f8   : > { %2912 = vmatpush.bf16.msra.mxu0 %v4390_v33 }
 0x1f9   : > { %v1538_v15 = vadd.f32 %v5253_v8, %v1518_v1  ;;  %v1452_v20 = vpop.f32.mrf.mxu2 }
 0x1fb   : > { %v1554_v45 = vmax.f32 %v1538_v15, 0.0  ;;  %v4435_v15 = vld [vmem:[%s5641_s4] ss:$0 sm:$0xff] }
 0x1fc   : > { %v1501_v55 = vpop.f32.mrf.mxu3  ;;  %2913 = vmatpush.bf16.msra.mxu0 %v4389_v43 }
 0x1fd   : > { %v1570_v13 = vpack.c.bf16 %v1554_v45, %v1554_v45  ;;  %v1502_v61 = vadd.f32 %v1501_v55, %v1452_v20 }
 0x1ff   : > { %v1519_v11 = vmax.f32 %v1308_v9, %v1502_v61  ;;  %2748 = vmatmul.bf16.vlgmr.msrb.gmra.mxu2 %v1570_v13  ;;  %v4436_v61 = vld [vmem:[%s5643_s6] ss:$0 sm:$0xff] }
 0x200   : > { %2914 = vmatpush.bf16.msra.mxu0 %v4388_v52 }
 0x201   : > { %v1539_v12 = vadd.f32 %v5253_v8, %v1519_v11 }
 0x203   : > { %v1555_v59 = vmax.f32 %v1539_v12, 0.0 }
 0x204   : > { %2915 = vmatpush.bf16.msra.mxu0 %v4387_v6 }
 0x205   : > { %v1571_v60 = vpack.c.bf16 %v1555_v59, %v1555_v59 }
 0x207   : > { %2827 = vmatmul.bf16.vlgmr.msrb.gmra.mxu3 %v1571_v60 }
 0x20c   : > { %v1723_v2 = vpop.f32.mrf.mxu1 }
 0x214   : > { %v1662_v26 = vpop.f32.mrf.mxu0  ;;  %v1725_v14 = vpop.f32.mrf.mxu1 }
 0x215   : > { %v1724_v17 = vadd.f32 %v1723_v2, %v1662_v26 }
 0x21c   : > { %v1664_v34 = vpop.f32.mrf.mxu0 }
 0x222   : > { %v1801_v41 = vpop.f32.mrf.mxu2 }
 0x223   : > { %v1805_v42 = vadd.f32 %v1801_v41, %v1724_v17 }
 0x22a   : > { %v1803_v30 = vpop.f32.mrf.mxu2  ;;  %v1880_v44 = vpop.f32.mrf.mxu3 }
 0x22b   : > { %v1884_v50 = vadd.f32 %v1880_v44, %v1805_v42 }
 0x22c   : > { %v1959_v22 = vpop.f32.mrf.mxu0 }
 0x22d   : > { %v1963_v28 = vadd.f32 %v1959_v22, %v1884_v50 }
 0x232   : > { %v1882_v63 = vpop.f32.mrf.mxu3 }
 0x234   : > { %v1961_v0 = vpop.f32.mrf.mxu0  ;;  %v2038_v36 = vpop.f32.mrf.mxu1 }
 0x235   : > { %v2042_v4 = vadd.f32 %v2038_v36, %v1963_v28 }
 0x23c   : > { %v2040_v8 = vpop.f32.mrf.mxu1 }
 0x242   : > { %v2117_v23 = vpop.f32.mrf.mxu2 }
 0x243   : > { %v2121_v35 = vadd.f32 %v2117_v23, %v2042_v4 }
 0x24a   : > { %v2119_v27 = vpop.f32.mrf.mxu2  ;;  %v2196_v31 = vpop.f32.mrf.mxu3 }
 0x24b   : > { %v2200_v46 = vadd.f32 %v2196_v31, %v2121_v35 }
 0x24c   : > { %v2275_v18 = vpop.f32.mrf.mxu0 }
 0x24d   : > { %v2279_v48 = vadd.f32 %v2275_v18, %v2200_v46 }
 0x252   : > { %v2198_v24 = vpop.f32.mrf.mxu3 }
 0x254   : > { %v2277_v56 = vpop.f32.mrf.mxu0  ;;  %v2354_v10 = vpop.f32.mrf.mxu1 }
 0x255   : > { %v2358_v49 = vadd.f32 %v2354_v10, %v2279_v48 }
 0x25c   : > { %v2356_v25 = vpop.f32.mrf.mxu1 }
 0x262   : > { %v2433_v58 = vpop.f32.mrf.mxu2 }
 0x263   : > { %v2437_v53 = vadd.f32 %v2433_v58, %v2358_v49 }
 0x26a   : > { %v2435_v54 = vpop.f32.mrf.mxu2  ;;  %v2512_v51 = vpop.f32.mrf.mxu3 }
 0x26b   : > { %v2516_v57 = vadd.f32 %v2512_v51, %v2437_v53 }
 0x26c   : > { %v2591_v3 = vpop.f32.mrf.mxu0 }
 0x26d   : > { %v2595_v62 = vadd.f32 %v2591_v3, %v2516_v57 }
 0x272   : > { %v2514_v21 = vpop.f32.mrf.mxu3 }
 0x274   : > { %v2593_v29 = vpop.f32.mrf.mxu0  ;;  %v2670_v7 = vpop.f32.mrf.mxu1 }
 0x275   : > { %v2674_v1 = vadd.f32 %v2670_v7, %v2595_v62 }
 0x27c   : > { %v2672_v19 = vpop.f32.mrf.mxu1 }
 0x282   : > { %v2749_v32 = vpop.f32.mrf.mxu2 }
 0x283   : > { %v2753_v5 = vadd.f32 %v2749_v32, %v2674_v1 }
 0x28a   : > { %v2751_v37 = vpop.f32.mrf.mxu2  ;;  %v2828_v40 = vpop.f32.mrf.mxu3 }
 0x28b   : > { %v2832_v45 = vadd.f32 %v2828_v40, %v2753_v5 }
 0x28d   : > { %v2837_v20 = vadd.f32 %v4435_v15, %v2832_v45 }
 0x28f   : > { %v2838_v55 = vmax.f32 %v2837_v20, 0.0 }
 0x291   : > { %v2839_v13 = vpack.c.bf16 %v2838_v55, %v2838_v55 }
 0x292   : > { %v2830_v9 = vpop.f32.mrf.mxu3 }
 0x293   : > { %2916 = vmatmul.bf16.vlgmr.msra.gmra.mxu0 %v2839_v13 }
 0x310   : > { %v2917_v11 = vpop.f32.mrf.mxu0 }
 0x311   : > { %v2918_v12 = vadd.f32 %v4436_v61, %v2917_v11 }
 0x313   : > { %2921 = vmax.xlane.f32.xlu0 %v2918_v12 }
 0x318   : > { %v2919_v59 = vpop.f32.mrf.mxu0 }
 0x386   : > { %v2922_v60 = vpop.xlane.xlu0 %2921 }
 0x387   : > { %v2923_v2 = vsub.f32 %v2918_v12, %v2922_v60 }
 0x389   : > { %v2924_v26 = vmul.f32 1.442695, %v2923_v2 }
 0x38b   : > { %4437 = vpow2.f32 %v2924_v26 }
 0x391   : > { %v4438_v14 = vpop.eup %4437 }
 0x392   : > { %2926 = vadd.xlane.f32.xlu0 %v4438_v14 }
 0x405   : > { %v2927_v17 = vpop.xlane.xlu0 %2926 }
 0x406   : > { %4439 = vlog2.f32 %v2927_v17 }
 0x40c   : > { %v4440_v34 = vpop.eup %4439 }
 0x40d   : > { %v2929_v41 = vmul.f32 0.6931472, %v4440_v34 }
 0x40f   : > { %v2930_v42 = vsub.f32 %v2923_v2, %v2929_v41 }
 0x411   : > { %2931 = vst [vmem:[%s564_s14] sm:$0xff] %v2930_v42 }
 0x412   : > { %4468 = shalt.err (!%p4465_p5)
}
 0x413   : > { %4395 = dma.vmem_to_hbm [thread:$0]  (%p4583_p6), %s2946_s15, 128, %s2948_s16, %s2933_s17  }
 0x414 PF: > { %s2959_s9 = sand.u32 1, %s4491_s24   ;;  %p4398_p7 = pnand %p3015_p9, %p4587_p8 }
 0x415   : > { %s2960_s23 = scalar_lea.sflag [#allocation4], %s2959_s9 }
 0x416   : > { %p4399_p10 = pneg %p4398_p7 }
 0x418   : > { %4486 = dma.done.wait (%p4399_p10), %s2960_s23, 128  }
 0x419   : > { %4488 = vsyncadd (%p4399_p10), %s2960_s23, 4294967168  ;;  %p17_p11 = scmp.ge.s32.totalorder %s4568_s30, 4   ;;  %s5648_s24 = smov %s4495_s25 }
 0x41a   : > { %s5649_s25 = smov %s4499_s26  ;;  %s5650_s26 = smov %s4581_s10 }
 0x41b   : > { %s5651_s27 = smov %s4568_s30  ;;  %19 = sbr.rel (!%p17_p11) target bundleno = 3 (0x3), region = 144 }
 0x420   :  { %2966 = vsyncpa [#allocation4], 1 }
 0x421   :  { %2968 = vsyncpa [#allocation4 + $0x1], 1 }

</bundles_post_ra>
